<compile_context>
chip_gen: v7x
topology: tpu7x:2x2x1
jax: 0.10.0
libtpu: 0.0.40
codegen_flags: <defaults>
</compile_context>

<pallas_src>
import functools

import jax
import jax.numpy as jnp
import numpy as np
from jax.experimental import pallas as pl
from jax.experimental.pallas import tpu as pltpu  # noqa: F401


def _dot(a, b):
    # NOTE: if bit-parity with an f32 CPU/PyTorch reference ever matters at
    # larger K, pass precision=jax.lax.Precision.HIGHEST here and in the ref.
    return jnp.dot(a, b, preferred_element_type=jnp.float32)


# ----------------------------------------------------------------------------
# Fused Pallas kernel: 2 bidirectional LSTM layers + Linear head, one launch.
# ----------------------------------------------------------------------------
def _bilstm_fused_kernel(x_ref, wih0_ref, whh0_ref, b0_ref,
                         wih1_ref, whh1_ref, b1_ref,
                         wlin_ref, blin_ref, y_ref,
                         *, seq_len, batch):
    """All operands live fully in VMEM.

    x_ref:    (T*B, F)   flattened (seq-major) input sequence
    wihL_ref: (D_in, 8H) packed [W_ih_fwd^T | W_ih_rev^T]
    whhL_ref: (2H, 8H)   block-diag([W_hh_fwd^T, W_hh_rev^T])
    bL_ref:   (1, 8H)    packed combined biases [b_ih_f+b_hh_f | b_ih_r+b_hh_r]
    wlin_ref: (2H, Y), blin_ref: (1, Y)
    y_ref:    (T, Y)
    """
    T, B = seq_len, batch
    H8 = whh0_ref.shape[-1]          # 8 * hidden
    G = H8 // 2                      # 4 * hidden (one direction's gate width)
    H = G // 4                       # hidden

    def cell(gates, c):
        # PyTorch gate order: i, f, g, o.
        i = jax.nn.sigmoid(gates[:, 0 * H:1 * H])
        f = jax.nn.sigmoid(gates[:, 1 * H:2 * H])
        g = jnp.tanh(gates[:, 2 * H:3 * H])
        o = jax.nn.sigmoid(gates[:, 3 * H:4 * H])
        c_new = f * c + i * g
        h_new = o * jnp.tanh(c_new)
        return h_new, c_new

    def run_bidir_recurrence(xg, whh):
        """xg[t]: (B, 8H) = [fwd proj of x[t] | rev proj of x[t]], bias folded in.

        Returns (outs_f, outs_r): lists of T hidden states (B, H) in TIME order
        (PyTorch bidirectional convention).
        """
        h_cat = jnp.zeros((B, 2 * H), jnp.float32)     # [h_fwd | h_rev]
        c_f = jnp.zeros((B, H), jnp.float32)
        c_r = jnp.zeros((B, H), jnp.float32)
        outs_f = [None] * T
        outs_r = [None] * T
        for t in range(T):                             # fully unrolled (T=8)
            # One 256-wide recurrent matmul covers BOTH directions
            # (block-diagonal W_hh): the only op on the serial chain.
            rec = _dot(h_cat, whh)                     # (B, 8H)
            gates_f = xg[t][:, :G] + rec[:, :G]        # fwd consumes x[t]
            gates_r = xg[T - 1 - t][:, G:] + rec[:, G:]  # rev consumes x[T-1-t]
            h_f, c_f = cell(gates_f, c_f)
            h_r, c_r = cell(gates_r, c_r)
            h_cat = jnp.concatenate([h_f, h_r], axis=-1)
            outs_f[t] = h_f
            outs_r[T - 1 - t] = h_r                    # store in time order
        return outs_f, outs_r

    # ---- Layer 0: input projection for ALL timesteps in ONE matmul, hoisted.
    xp0 = _dot(x_ref[...], wih0_ref[...]) + b0_ref[...]        # (T*B, 8H)
    xg0 = [xp0[t * B:(t + 1) * B, :] for t in range(T)]
    f0, r0 = run_bidir_recurrence(xg0, whh0_ref[...])

    # ---- Layer 1: projection of layer-0 outputs, also hoisted off the chain.
    wih1 = wih1_ref[...]
    b1 = b1_ref[...]
    xg1 = [_dot(jnp.concatenate([f0[t], r0[t]], axis=-1), wih1) + b1
           for t in range(T)]
    f1, r1 = run_bidir_recurrence(xg1, whh1_ref[...])

    # ---- Head: lstm_out[:, -1] selects the LAST BATCH element (exactly what
    #      the PyTorch code does with batch_first=False), then Linear.
    wlin = wlin_ref[...]
    blin = blin_ref[...]
    for t in range(T):
        last_t = jnp.concatenate(
            [f1[t][B - 1:B, :], r1[t][B - 1:B, :]], axis=-1)   # (1, 2H)
        y_ref[t:t + 1, :] = _dot(last_t, wlin) + blin


# ----------------------------------------------------------------------------
# One-time parameter packing (done at setup, NOT per forward call)
# ----------------------------------------------------------------------------
def pack_params(raw):
    layers = []
    for p in raw["lstm"]:
        w_ih_f = jnp.asarray(p["w_ih_f"], jnp.float32)   # (4H, D)
        w_ih_r = jnp.asarray(p["w_ih_r"], jnp.float32)
        w_hh_f = jnp.asarray(p["w_hh_f"], jnp.float32)   # (4H, H)
        w_hh_r = jnp.asarray(p["w_hh_r"], jnp.float32)
        H = w_hh_f.shape[1]
        G = 4 * H
        wih = jnp.concatenate([w_ih_f.T, w_ih_r.T], axis=1)          # (D, 8H)
        z = jnp.zeros((H, G), jnp.float32)
        whh = jnp.concatenate(
            [jnp.concatenate([w_hh_f.T, z], axis=1),
             jnp.concatenate([z, w_hh_r.T], axis=1)], axis=0)        # (2H, 8H)
        b = jnp.concatenate([jnp.asarray(p["b_f"], jnp.float32),
                             jnp.asarray(p["b_r"], jnp.float32)]
                            ).reshape(1, 2 * G)                      # (1, 8H)
        layers.append((wih, whh, b))
    return {
        "layers": tuple(layers),
        "wlin": jnp.asarray(raw["lin_w"], jnp.float32).T,            # (2H, Y)
        "blin": jnp.asarray(raw["lin_b"], jnp.float32).reshape(1, -1),
    }


def bilstm_forward(packed, sequences):
    """sequences: (T, B, n_features) -> (T, y_length), matching BiLSTM.forward."""
    x = jnp.asarray(sequences, jnp.float32)
    T, B, F = x.shape
    (wih0, whh0, b0), (wih1, whh1, b1) = packed["layers"]
    y_len = packed["wlin"].shape[1]
    kernel = functools.partial(_bilstm_fused_kernel, seq_len=T, batch=B)
    return pl.pallas_call(
        kernel,
        out_shape=jax.ShapeDtypeStruct((T, y_len), jnp.float32),
    )(x.reshape(T * B, F), wih0, whh0, b0, wih1, whh1, b1,
      packed["wlin"], packed["blin"])


# ----------------------------------------------------------------------------
# Pure-JAX reference (lax.scan) for verification
# ----------------------------------------------------------------------------
def _ref_direction(x, w_ih, w_hh, b, reverse):
    T, B, _ = x.shape
    H = w_hh.shape[1]
    xs = x[::-1] if reverse else x

    def step(carry, xt):
        h, c = carry
        gates = xt @ w_ih.T + h @ w_hh.T + b
        i, f, g, o = jnp.split(gates, 4, axis=-1)
        i = jax.nn.sigmoid(i)
        f = jax.nn.sigmoid(f)
        g = jnp.tanh(g)
        o = jax.nn.sigmoid(o)
        c = f * c + i * g
        h = o * jnp.tanh(c)
        return (h, c), h

    init = (jnp.zeros((B, H), jnp.float32), jnp.zeros((B, H), jnp.float32))
    _, hs = jax.lax.scan(step, init, xs)
    return hs[::-1] if reverse else hs


def bilstm_ref(params, sequences):
    x = jnp.asarray(sequences, jnp.float32)
    for p in params["lstm"]:
        hf = _ref_direction(x, p["w_ih_f"], p["w_hh_f"], p["b_f"], False)
        hb = _ref_direction(x, p["w_ih_r"], p["w_hh_r"], p["b_r"], True)
        x = jnp.concatenate([hf, hb], axis=-1)
    last = x[:, -1]
    return last @ params["lin_w"].T + params["lin_b"]


# ----------------------------------------------------------------------------
# Deterministic parameter init (PyTorch-style uniform(-1/sqrt(H), 1/sqrt(H)))
# ----------------------------------------------------------------------------
def init_params(key, n_features, n_hidden, y_length, n_layers):
    k = 1.0 / np.sqrt(n_hidden)
    params = {"lstm": []}
    for layer in range(n_layers):
        d_in = n_features if layer == 0 else 2 * n_hidden
        layer_p = {}
        for tag in ("f", "r"):
            key, k1, k2, k3, k4 = jax.random.split(key, 5)
            layer_p[f"w_ih_{tag}"] = jax.random.uniform(
                k1, (4 * n_hidden, d_in), jnp.float32, -k, k)
            layer_p[f"w_hh_{tag}"] = jax.random.uniform(
                k2, (4 * n_hidden, n_hidden), jnp.float32, -k, k)
            b_ih = jax.random.uniform(k3, (4 * n_hidden,), jnp.float32, -k, k)
            b_hh = jax.random.uniform(k4, (4 * n_hidden,), jnp.float32, -k, k)
            layer_p[f"b_{tag}"] = b_ih + b_hh
        params["lstm"].append(layer_p)

    klin = 1.0 / np.sqrt(2 * n_hidden)
    key, k1, k2 = jax.random.split(key, 3)
    params["lin_w"] = jax.random.uniform(
        k1, (y_length, 2 * n_hidden), jnp.float32, -klin, klin)
    params["lin_b"] = jax.random.uniform(
        k2, (y_length,), jnp.float32, -klin, klin)
    return params


# ----------------------------------------------------------------------------
if __name__ == "__main__":
    # Small shapes: seq_len=8, batch=3, n_features=4, n_hidden=32, y_length=5
    T, B, F, H, Y, NL = 8, 3, 4, 32, 5, 2

    root = jax.random.PRNGKey(0)
    kp, kx = jax.random.split(root)
    raw_params = init_params(kp, F, H, Y, NL)
    packed = pack_params(raw_params)
    sequences = jax.random.normal(kx, (T, B, F), jnp.float32)   # (T, B, F)

    y_pred = jax.block_until_ready(bilstm_forward(packed, sequences))
    y_ref = jax.block_until_ready(bilstm_ref(raw_params, sequences))

    assert y_pred.shape == (T, Y), y_pred.shape
    np.testing.assert_allclose(np.asarray(y_pred), np.asarray(y_ref),
                               rtol=1e-4, atol=1e-4)
    print("KERNEL_OK")
</pallas_src>

<mosaic_0001>
module attributes {stable_mosaic.version = 11 : i64} {
  func.func @_bilstm_fused_kernel(%arg0: memref<24x4xf32, #tpu.memory_space<vmem>>, %arg1: memref<4x256xf32, #tpu.memory_space<vmem>>, %arg2: memref<64x256xf32, #tpu.memory_space<vmem>>, %arg3: memref<1x256xf32, #tpu.memory_space<vmem>>, %arg4: memref<64x256xf32, #tpu.memory_space<vmem>>, %arg5: memref<64x256xf32, #tpu.memory_space<vmem>>, %arg6: memref<1x256xf32, #tpu.memory_space<vmem>>, %arg7: memref<64x5xf32, #tpu.memory_space<vmem>>, %arg8: memref<1x5xf32, #tpu.memory_space<vmem>>, %arg9: memref<8x5xf32, #tpu.memory_space<vmem>>) attributes {dimension_semantics = [], scalar_prefetch = 0 : i64, scratch_operands = 0 : i64, tpu.core_type = #tpu.core_type<tc>} {
    %c0 = arith.constant 0 : index
    %c0_0 = arith.constant 0 : index
    %0 = vector.load %arg0[%c0, %c0_0] : memref<24x4xf32, #tpu.memory_space<vmem>>, vector<24x4xf32>
    %c0_1 = arith.constant 0 : index
    %c0_2 = arith.constant 0 : index
    %1 = vector.load %arg1[%c0_1, %c0_2] : memref<4x256xf32, #tpu.memory_space<vmem>>, vector<4x256xf32>
    %cst = arith.constant dense<0.000000e+00> : vector<24x256xf32>
    %2 = tpu.matmul %0, %1, %cst {dimension_numbers = #tpu.dot_dimension_numbers<[1], [0], [0], [1], [0, 0, 1, 1], [], []>} : vector<24x4xf32>, vector<4x256xf32>, vector<24x256xf32> -> vector<24x256xf32>
    %c0_3 = arith.constant 0 : index
    %c0_4 = arith.constant 0 : index
    %3 = vector.load %arg3[%c0_3, %c0_4] : memref<1x256xf32, #tpu.memory_space<vmem>>, vector<1x256xf32>
    %4 = vector.broadcast %3 : vector<1x256xf32> to vector<24x256xf32>
    %5 = arith.addf %2, %4 : vector<24x256xf32>
    %6 = vector.extract_strided_slice %5 {offsets = [0, 0], sizes = [3, 256], strides = [1, 1]} : vector<24x256xf32> to vector<3x256xf32>
    %7 = vector.extract_strided_slice %5 {offsets = [3, 0], sizes = [3, 256], strides = [1, 1]} : vector<24x256xf32> to vector<3x256xf32>
    %8 = vector.extract_strided_slice %5 {offsets = [6, 0], sizes = [3, 256], strides = [1, 1]} : vector<24x256xf32> to vector<3x256xf32>
    %9 = vector.extract_strided_slice %5 {offsets = [9, 0], sizes = [3, 256], strides = [1, 1]} : vector<24x256xf32> to vector<3x256xf32>
    %10 = vector.extract_strided_slice %5 {offsets = [12, 0], sizes = [3, 256], strides = [1, 1]} : vector<24x256xf32> to vector<3x256xf32>
    %11 = vector.extract_strided_slice %5 {offsets = [15, 0], sizes = [3, 256], strides = [1, 1]} : vector<24x256xf32> to vector<3x256xf32>
    %12 = vector.extract_strided_slice %5 {offsets = [18, 0], sizes = [3, 256], strides = [1, 1]} : vector<24x256xf32> to vector<3x256xf32>
    %13 = vector.extract_strided_slice %5 {offsets = [21, 0], sizes = [3, 256], strides = [1, 1]} : vector<24x256xf32> to vector<3x256xf32>
    %c0_5 = arith.constant 0 : index
    %c0_6 = arith.constant 0 : index
    %14 = vector.load %arg2[%c0_5, %c0_6] : memref<64x256xf32, #tpu.memory_space<vmem>>, vector<64x256xf32>
    %cst_7 = arith.constant 0.000000e+00 : f32
    %15 = vector.broadcast %cst_7 : f32 to vector<3x64xf32>
    %cst_8 = arith.constant 0.000000e+00 : f32
    %16 = vector.broadcast %cst_8 : f32 to vector<3x32xf32>
    %cst_9 = arith.constant 0.000000e+00 : f32
    %17 = vector.broadcast %cst_9 : f32 to vector<3x32xf32>
    %cst_10 = arith.constant dense<0.000000e+00> : vector<3x256xf32>
    %18 = tpu.matmul %15, %14, %cst_10 {dimension_numbers = #tpu.dot_dimension_numbers<[1], [0], [0], [1], [0, 0, 1, 1], [], []>} : vector<3x64xf32>, vector<64x256xf32>, vector<3x256xf32> -> vector<3x256xf32>
    %19 = vector.extract_strided_slice %6 {offsets = [0, 0], sizes = [3, 128], strides = [1, 1]} : vector<3x256xf32> to vector<3x128xf32>
    %20 = vector.extract_strided_slice %18 {offsets = [0, 0], sizes = [3, 128], strides = [1, 1]} : vector<3x256xf32> to vector<3x128xf32>
    %21 = arith.addf %19, %20 : vector<3x128xf32>
    %22 = vector.extract_strided_slice %13 {offsets = [0, 128], sizes = [3, 128], strides = [1, 1]} : vector<3x256xf32> to vector<3x128xf32>
    %23 = vector.extract_strided_slice %18 {offsets = [0, 128], sizes = [3, 128], strides = [1, 1]} : vector<3x256xf32> to vector<3x128xf32>
    %24 = arith.addf %22, %23 : vector<3x128xf32>
    %25 = vector.extract_strided_slice %21 {offsets = [0, 0], sizes = [3, 32], strides = [1, 1]} : vector<3x128xf32> to vector<3x32xf32>
    %26 = arith.negf %25 : vector<3x32xf32>
    %27 = math.exp %26 : vector<3x32xf32>
    %cst_11 = arith.constant 1.000000e+00 : f32
    %28 = vector.broadcast %cst_11 : f32 to vector<3x32xf32>
    %29 = arith.addf %28, %27 : vector<3x32xf32>
    %30 = arith.divf %28, %29 : vector<3x32xf32>
    %31 = vector.extract_strided_slice %21 {offsets = [0, 32], sizes = [3, 32], strides = [1, 1]} : vector<3x128xf32> to vector<3x32xf32>
    %32 = arith.negf %31 : vector<3x32xf32>
    %33 = math.exp %32 : vector<3x32xf32>
    %cst_12 = arith.constant 1.000000e+00 : f32
    %34 = vector.broadcast %cst_12 : f32 to vector<3x32xf32>
    %35 = arith.addf %34, %33 : vector<3x32xf32>
    %36 = arith.divf %34, %35 : vector<3x32xf32>
    %37 = vector.extract_strided_slice %21 {offsets = [0, 64], sizes = [3, 32], strides = [1, 1]} : vector<3x128xf32> to vector<3x32xf32>
    %38 = math.tanh %37 : vector<3x32xf32>
    %39 = vector.extract_strided_slice %21 {offsets = [0, 96], sizes = [3, 32], strides = [1, 1]} : vector<3x128xf32> to vector<3x32xf32>
    %40 = arith.negf %39 : vector<3x32xf32>
    %41 = math.exp %40 : vector<3x32xf32>
    %cst_13 = arith.constant 1.000000e+00 : f32
    %42 = vector.broadcast %cst_13 : f32 to vector<3x32xf32>
    %43 = arith.addf %42, %41 : vector<3x32xf32>
    %44 = arith.divf %42, %43 : vector<3x32xf32>
    %45 = arith.mulf %36, %16 : vector<3x32xf32>
    %46 = arith.mulf %30, %38 : vector<3x32xf32>
    %47 = arith.addf %45, %46 : vector<3x32xf32>
    %48 = math.tanh %47 : vector<3x32xf32>
    %49 = arith.mulf %44, %48 : vector<3x32xf32>
    %50 = vector.extract_strided_slice %24 {offsets = [0, 0], sizes = [3, 32], strides = [1, 1]} : vector<3x128xf32> to vector<3x32xf32>
    %51 = arith.negf %50 : vector<3x32xf32>
    %52 = math.exp %51 : vector<3x32xf32>
    %cst_14 = arith.constant 1.000000e+00 : f32
    %53 = vector.broadcast %cst_14 : f32 to vector<3x32xf32>
    %54 = arith.addf %53, %52 : vector<3x32xf32>
    %55 = arith.divf %53, %54 : vector<3x32xf32>
    %56 = vector.extract_strided_slice %24 {offsets = [0, 32], sizes = [3, 32], strides = [1, 1]} : vector<3x128xf32> to vector<3x32xf32>
    %57 = arith.negf %56 : vector<3x32xf32>
    %58 = math.exp %57 : vector<3x32xf32>
    %cst_15 = arith.constant 1.000000e+00 : f32
    %59 = vector.broadcast %cst_15 : f32 to vector<3x32xf32>
    %60 = arith.addf %59, %58 : vector<3x32xf32>
    %61 = arith.divf %59, %60 : vector<3x32xf32>
    %62 = vector.extract_strided_slice %24 {offsets = [0, 64], sizes = [3, 32], strides = [1, 1]} : vector<3x128xf32> to vector<3x32xf32>
    %63 = math.tanh %62 : vector<3x32xf32>
    %64 = vector.extract_strided_slice %24 {offsets = [0, 96], sizes = [3, 32], strides = [1, 1]} : vector<3x128xf32> to vector<3x32xf32>
    %65 = arith.negf %64 : vector<3x32xf32>
    %66 = math.exp %65 : vector<3x32xf32>
    %cst_16 = arith.constant 1.000000e+00 : f32
    %67 = vector.broadcast %cst_16 : f32 to vector<3x32xf32>
    %68 = arith.addf %67, %66 : vector<3x32xf32>
    %69 = arith.divf %67, %68 : vector<3x32xf32>
    %70 = arith.mulf %61, %17 : vector<3x32xf32>
    %71 = arith.mulf %55, %63 : vector<3x32xf32>
    %72 = arith.addf %70, %71 : vector<3x32xf32>
    %73 = math.tanh %72 : vector<3x32xf32>
    %74 = arith.mulf %69, %73 : vector<3x32xf32>
    %75 = tpu.concatenate %49, %74 in 1 : vector<3x32xf32>, vector<3x32xf32> -> vector<3x64xf32>
    %cst_17 = arith.constant dense<0.000000e+00> : vector<3x256xf32>
    %76 = tpu.matmul %75, %14, %cst_17 {dimension_numbers = #tpu.dot_dimension_numbers<[1], [0], [0], [1], [0, 0, 1, 1], [], []>} : vector<3x64xf32>, vector<64x256xf32>, vector<3x256xf32> -> vector<3x256xf32>
    %77 = vector.extract_strided_slice %7 {offsets = [0, 0], sizes = [3, 128], strides = [1, 1]} : vector<3x256xf32> to vector<3x128xf32>
    %78 = vector.extract_strided_slice %76 {offsets = [0, 0], sizes = [3, 128], strides = [1, 1]} : vector<3x256xf32> to vector<3x128xf32>
    %79 = arith.addf %77, %78 : vector<3x128xf32>
    %80 = vector.extract_strided_slice %12 {offsets = [0, 128], sizes = [3, 128], strides = [1, 1]} : vector<3x256xf32> to vector<3x128xf32>
    %81 = vector.extract_strided_slice %76 {offsets = [0, 128], sizes = [3, 128], strides = [1, 1]} : vector<3x256xf32> to vector<3x128xf32>
    %82 = arith.addf %80, %81 : vector<3x128xf32>
    %83 = vector.extract_strided_slice %79 {offsets = [0, 0], sizes = [3, 32], strides = [1, 1]} : vector<3x128xf32> to vector<3x32xf32>
    %84 = arith.negf %83 : vector<3x32xf32>
    %85 = math.exp %84 : vector<3x32xf32>
    %cst_18 = arith.constant 1.000000e+00 : f32
    %86 = vector.broadcast %cst_18 : f32 to vector<3x32xf32>
    %87 = arith.addf %86, %85 : vector<3x32xf32>
    %88 = arith.divf %86, %87 : vector<3x32xf32>
    %89 = vector.extract_strided_slice %79 {offsets = [0, 32], sizes = [3, 32], strides = [1, 1]} : vector<3x128xf32> to vector<3x32xf32>
    %90 = arith.negf %89 : vector<3x32xf32>
    %91 = math.exp %90 : vector<3x32xf32>
    %cst_19 = arith.constant 1.000000e+00 : f32
    %92 = vector.broadcast %cst_19 : f32 to vector<3x32xf32>
    %93 = arith.addf %92, %91 : vector<3x32xf32>
    %94 = arith.divf %92, %93 : vector<3x32xf32>
    %95 = vector.extract_strided_slice %79 {offsets = [0, 64], sizes = [3, 32], strides = [1, 1]} : vector<3x128xf32> to vector<3x32xf32>
    %96 = math.tanh %95 : vector<3x32xf32>
    %97 = vector.extract_strided_slice %79 {offsets = [0, 96], sizes = [3, 32], strides = [1, 1]} : vector<3x128xf32> to vector<3x32xf32>
    %98 = arith.negf %97 : vector<3x32xf32>
    %99 = math.exp %98 : vector<3x32xf32>
    %cst_20 = arith.constant 1.000000e+00 : f32
    %100 = vector.broadcast %cst_20 : f32 to vector<3x32xf32>
    %101 = arith.addf %100, %99 : vector<3x32xf32>
    %102 = arith.divf %100, %101 : vector<3x32xf32>
    %103 = arith.mulf %94, %47 : vector<3x32xf32>
    %104 = arith.mulf %88, %96 : vector<3x32xf32>
    %105 = arith.addf %103, %104 : vector<3x32xf32>
    %106 = math.tanh %105 : vector<3x32xf32>
    %107 = arith.mulf %102, %106 : vector<3x32xf32>
    %108 = vector.extract_strided_slice %82 {offsets = [0, 0], sizes = [3, 32], strides = [1, 1]} : vector<3x128xf32> to vector<3x32xf32>
    %109 = arith.negf %108 : vector<3x32xf32>
    %110 = math.exp %109 : vector<3x32xf32>
    %cst_21 = arith.constant 1.000000e+00 : f32
    %111 = vector.broadcast %cst_21 : f32 to vector<3x32xf32>
    %112 = arith.addf %111, %110 : vector<3x32xf32>
    %113 = arith.divf %111, %112 : vector<3x32xf32>
    %114 = vector.extract_strided_slice %82 {offsets = [0, 32], sizes = [3, 32], strides = [1, 1]} : vector<3x128xf32> to vector<3x32xf32>
    %115 = arith.negf %114 : vector<3x32xf32>
    %116 = math.exp %115 : vector<3x32xf32>
    %cst_22 = arith.constant 1.000000e+00 : f32
    %117 = vector.broadcast %cst_22 : f32 to vector<3x32xf32>
    %118 = arith.addf %117, %116 : vector<3x32xf32>
    %119 = arith.divf %117, %118 : vector<3x32xf32>
    %120 = vector.extract_strided_slice %82 {offsets = [0, 64], sizes = [3, 32], strides = [1, 1]} : vector<3x128xf32> to vector<3x32xf32>
    %121 = math.tanh %120 : vector<3x32xf32>
    %122 = vector.extract_strided_slice %82 {offsets = [0, 96], sizes = [3, 32], strides = [1, 1]} : vector<3x128xf32> to vector<3x32xf32>
    %123 = arith.negf %122 : vector<3x32xf32>
    %124 = math.exp %123 : vector<3x32xf32>
    %cst_23 = arith.constant 1.000000e+00 : f32
    %125 = vector.broadcast %cst_23 : f32 to vector<3x32xf32>
    %126 = arith.addf %125, %124 : vector<3x32xf32>
    %127 = arith.divf %125, %126 : vector<3x32xf32>
    %128 = arith.mulf %119, %72 : vector<3x32xf32>
    %129 = arith.mulf %113, %121 : vector<3x32xf32>
    %130 = arith.addf %128, %129 : vector<3x32xf32>
    %131 = math.tanh %130 : vector<3x32xf32>
    %132 = arith.mulf %127, %131 : vector<3x32xf32>
    %133 = tpu.concatenate %107, %132 in 1 : vector<3x32xf32>, vector<3x32xf32> -> vector<3x64xf32>
    %cst_24 = arith.constant dense<0.000000e+00> : vector<3x256xf32>
    %134 = tpu.matmul %133, %14, %cst_24 {dimension_numbers = #tpu.dot_dimension_numbers<[1], [0], [0], [1], [0, 0, 1, 1], [], []>} : vector<3x64xf32>, vector<64x256xf32>, vector<3x256xf32> -> vector<3x256xf32>
    %135 = vector.extract_strided_slice %8 {offsets = [0, 0], sizes = [3, 128], strides = [1, 1]} : vector<3x256xf32> to vector<3x128xf32>
    %136 = vector.extract_strided_slice %134 {offsets = [0, 0], sizes = [3, 128], strides = [1, 1]} : vector<3x256xf32> to vector<3x128xf32>
    %137 = arith.addf %135, %136 : vector<3x128xf32>
    %138 = vector.extract_strided_slice %11 {offsets = [0, 128], sizes = [3, 128], strides = [1, 1]} : vector<3x256xf32> to vector<3x128xf32>
    %139 = vector.extract_strided_slice %134 {offsets = [0, 128], sizes = [3, 128], strides = [1, 1]} : vector<3x256xf32> to vector<3x128xf32>
    %140 = arith.addf %138, %139 : vector<3x128xf32>
    %141 = vector.extract_strided_slice %137 {offsets = [0, 0], sizes = [3, 32], strides = [1, 1]} : vector<3x128xf32> to vector<3x32xf32>
    %142 = arith.negf %141 : vector<3x32xf32>
    %143 = math.exp %142 : vector<3x32xf32>
    %cst_25 = arith.constant 1.000000e+00 : f32
    %144 = vector.broadcast %cst_25 : f32 to vector<3x32xf32>
    %145 = arith.addf %144, %143 : vector<3x32xf32>
    %146 = arith.divf %144, %145 : vector<3x32xf32>
    %147 = vector.extract_strided_slice %137 {offsets = [0, 32], sizes = [3, 32], strides = [1, 1]} : vector<3x128xf32> to vector<3x32xf32>
    %148 = arith.negf %147 : vector<3x32xf32>
    %149 = math.exp %148 : vector<3x32xf32>
    %cst_26 = arith.constant 1.000000e+00 : f32
    %150 = vector.broadcast %cst_26 : f32 to vector<3x32xf32>
    %151 = arith.addf %150, %149 : vector<3x32xf32>
    %152 = arith.divf %150, %151 : vector<3x32xf32>
    %153 = vector.extract_strided_slice %137 {offsets = [0, 64], sizes = [3, 32], strides = [1, 1]} : vector<3x128xf32> to vector<3x32xf32>
    %154 = math.tanh %153 : vector<3x32xf32>
    %155 = vector.extract_strided_slice %137 {offsets = [0, 96], sizes = [3, 32], strides = [1, 1]} : vector<3x128xf32> to vector<3x32xf32>
    %156 = arith.negf %155 : vector<3x32xf32>
    %157 = math.exp %156 : vector<3x32xf32>
    %cst_27 = arith.constant 1.000000e+00 : f32
    %158 = vector.broadcast %cst_27 : f32 to vector<3x32xf32>
    %159 = arith.addf %158, %157 : vector<3x32xf32>
    %160 = arith.divf %158, %159 : vector<3x32xf32>
    %161 = arith.mulf %152, %105 : vector<3x32xf32>
    %162 = arith.mulf %146, %154 : vector<3x32xf32>
    %163 = arith.addf %161, %162 : vector<3x32xf32>
    %164 = math.tanh %163 : vector<3x32xf32>
    %165 = arith.mulf %160, %164 : vector<3x32xf32>
    %166 = vector.extract_strided_slice %140 {offsets = [0, 0], sizes = [3, 32], strides = [1, 1]} : vector<3x128xf32> to vector<3x32xf32>
    %167 = arith.negf %166 : vector<3x32xf32>
    %168 = math.exp %167 : vector<3x32xf32>
    %cst_28 = arith.constant 1.000000e+00 : f32
    %169 = vector.broadcast %cst_28 : f32 to vector<3x32xf32>
    %170 = arith.addf %169, %168 : vector<3x32xf32>
    %171 = arith.divf %169, %170 : vector<3x32xf32>
    %172 = vector.extract_strided_slice %140 {offsets = [0, 32], sizes = [3, 32], strides = [1, 1]} : vector<3x128xf32> to vector<3x32xf32>
    %173 = arith.negf %172 : vector<3x32xf32>
    %174 = math.exp %173 : vector<3x32xf32>
    %cst_29 = arith.constant 1.000000e+00 : f32
    %175 = vector.broadcast %cst_29 : f32 to vector<3x32xf32>
    %176 = arith.addf %175, %174 : vector<3x32xf32>
    %177 = arith.divf %175, %176 : vector<3x32xf32>
    %178 = vector.extract_strided_slice %140 {offsets = [0, 64], sizes = [3, 32], strides = [1, 1]} : vector<3x128xf32> to vector<3x32xf32>
    %179 = math.tanh %178 : vector<3x32xf32>
    %180 = vector.extract_strided_slice %140 {offsets = [0, 96], sizes = [3, 32], strides = [1, 1]} : vector<3x128xf32> to vector<3x32xf32>
    %181 = arith.negf %180 : vector<3x32xf32>
    %182 = math.exp %181 : vector<3x32xf32>
    %cst_30 = arith.constant 1.000000e+00 : f32
    %183 = vector.broadcast %cst_30 : f32 to vector<3x32xf32>
    %184 = arith.addf %183, %182 : vector<3x32xf32>
    %185 = arith.divf %183, %184 : vector<3x32xf32>
    %186 = arith.mulf %177, %130 : vector<3x32xf32>
    %187 = arith.mulf %171, %179 : vector<3x32xf32>
    %188 = arith.addf %186, %187 : vector<3x32xf32>
    %189 = math.tanh %188 : vector<3x32xf32>
    %190 = arith.mulf %185, %189 : vector<3x32xf32>
    %191 = tpu.concatenate %165, %190 in 1 : vector<3x32xf32>, vector<3x32xf32> -> vector<3x64xf32>
    %cst_31 = arith.constant dense<0.000000e+00> : vector<3x256xf32>
    %192 = tpu.matmul %191, %14, %cst_31 {dimension_numbers = #tpu.dot_dimension_numbers<[1], [0], [0], [1], [0, 0, 1, 1], [], []>} : vector<3x64xf32>, vector<64x256xf32>, vector<3x256xf32> -> vector<3x256xf32>
    %193 = vector.extract_strided_slice %9 {offsets = [0, 0], sizes = [3, 128], strides = [1, 1]} : vector<3x256xf32> to vector<3x128xf32>
    %194 = vector.extract_strided_slice %192 {offsets = [0, 0], sizes = [3, 128], strides = [1, 1]} : vector<3x256xf32> to vector<3x128xf32>
    %195 = arith.addf %193, %194 : vector<3x128xf32>
    %196 = vector.extract_strided_slice %10 {offsets = [0, 128], sizes = [3, 128], strides = [1, 1]} : vector<3x256xf32> to vector<3x128xf32>
    %197 = vector.extract_strided_slice %192 {offsets = [0, 128], sizes = [3, 128], strides = [1, 1]} : vector<3x256xf32> to vector<3x128xf32>
    %198 = arith.addf %196, %197 : vector<3x128xf32>
    %199 = vector.extract_strided_slice %195 {offsets = [0, 0], sizes = [3, 32], strides = [1, 1]} : vector<3x128xf32> to vector<3x32xf32>
    %200 = arith.negf %199 : vector<3x32xf32>
    %201 = math.exp %200 : vector<3x32xf32>
    %cst_32 = arith.constant 1.000000e+00 : f32
    %202 = vector.broadcast %cst_32 : f32 to vector<3x32xf32>
    %203 = arith.addf %202, %201 : vector<3x32xf32>
    %204 = arith.divf %202, %203 : vector<3x32xf32>
    %205 = vector.extract_strided_slice %195 {offsets = [0, 32], sizes = [3, 32], strides = [1, 1]} : vector<3x128xf32> to vector<3x32xf32>
    %206 = arith.negf %205 : vector<3x32xf32>
    %207 = math.exp %206 : vector<3x32xf32>
    %cst_33 = arith.constant 1.000000e+00 : f32
    %208 = vector.broadcast %cst_33 : f32 to vector<3x32xf32>
    %209 = arith.addf %208, %207 : vector<3x32xf32>
    %210 = arith.divf %208, %209 : vector<3x32xf32>
    %211 = vector.extract_strided_slice %195 {offsets = [0, 64], sizes = [3, 32], strides = [1, 1]} : vector<3x128xf32> to vector<3x32xf32>
    %212 = math.tanh %211 : vector<3x32xf32>
    %213 = vector.extract_strided_slice %195 {offsets = [0, 96], sizes = [3, 32], strides = [1, 1]} : vector<3x128xf32> to vector<3x32xf32>
    %214 = arith.negf %213 : vector<3x32xf32>
    %215 = math.exp %214 : vector<3x32xf32>
    %cst_34 = arith.constant 1.000000e+00 : f32
    %216 = vector.broadcast %cst_34 : f32 to vector<3x32xf32>
    %217 = arith.addf %216, %215 : vector<3x32xf32>
    %218 = arith.divf %216, %217 : vector<3x32xf32>
    %219 = arith.mulf %210, %163 : vector<3x32xf32>
    %220 = arith.mulf %204, %212 : vector<3x32xf32>
    %221 = arith.addf %219, %220 : vector<3x32xf32>
    %222 = math.tanh %221 : vector<3x32xf32>
    %223 = arith.mulf %218, %222 : vector<3x32xf32>
    %224 = vector.extract_strided_slice %198 {offsets = [0, 0], sizes = [3, 32], strides = [1, 1]} : vector<3x128xf32> to vector<3x32xf32>
    %225 = arith.negf %224 : vector<3x32xf32>
    %226 = math.exp %225 : vector<3x32xf32>
    %cst_35 = arith.constant 1.000000e+00 : f32
    %227 = vector.broadcast %cst_35 : f32 to vector<3x32xf32>
    %228 = arith.addf %227, %226 : vector<3x32xf32>
    %229 = arith.divf %227, %228 : vector<3x32xf32>
    %230 = vector.extract_strided_slice %198 {offsets = [0, 32], sizes = [3, 32], strides = [1, 1]} : vector<3x128xf32> to vector<3x32xf32>
    %231 = arith.negf %230 : vector<3x32xf32>
    %232 = math.exp %231 : vector<3x32xf32>
    %cst_36 = arith.constant 1.000000e+00 : f32
    %233 = vector.broadcast %cst_36 : f32 to vector<3x32xf32>
    %234 = arith.addf %233, %232 : vector<3x32xf32>
    %235 = arith.divf %233, %234 : vector<3x32xf32>
    %236 = vector.extract_strided_slice %198 {offsets = [0, 64], sizes = [3, 32], strides = [1, 1]} : vector<3x128xf32> to vector<3x32xf32>
    %237 = math.tanh %236 : vector<3x32xf32>
    %238 = vector.extract_strided_slice %198 {offsets = [0, 96], sizes = [3, 32], strides = [1, 1]} : vector<3x128xf32> to vector<3x32xf32>
    %239 = arith.negf %238 : vector<3x32xf32>
    %240 = math.exp %239 : vector<3x32xf32>
    %cst_37 = arith.constant 1.000000e+00 : f32
    %241 = vector.broadcast %cst_37 : f32 to vector<3x32xf32>
    %242 = arith.addf %241, %240 : vector<3x32xf32>
    %243 = arith.divf %241, %242 : vector<3x32xf32>
    %244 = arith.mulf %235, %188 : vector<3x32xf32>
    %245 = arith.mulf %229, %237 : vector<3x32xf32>
    %246 = arith.addf %244, %245 : vector<3x32xf32>
    %247 = math.tanh %246 : vector<3x32xf32>
    %248 = arith.mulf %243, %247 : vector<3x32xf32>
    %249 = tpu.concatenate %223, %248 in 1 : vector<3x32xf32>, vector<3x32xf32> -> vector<3x64xf32>
    %cst_38 = arith.constant dense<0.000000e+00> : vector<3x256xf32>
    %250 = tpu.matmul %249, %14, %cst_38 {dimension_numbers = #tpu.dot_dimension_numbers<[1], [0], [0], [1], [0, 0, 1, 1], [], []>} : vector<3x64xf32>, vector<64x256xf32>, vector<3x256xf32> -> vector<3x256xf32>
    %251 = vector.extract_strided_slice %10 {offsets = [0, 0], sizes = [3, 128], strides = [1, 1]} : vector<3x256xf32> to vector<3x128xf32>
    %252 = vector.extract_strided_slice %250 {offsets = [0, 0], sizes = [3, 128], strides = [1, 1]} : vector<3x256xf32> to vector<3x128xf32>
    %253 = arith.addf %251, %252 : vector<3x128xf32>
    %254 = vector.extract_strided_slice %9 {offsets = [0, 128], sizes = [3, 128], strides = [1, 1]} : vector<3x256xf32> to vector<3x128xf32>
    %255 = vector.extract_strided_slice %250 {offsets = [0, 128], sizes = [3, 128], strides = [1, 1]} : vector<3x256xf32> to vector<3x128xf32>
    %256 = arith.addf %254, %255 : vector<3x128xf32>
    %257 = vector.extract_strided_slice %253 {offsets = [0, 0], sizes = [3, 32], strides = [1, 1]} : vector<3x128xf32> to vector<3x32xf32>
    %258 = arith.negf %257 : vector<3x32xf32>
    %259 = math.exp %258 : vector<3x32xf32>
    %cst_39 = arith.constant 1.000000e+00 : f32
    %260 = vector.broadcast %cst_39 : f32 to vector<3x32xf32>
    %261 = arith.addf %260, %259 : vector<3x32xf32>
    %262 = arith.divf %260, %261 : vector<3x32xf32>
    %263 = vector.extract_strided_slice %253 {offsets = [0, 32], sizes = [3, 32], strides = [1, 1]} : vector<3x128xf32> to vector<3x32xf32>
    %264 = arith.negf %263 : vector<3x32xf32>
    %265 = math.exp %264 : vector<3x32xf32>
    %cst_40 = arith.constant 1.000000e+00 : f32
    %266 = vector.broadcast %cst_40 : f32 to vector<3x32xf32>
    %267 = arith.addf %266, %265 : vector<3x32xf32>
    %268 = arith.divf %266, %267 : vector<3x32xf32>
    %269 = vector.extract_strided_slice %253 {offsets = [0, 64], sizes = [3, 32], strides = [1, 1]} : vector<3x128xf32> to vector<3x32xf32>
    %270 = math.tanh %269 : vector<3x32xf32>
    %271 = vector.extract_strided_slice %253 {offsets = [0, 96], sizes = [3, 32], strides = [1, 1]} : vector<3x128xf32> to vector<3x32xf32>
    %272 = arith.negf %271 : vector<3x32xf32>
    %273 = math.exp %272 : vector<3x32xf32>
    %cst_41 = arith.constant 1.000000e+00 : f32
    %274 = vector.broadcast %cst_41 : f32 to vector<3x32xf32>
    %275 = arith.addf %274, %273 : vector<3x32xf32>
    %276 = arith.divf %274, %275 : vector<3x32xf32>
    %277 = arith.mulf %268, %221 : vector<3x32xf32>
    %278 = arith.mulf %262, %270 : vector<3x32xf32>
    %279 = arith.addf %277, %278 : vector<3x32xf32>
    %280 = math.tanh %279 : vector<3x32xf32>
    %281 = arith.mulf %276, %280 : vector<3x32xf32>
    %282 = vector.extract_strided_slice %256 {offsets = [0, 0], sizes = [3, 32], strides = [1, 1]} : vector<3x128xf32> to vector<3x32xf32>
    %283 = arith.negf %282 : vector<3x32xf32>
    %284 = math.exp %283 : vector<3x32xf32>
    %cst_42 = arith.constant 1.000000e+00 : f32
    %285 = vector.broadcast %cst_42 : f32 to vector<3x32xf32>
    %286 = arith.addf %285, %284 : vector<3x32xf32>
    %287 = arith.divf %285, %286 : vector<3x32xf32>
    %288 = vector.extract_strided_slice %256 {offsets = [0, 32], sizes = [3, 32], strides = [1, 1]} : vector<3x128xf32> to vector<3x32xf32>
    %289 = arith.negf %288 : vector<3x32xf32>
    %290 = math.exp %289 : vector<3x32xf32>
    %cst_43 = arith.constant 1.000000e+00 : f32
    %291 = vector.broadcast %cst_43 : f32 to vector<3x32xf32>
    %292 = arith.addf %291, %290 : vector<3x32xf32>
    %293 = arith.divf %291, %292 : vector<3x32xf32>
    %294 = vector.extract_strided_slice %256 {offsets = [0, 64], sizes = [3, 32], strides = [1, 1]} : vector<3x128xf32> to vector<3x32xf32>
    %295 = math.tanh %294 : vector<3x32xf32>
    %296 = vector.extract_strided_slice %256 {offsets = [0, 96], sizes = [3, 32], strides = [1, 1]} : vector<3x128xf32> to vector<3x32xf32>
    %297 = arith.negf %296 : vector<3x32xf32>
    %298 = math.exp %297 : vector<3x32xf32>
    %cst_44 = arith.constant 1.000000e+00 : f32
    %299 = vector.broadcast %cst_44 : f32 to vector<3x32xf32>
    %300 = arith.addf %299, %298 : vector<3x32xf32>
    %301 = arith.divf %299, %300 : vector<3x32xf32>
    %302 = arith.mulf %293, %246 : vector<3x32xf32>
    %303 = arith.mulf %287, %295 : vector<3x32xf32>
    %304 = arith.addf %302, %303 : vector<3x32xf32>
    %305 = math.tanh %304 : vector<3x32xf32>
    %306 = arith.mulf %301, %305 : vector<3x32xf32>
    %307 = tpu.concatenate %281, %306 in 1 : vector<3x32xf32>, vector<3x32xf32> -> vector<3x64xf32>
    %cst_45 = arith.constant dense<0.000000e+00> : vector<3x256xf32>
    %308 = tpu.matmul %307, %14, %cst_45 {dimension_numbers = #tpu.dot_dimension_numbers<[1], [0], [0], [1], [0, 0, 1, 1], [], []>} : vector<3x64xf32>, vector<64x256xf32>, vector<3x256xf32> -> vector<3x256xf32>
    %309 = vector.extract_strided_slice %11 {offsets = [0, 0], sizes = [3, 128], strides = [1, 1]} : vector<3x256xf32> to vector<3x128xf32>
    %310 = vector.extract_strided_slice %308 {offsets = [0, 0], sizes = [3, 128], strides = [1, 1]} : vector<3x256xf32> to vector<3x128xf32>
    %311 = arith.addf %309, %310 : vector<3x128xf32>
    %312 = vector.extract_strided_slice %8 {offsets = [0, 128], sizes = [3, 128], strides = [1, 1]} : vector<3x256xf32> to vector<3x128xf32>
    %313 = vector.extract_strided_slice %308 {offsets = [0, 128], sizes = [3, 128], strides = [1, 1]} : vector<3x256xf32> to vector<3x128xf32>
    %314 = arith.addf %312, %313 : vector<3x128xf32>
    %315 = vector.extract_strided_slice %311 {offsets = [0, 0], sizes = [3, 32], strides = [1, 1]} : vector<3x128xf32> to vector<3x32xf32>
    %316 = arith.negf %315 : vector<3x32xf32>
    %317 = math.exp %316 : vector<3x32xf32>
    %cst_46 = arith.constant 1.000000e+00 : f32
    %318 = vector.broadcast %cst_46 : f32 to vector<3x32xf32>
    %319 = arith.addf %318, %317 : vector<3x32xf32>
    %320 = arith.divf %318, %319 : vector<3x32xf32>
    %321 = vector.extract_strided_slice %311 {offsets = [0, 32], sizes = [3, 32], strides = [1, 1]} : vector<3x128xf32> to vector<3x32xf32>
    %322 = arith.negf %321 : vector<3x32xf32>
    %323 = math.exp %322 : vector<3x32xf32>
    %cst_47 = arith.constant 1.000000e+00 : f32
    %324 = vector.broadcast %cst_47 : f32 to vector<3x32xf32>
    %325 = arith.addf %324, %323 : vector<3x32xf32>
    %326 = arith.divf %324, %325 : vector<3x32xf32>
    %327 = vector.extract_strided_slice %311 {offsets = [0, 64], sizes = [3, 32], strides = [1, 1]} : vector<3x128xf32> to vector<3x32xf32>
    %328 = math.tanh %327 : vector<3x32xf32>
    %329 = vector.extract_strided_slice %311 {offsets = [0, 96], sizes = [3, 32], strides = [1, 1]} : vector<3x128xf32> to vector<3x32xf32>
    %330 = arith.negf %329 : vector<3x32xf32>
    %331 = math.exp %330 : vector<3x32xf32>
    %cst_48 = arith.constant 1.000000e+00 : f32
    %332 = vector.broadcast %cst_48 : f32 to vector<3x32xf32>
    %333 = arith.addf %332, %331 : vector<3x32xf32>
    %334 = arith.divf %332, %333 : vector<3x32xf32>
    %335 = arith.mulf %326, %279 : vector<3x32xf32>
    %336 = arith.mulf %320, %328 : vector<3x32xf32>
    %337 = arith.addf %335, %336 : vector<3x32xf32>
    %338 = math.tanh %337 : vector<3x32xf32>
    %339 = arith.mulf %334, %338 : vector<3x32xf32>
    %340 = vector.extract_strided_slice %314 {offsets = [0, 0], sizes = [3, 32], strides = [1, 1]} : vector<3x128xf32> to vector<3x32xf32>
    %341 = arith.negf %340 : vector<3x32xf32>
    %342 = math.exp %341 : vector<3x32xf32>
    %cst_49 = arith.constant 1.000000e+00 : f32
    %343 = vector.broadcast %cst_49 : f32 to vector<3x32xf32>
    %344 = arith.addf %343, %342 : vector<3x32xf32>
    %345 = arith.divf %343, %344 : vector<3x32xf32>
    %346 = vector.extract_strided_slice %314 {offsets = [0, 32], sizes = [3, 32], strides = [1, 1]} : vector<3x128xf32> to vector<3x32xf32>
    %347 = arith.negf %346 : vector<3x32xf32>
    %348 = math.exp %347 : vector<3x32xf32>
    %cst_50 = arith.constant 1.000000e+00 : f32
    %349 = vector.broadcast %cst_50 : f32 to vector<3x32xf32>
    %350 = arith.addf %349, %348 : vector<3x32xf32>
    %351 = arith.divf %349, %350 : vector<3x32xf32>
    %352 = vector.extract_strided_slice %314 {offsets = [0, 64], sizes = [3, 32], strides = [1, 1]} : vector<3x128xf32> to vector<3x32xf32>
    %353 = math.tanh %352 : vector<3x32xf32>
    %354 = vector.extract_strided_slice %314 {offsets = [0, 96], sizes = [3, 32], strides = [1, 1]} : vector<3x128xf32> to vector<3x32xf32>
    %355 = arith.negf %354 : vector<3x32xf32>
    %356 = math.exp %355 : vector<3x32xf32>
    %cst_51 = arith.constant 1.000000e+00 : f32
    %357 = vector.broadcast %cst_51 : f32 to vector<3x32xf32>
    %358 = arith.addf %357, %356 : vector<3x32xf32>
    %359 = arith.divf %357, %358 : vector<3x32xf32>
    %360 = arith.mulf %351, %304 : vector<3x32xf32>
    %361 = arith.mulf %345, %353 : vector<3x32xf32>
    %362 = arith.addf %360, %361 : vector<3x32xf32>
    %363 = math.tanh %362 : vector<3x32xf32>
    %364 = arith.mulf %359, %363 : vector<3x32xf32>
    %365 = tpu.concatenate %339, %364 in 1 : vector<3x32xf32>, vector<3x32xf32> -> vector<3x64xf32>
    %cst_52 = arith.constant dense<0.000000e+00> : vector<3x256xf32>
    %366 = tpu.matmul %365, %14, %cst_52 {dimension_numbers = #tpu.dot_dimension_numbers<[1], [0], [0], [1], [0, 0, 1, 1], [], []>} : vector<3x64xf32>, vector<64x256xf32>, vector<3x256xf32> -> vector<3x256xf32>
    %367 = vector.extract_strided_slice %12 {offsets = [0, 0], sizes = [3, 128], strides = [1, 1]} : vector<3x256xf32> to vector<3x128xf32>
    %368 = vector.extract_strided_slice %366 {offsets = [0, 0], sizes = [3, 128], strides = [1, 1]} : vector<3x256xf32> to vector<3x128xf32>
    %369 = arith.addf %367, %368 : vector<3x128xf32>
    %370 = vector.extract_strided_slice %7 {offsets = [0, 128], sizes = [3, 128], strides = [1, 1]} : vector<3x256xf32> to vector<3x128xf32>
    %371 = vector.extract_strided_slice %366 {offsets = [0, 128], sizes = [3, 128], strides = [1, 1]} : vector<3x256xf32> to vector<3x128xf32>
    %372 = arith.addf %370, %371 : vector<3x128xf32>
    %373 = vector.extract_strided_slice %369 {offsets = [0, 0], sizes = [3, 32], strides = [1, 1]} : vector<3x128xf32> to vector<3x32xf32>
    %374 = arith.negf %373 : vector<3x32xf32>
    %375 = math.exp %374 : vector<3x32xf32>
    %cst_53 = arith.constant 1.000000e+00 : f32
    %376 = vector.broadcast %cst_53 : f32 to vector<3x32xf32>
    %377 = arith.addf %376, %375 : vector<3x32xf32>
    %378 = arith.divf %376, %377 : vector<3x32xf32>
    %379 = vector.extract_strided_slice %369 {offsets = [0, 32], sizes = [3, 32], strides = [1, 1]} : vector<3x128xf32> to vector<3x32xf32>
    %380 = arith.negf %379 : vector<3x32xf32>
    %381 = math.exp %380 : vector<3x32xf32>
    %cst_54 = arith.constant 1.000000e+00 : f32
    %382 = vector.broadcast %cst_54 : f32 to vector<3x32xf32>
    %383 = arith.addf %382, %381 : vector<3x32xf32>
    %384 = arith.divf %382, %383 : vector<3x32xf32>
    %385 = vector.extract_strided_slice %369 {offsets = [0, 64], sizes = [3, 32], strides = [1, 1]} : vector<3x128xf32> to vector<3x32xf32>
    %386 = math.tanh %385 : vector<3x32xf32>
    %387 = vector.extract_strided_slice %369 {offsets = [0, 96], sizes = [3, 32], strides = [1, 1]} : vector<3x128xf32> to vector<3x32xf32>
    %388 = arith.negf %387 : vector<3x32xf32>
    %389 = math.exp %388 : vector<3x32xf32>
    %cst_55 = arith.constant 1.000000e+00 : f32
    %390 = vector.broadcast %cst_55 : f32 to vector<3x32xf32>
    %391 = arith.addf %390, %389 : vector<3x32xf32>
    %392 = arith.divf %390, %391 : vector<3x32xf32>
    %393 = arith.mulf %384, %337 : vector<3x32xf32>
    %394 = arith.mulf %378, %386 : vector<3x32xf32>
    %395 = arith.addf %393, %394 : vector<3x32xf32>
    %396 = math.tanh %395 : vector<3x32xf32>
    %397 = arith.mulf %392, %396 : vector<3x32xf32>
    %398 = vector.extract_strided_slice %372 {offsets = [0, 0], sizes = [3, 32], strides = [1, 1]} : vector<3x128xf32> to vector<3x32xf32>
    %399 = arith.negf %398 : vector<3x32xf32>
    %400 = math.exp %399 : vector<3x32xf32>
    %cst_56 = arith.constant 1.000000e+00 : f32
    %401 = vector.broadcast %cst_56 : f32 to vector<3x32xf32>
    %402 = arith.addf %401, %400 : vector<3x32xf32>
    %403 = arith.divf %401, %402 : vector<3x32xf32>
    %404 = vector.extract_strided_slice %372 {offsets = [0, 32], sizes = [3, 32], strides = [1, 1]} : vector<3x128xf32> to vector<3x32xf32>
    %405 = arith.negf %404 : vector<3x32xf32>
    %406 = math.exp %405 : vector<3x32xf32>
    %cst_57 = arith.constant 1.000000e+00 : f32
    %407 = vector.broadcast %cst_57 : f32 to vector<3x32xf32>
    %408 = arith.addf %407, %406 : vector<3x32xf32>
    %409 = arith.divf %407, %408 : vector<3x32xf32>
    %410 = vector.extract_strided_slice %372 {offsets = [0, 64], sizes = [3, 32], strides = [1, 1]} : vector<3x128xf32> to vector<3x32xf32>
    %411 = math.tanh %410 : vector<3x32xf32>
    %412 = vector.extract_strided_slice %372 {offsets = [0, 96], sizes = [3, 32], strides = [1, 1]} : vector<3x128xf32> to vector<3x32xf32>
    %413 = arith.negf %412 : vector<3x32xf32>
    %414 = math.exp %413 : vector<3x32xf32>
    %cst_58 = arith.constant 1.000000e+00 : f32
    %415 = vector.broadcast %cst_58 : f32 to vector<3x32xf32>
    %416 = arith.addf %415, %414 : vector<3x32xf32>
    %417 = arith.divf %415, %416 : vector<3x32xf32>
    %418 = arith.mulf %409, %362 : vector<3x32xf32>
    %419 = arith.mulf %403, %411 : vector<3x32xf32>
    %420 = arith.addf %418, %419 : vector<3x32xf32>
    %421 = math.tanh %420 : vector<3x32xf32>
    %422 = arith.mulf %417, %421 : vector<3x32xf32>
    %423 = tpu.concatenate %397, %422 in 1 : vector<3x32xf32>, vector<3x32xf32> -> vector<3x64xf32>
    %cst_59 = arith.constant dense<0.000000e+00> : vector<3x256xf32>
    %424 = tpu.matmul %423, %14, %cst_59 {dimension_numbers = #tpu.dot_dimension_numbers<[1], [0], [0], [1], [0, 0, 1, 1], [], []>} : vector<3x64xf32>, vector<64x256xf32>, vector<3x256xf32> -> vector<3x256xf32>
    %425 = vector.extract_strided_slice %13 {offsets = [0, 0], sizes = [3, 128], strides = [1, 1]} : vector<3x256xf32> to vector<3x128xf32>
    %426 = vector.extract_strided_slice %424 {offsets = [0, 0], sizes = [3, 128], strides = [1, 1]} : vector<3x256xf32> to vector<3x128xf32>
    %427 = arith.addf %425, %426 : vector<3x128xf32>
    %428 = vector.extract_strided_slice %6 {offsets = [0, 128], sizes = [3, 128], strides = [1, 1]} : vector<3x256xf32> to vector<3x128xf32>
    %429 = vector.extract_strided_slice %424 {offsets = [0, 128], sizes = [3, 128], strides = [1, 1]} : vector<3x256xf32> to vector<3x128xf32>
    %430 = arith.addf %428, %429 : vector<3x128xf32>
    %431 = vector.extract_strided_slice %427 {offsets = [0, 0], sizes = [3, 32], strides = [1, 1]} : vector<3x128xf32> to vector<3x32xf32>
    %432 = arith.negf %431 : vector<3x32xf32>
    %433 = math.exp %432 : vector<3x32xf32>
    %cst_60 = arith.constant 1.000000e+00 : f32
    %434 = vector.broadcast %cst_60 : f32 to vector<3x32xf32>
    %435 = arith.addf %434, %433 : vector<3x32xf32>
    %436 = arith.divf %434, %435 : vector<3x32xf32>
    %437 = vector.extract_strided_slice %427 {offsets = [0, 32], sizes = [3, 32], strides = [1, 1]} : vector<3x128xf32> to vector<3x32xf32>
    %438 = arith.negf %437 : vector<3x32xf32>
    %439 = math.exp %438 : vector<3x32xf32>
    %cst_61 = arith.constant 1.000000e+00 : f32
    %440 = vector.broadcast %cst_61 : f32 to vector<3x32xf32>
    %441 = arith.addf %440, %439 : vector<3x32xf32>
    %442 = arith.divf %440, %441 : vector<3x32xf32>
    %443 = vector.extract_strided_slice %427 {offsets = [0, 64], sizes = [3, 32], strides = [1, 1]} : vector<3x128xf32> to vector<3x32xf32>
    %444 = math.tanh %443 : vector<3x32xf32>
    %445 = vector.extract_strided_slice %427 {offsets = [0, 96], sizes = [3, 32], strides = [1, 1]} : vector<3x128xf32> to vector<3x32xf32>
    %446 = arith.negf %445 : vector<3x32xf32>
    %447 = math.exp %446 : vector<3x32xf32>
    %cst_62 = arith.constant 1.000000e+00 : f32
    %448 = vector.broadcast %cst_62 : f32 to vector<3x32xf32>
    %449 = arith.addf %448, %447 : vector<3x32xf32>
    %450 = arith.divf %448, %449 : vector<3x32xf32>
    %451 = arith.mulf %442, %395 : vector<3x32xf32>
    %452 = arith.mulf %436, %444 : vector<3x32xf32>
    %453 = arith.addf %451, %452 : vector<3x32xf32>
    %454 = math.tanh %453 : vector<3x32xf32>
    %455 = arith.mulf %450, %454 : vector<3x32xf32>
    %456 = vector.extract_strided_slice %430 {offsets = [0, 0], sizes = [3, 32], strides = [1, 1]} : vector<3x128xf32> to vector<3x32xf32>
    %457 = arith.negf %456 : vector<3x32xf32>
    %458 = math.exp %457 : vector<3x32xf32>
    %cst_63 = arith.constant 1.000000e+00 : f32
    %459 = vector.broadcast %cst_63 : f32 to vector<3x32xf32>
    %460 = arith.addf %459, %458 : vector<3x32xf32>
    %461 = arith.divf %459, %460 : vector<3x32xf32>
    %462 = vector.extract_strided_slice %430 {offsets = [0, 32], sizes = [3, 32], strides = [1, 1]} : vector<3x128xf32> to vector<3x32xf32>
    %463 = arith.negf %462 : vector<3x32xf32>
    %464 = math.exp %463 : vector<3x32xf32>
    %cst_64 = arith.constant 1.000000e+00 : f32
    %465 = vector.broadcast %cst_64 : f32 to vector<3x32xf32>
    %466 = arith.addf %465, %464 : vector<3x32xf32>
    %467 = arith.divf %465, %466 : vector<3x32xf32>
    %468 = vector.extract_strided_slice %430 {offsets = [0, 64], sizes = [3, 32], strides = [1, 1]} : vector<3x128xf32> to vector<3x32xf32>
    %469 = math.tanh %468 : vector<3x32xf32>
    %470 = vector.extract_strided_slice %430 {offsets = [0, 96], sizes = [3, 32], strides = [1, 1]} : vector<3x128xf32> to vector<3x32xf32>
    %471 = arith.negf %470 : vector<3x32xf32>
    %472 = math.exp %471 : vector<3x32xf32>
    %cst_65 = arith.constant 1.000000e+00 : f32
    %473 = vector.broadcast %cst_65 : f32 to vector<3x32xf32>
    %474 = arith.addf %473, %472 : vector<3x32xf32>
    %475 = arith.divf %473, %474 : vector<3x32xf32>
    %476 = arith.mulf %467, %420 : vector<3x32xf32>
    %477 = arith.mulf %461, %469 : vector<3x32xf32>
    %478 = arith.addf %476, %477 : vector<3x32xf32>
    %479 = math.tanh %478 : vector<3x32xf32>
    %480 = arith.mulf %475, %479 : vector<3x32xf32>
    %c0_66 = arith.constant 0 : index
    %c0_67 = arith.constant 0 : index
    %481 = vector.load %arg4[%c0_66, %c0_67] : memref<64x256xf32, #tpu.memory_space<vmem>>, vector<64x256xf32>
    %c0_68 = arith.constant 0 : index
    %c0_69 = arith.constant 0 : index
    %482 = vector.load %arg6[%c0_68, %c0_69] : memref<1x256xf32, #tpu.memory_space<vmem>>, vector<1x256xf32>
    %483 = tpu.concatenate %49, %480 in 1 : vector<3x32xf32>, vector<3x32xf32> -> vector<3x64xf32>
    %cst_70 = arith.constant dense<0.000000e+00> : vector<3x256xf32>
    %484 = tpu.matmul %483, %481, %cst_70 {dimension_numbers = #tpu.dot_dimension_numbers<[1], [0], [0], [1], [0, 0, 1, 1], [], []>} : vector<3x64xf32>, vector<64x256xf32>, vector<3x256xf32> -> vector<3x256xf32>
    %485 = vector.broadcast %482 : vector<1x256xf32> to vector<3x256xf32>
    %486 = arith.addf %484, %485 : vector<3x256xf32>
    %487 = tpu.concatenate %107, %422 in 1 : vector<3x32xf32>, vector<3x32xf32> -> vector<3x64xf32>
    %cst_71 = arith.constant dense<0.000000e+00> : vector<3x256xf32>
    %488 = tpu.matmul %487, %481, %cst_71 {dimension_numbers = #tpu.dot_dimension_numbers<[1], [0], [0], [1], [0, 0, 1, 1], [], []>} : vector<3x64xf32>, vector<64x256xf32>, vector<3x256xf32> -> vector<3x256xf32>
    %489 = vector.broadcast %482 : vector<1x256xf32> to vector<3x256xf32>
    %490 = arith.addf %488, %489 : vector<3x256xf32>
    %491 = tpu.concatenate %165, %364 in 1 : vector<3x32xf32>, vector<3x32xf32> -> vector<3x64xf32>
    %cst_72 = arith.constant dense<0.000000e+00> : vector<3x256xf32>
    %492 = tpu.matmul %491, %481, %cst_72 {dimension_numbers = #tpu.dot_dimension_numbers<[1], [0], [0], [1], [0, 0, 1, 1], [], []>} : vector<3x64xf32>, vector<64x256xf32>, vector<3x256xf32> -> vector<3x256xf32>
    %493 = vector.broadcast %482 : vector<1x256xf32> to vector<3x256xf32>
    %494 = arith.addf %492, %493 : vector<3x256xf32>
    %495 = tpu.concatenate %223, %306 in 1 : vector<3x32xf32>, vector<3x32xf32> -> vector<3x64xf32>
    %cst_73 = arith.constant dense<0.000000e+00> : vector<3x256xf32>
    %496 = tpu.matmul %495, %481, %cst_73 {dimension_numbers = #tpu.dot_dimension_numbers<[1], [0], [0], [1], [0, 0, 1, 1], [], []>} : vector<3x64xf32>, vector<64x256xf32>, vector<3x256xf32> -> vector<3x256xf32>
    %497 = vector.broadcast %482 : vector<1x256xf32> to vector<3x256xf32>
    %498 = arith.addf %496, %497 : vector<3x256xf32>
    %499 = tpu.concatenate %281, %248 in 1 : vector<3x32xf32>, vector<3x32xf32> -> vector<3x64xf32>
    %cst_74 = arith.constant dense<0.000000e+00> : vector<3x256xf32>
    %500 = tpu.matmul %499, %481, %cst_74 {dimension_numbers = #tpu.dot_dimension_numbers<[1], [0], [0], [1], [0, 0, 1, 1], [], []>} : vector<3x64xf32>, vector<64x256xf32>, vector<3x256xf32> -> vector<3x256xf32>
    %501 = vector.broadcast %482 : vector<1x256xf32> to vector<3x256xf32>
    %502 = arith.addf %500, %501 : vector<3x256xf32>
    %503 = tpu.concatenate %339, %190 in 1 : vector<3x32xf32>, vector<3x32xf32> -> vector<3x64xf32>
    %cst_75 = arith.constant dense<0.000000e+00> : vector<3x256xf32>
    %504 = tpu.matmul %503, %481, %cst_75 {dimension_numbers = #tpu.dot_dimension_numbers<[1], [0], [0], [1], [0, 0, 1, 1], [], []>} : vector<3x64xf32>, vector<64x256xf32>, vector<3x256xf32> -> vector<3x256xf32>
    %505 = vector.broadcast %482 : vector<1x256xf32> to vector<3x256xf32>
    %506 = arith.addf %504, %505 : vector<3x256xf32>
    %507 = tpu.concatenate %397, %132 in 1 : vector<3x32xf32>, vector<3x32xf32> -> vector<3x64xf32>
    %cst_76 = arith.constant dense<0.000000e+00> : vector<3x256xf32>
    %508 = tpu.matmul %507, %481, %cst_76 {dimension_numbers = #tpu.dot_dimension_numbers<[1], [0], [0], [1], [0, 0, 1, 1], [], []>} : vector<3x64xf32>, vector<64x256xf32>, vector<3x256xf32> -> vector<3x256xf32>
    %509 = vector.broadcast %482 : vector<1x256xf32> to vector<3x256xf32>
    %510 = arith.addf %508, %509 : vector<3x256xf32>
    %511 = tpu.concatenate %455, %74 in 1 : vector<3x32xf32>, vector<3x32xf32> -> vector<3x64xf32>
    %cst_77 = arith.constant dense<0.000000e+00> : vector<3x256xf32>
    %512 = tpu.matmul %511, %481, %cst_77 {dimension_numbers = #tpu.dot_dimension_numbers<[1], [0], [0], [1], [0, 0, 1, 1], [], []>} : vector<3x64xf32>, vector<64x256xf32>, vector<3x256xf32> -> vector<3x256xf32>
    %513 = vector.broadcast %482 : vector<1x256xf32> to vector<3x256xf32>
    %514 = arith.addf %512, %513 : vector<3x256xf32>
    %c0_78 = arith.constant 0 : index
    %c0_79 = arith.constant 0 : index
    %515 = vector.load %arg5[%c0_78, %c0_79] : memref<64x256xf32, #tpu.memory_space<vmem>>, vector<64x256xf32>
    %cst_80 = arith.constant 0.000000e+00 : f32
    %516 = vector.broadcast %cst_80 : f32 to vector<3x64xf32>
    %cst_81 = arith.constant 0.000000e+00 : f32
    %517 = vector.broadcast %cst_81 : f32 to vector<3x32xf32>
    %cst_82 = arith.constant 0.000000e+00 : f32
    %518 = vector.broadcast %cst_82 : f32 to vector<3x32xf32>
    %cst_83 = arith.constant dense<0.000000e+00> : vector<3x256xf32>
    %519 = tpu.matmul %516, %515, %cst_83 {dimension_numbers = #tpu.dot_dimension_numbers<[1], [0], [0], [1], [0, 0, 1, 1], [], []>} : vector<3x64xf32>, vector<64x256xf32>, vector<3x256xf32> -> vector<3x256xf32>
    %520 = vector.extract_strided_slice %486 {offsets = [0, 0], sizes = [3, 128], strides = [1, 1]} : vector<3x256xf32> to vector<3x128xf32>
    %521 = vector.extract_strided_slice %519 {offsets = [0, 0], sizes = [3, 128], strides = [1, 1]} : vector<3x256xf32> to vector<3x128xf32>
    %522 = arith.addf %520, %521 : vector<3x128xf32>
    %523 = vector.extract_strided_slice %514 {offsets = [0, 128], sizes = [3, 128], strides = [1, 1]} : vector<3x256xf32> to vector<3x128xf32>
    %524 = vector.extract_strided_slice %519 {offsets = [0, 128], sizes = [3, 128], strides = [1, 1]} : vector<3x256xf32> to vector<3x128xf32>
    %525 = arith.addf %523, %524 : vector<3x128xf32>
    %526 = vector.extract_strided_slice %522 {offsets = [0, 0], sizes = [3, 32], strides = [1, 1]} : vector<3x128xf32> to vector<3x32xf32>
    %527 = arith.negf %526 : vector<3x32xf32>
    %528 = math.exp %527 : vector<3x32xf32>
    %cst_84 = arith.constant 1.000000e+00 : f32
    %529 = vector.broadcast %cst_84 : f32 to vector<3x32xf32>
    %530 = arith.addf %529, %528 : vector<3x32xf32>
    %531 = arith.divf %529, %530 : vector<3x32xf32>
    %532 = vector.extract_strided_slice %522 {offsets = [0, 32], sizes = [3, 32], strides = [1, 1]} : vector<3x128xf32> to vector<3x32xf32>
    %533 = arith.negf %532 : vector<3x32xf32>
    %534 = math.exp %533 : vector<3x32xf32>
    %cst_85 = arith.constant 1.000000e+00 : f32
    %535 = vector.broadcast %cst_85 : f32 to vector<3x32xf32>
    %536 = arith.addf %535, %534 : vector<3x32xf32>
    %537 = arith.divf %535, %536 : vector<3x32xf32>
    %538 = vector.extract_strided_slice %522 {offsets = [0, 64], sizes = [3, 32], strides = [1, 1]} : vector<3x128xf32> to vector<3x32xf32>
    %539 = math.tanh %538 : vector<3x32xf32>
    %540 = vector.extract_strided_slice %522 {offsets = [0, 96], sizes = [3, 32], strides = [1, 1]} : vector<3x128xf32> to vector<3x32xf32>
    %541 = arith.negf %540 : vector<3x32xf32>
    %542 = math.exp %541 : vector<3x32xf32>
    %cst_86 = arith.constant 1.000000e+00 : f32
    %543 = vector.broadcast %cst_86 : f32 to vector<3x32xf32>
    %544 = arith.addf %543, %542 : vector<3x32xf32>
    %545 = arith.divf %543, %544 : vector<3x32xf32>
    %546 = arith.mulf %537, %517 : vector<3x32xf32>
    %547 = arith.mulf %531, %539 : vector<3x32xf32>
    %548 = arith.addf %546, %547 : vector<3x32xf32>
    %549 = math.tanh %548 : vector<3x32xf32>
    %550 = arith.mulf %545, %549 : vector<3x32xf32>
    %551 = vector.extract_strided_slice %525 {offsets = [0, 0], sizes = [3, 32], strides = [1, 1]} : vector<3x128xf32> to vector<3x32xf32>
    %552 = arith.negf %551 : vector<3x32xf32>
    %553 = math.exp %552 : vector<3x32xf32>
    %cst_87 = arith.constant 1.000000e+00 : f32
    %554 = vector.broadcast %cst_87 : f32 to vector<3x32xf32>
    %555 = arith.addf %554, %553 : vector<3x32xf32>
    %556 = arith.divf %554, %555 : vector<3x32xf32>
    %557 = vector.extract_strided_slice %525 {offsets = [0, 32], sizes = [3, 32], strides = [1, 1]} : vector<3x128xf32> to vector<3x32xf32>
    %558 = arith.negf %557 : vector<3x32xf32>
    %559 = math.exp %558 : vector<3x32xf32>
    %cst_88 = arith.constant 1.000000e+00 : f32
    %560 = vector.broadcast %cst_88 : f32 to vector<3x32xf32>
    %561 = arith.addf %560, %559 : vector<3x32xf32>
    %562 = arith.divf %560, %561 : vector<3x32xf32>
    %563 = vector.extract_strided_slice %525 {offsets = [0, 64], sizes = [3, 32], strides = [1, 1]} : vector<3x128xf32> to vector<3x32xf32>
    %564 = math.tanh %563 : vector<3x32xf32>
    %565 = vector.extract_strided_slice %525 {offsets = [0, 96], sizes = [3, 32], strides = [1, 1]} : vector<3x128xf32> to vector<3x32xf32>
    %566 = arith.negf %565 : vector<3x32xf32>
    %567 = math.exp %566 : vector<3x32xf32>
    %cst_89 = arith.constant 1.000000e+00 : f32
    %568 = vector.broadcast %cst_89 : f32 to vector<3x32xf32>
    %569 = arith.addf %568, %567 : vector<3x32xf32>
    %570 = arith.divf %568, %569 : vector<3x32xf32>
    %571 = arith.mulf %562, %518 : vector<3x32xf32>
    %572 = arith.mulf %556, %564 : vector<3x32xf32>
    %573 = arith.addf %571, %572 : vector<3x32xf32>
    %574 = math.tanh %573 : vector<3x32xf32>
    %575 = arith.mulf %570, %574 : vector<3x32xf32>
    %576 = tpu.concatenate %550, %575 in 1 : vector<3x32xf32>, vector<3x32xf32> -> vector<3x64xf32>
    %cst_90 = arith.constant dense<0.000000e+00> : vector<3x256xf32>
    %577 = tpu.matmul %576, %515, %cst_90 {dimension_numbers = #tpu.dot_dimension_numbers<[1], [0], [0], [1], [0, 0, 1, 1], [], []>} : vector<3x64xf32>, vector<64x256xf32>, vector<3x256xf32> -> vector<3x256xf32>
    %578 = vector.extract_strided_slice %490 {offsets = [0, 0], sizes = [3, 128], strides = [1, 1]} : vector<3x256xf32> to vector<3x128xf32>
    %579 = vector.extract_strided_slice %577 {offsets = [0, 0], sizes = [3, 128], strides = [1, 1]} : vector<3x256xf32> to vector<3x128xf32>
    %580 = arith.addf %578, %579 : vector<3x128xf32>
    %581 = vector.extract_strided_slice %510 {offsets = [0, 128], sizes = [3, 128], strides = [1, 1]} : vector<3x256xf32> to vector<3x128xf32>
    %582 = vector.extract_strided_slice %577 {offsets = [0, 128], sizes = [3, 128], strides = [1, 1]} : vector<3x256xf32> to vector<3x128xf32>
    %583 = arith.addf %581, %582 : vector<3x128xf32>
    %584 = vector.extract_strided_slice %580 {offsets = [0, 0], sizes = [3, 32], strides = [1, 1]} : vector<3x128xf32> to vector<3x32xf32>
    %585 = arith.negf %584 : vector<3x32xf32>
    %586 = math.exp %585 : vector<3x32xf32>
    %cst_91 = arith.constant 1.000000e+00 : f32
    %587 = vector.broadcast %cst_91 : f32 to vector<3x32xf32>
    %588 = arith.addf %587, %586 : vector<3x32xf32>
    %589 = arith.divf %587, %588 : vector<3x32xf32>
    %590 = vector.extract_strided_slice %580 {offsets = [0, 32], sizes = [3, 32], strides = [1, 1]} : vector<3x128xf32> to vector<3x32xf32>
    %591 = arith.negf %590 : vector<3x32xf32>
    %592 = math.exp %591 : vector<3x32xf32>
    %cst_92 = arith.constant 1.000000e+00 : f32
    %593 = vector.broadcast %cst_92 : f32 to vector<3x32xf32>
    %594 = arith.addf %593, %592 : vector<3x32xf32>
    %595 = arith.divf %593, %594 : vector<3x32xf32>
    %596 = vector.extract_strided_slice %580 {offsets = [0, 64], sizes = [3, 32], strides = [1, 1]} : vector<3x128xf32> to vector<3x32xf32>
    %597 = math.tanh %596 : vector<3x32xf32>
    %598 = vector.extract_strided_slice %580 {offsets = [0, 96], sizes = [3, 32], strides = [1, 1]} : vector<3x128xf32> to vector<3x32xf32>
    %599 = arith.negf %598 : vector<3x32xf32>
    %600 = math.exp %599 : vector<3x32xf32>
    %cst_93 = arith.constant 1.000000e+00 : f32
    %601 = vector.broadcast %cst_93 : f32 to vector<3x32xf32>
    %602 = arith.addf %601, %600 : vector<3x32xf32>
    %603 = arith.divf %601, %602 : vector<3x32xf32>
    %604 = arith.mulf %595, %548 : vector<3x32xf32>
    %605 = arith.mulf %589, %597 : vector<3x32xf32>
    %606 = arith.addf %604, %605 : vector<3x32xf32>
    %607 = math.tanh %606 : vector<3x32xf32>
    %608 = arith.mulf %603, %607 : vector<3x32xf32>
    %609 = vector.extract_strided_slice %583 {offsets = [0, 0], sizes = [3, 32], strides = [1, 1]} : vector<3x128xf32> to vector<3x32xf32>
    %610 = arith.negf %609 : vector<3x32xf32>
    %611 = math.exp %610 : vector<3x32xf32>
    %cst_94 = arith.constant 1.000000e+00 : f32
    %612 = vector.broadcast %cst_94 : f32 to vector<3x32xf32>
    %613 = arith.addf %612, %611 : vector<3x32xf32>
    %614 = arith.divf %612, %613 : vector<3x32xf32>
    %615 = vector.extract_strided_slice %583 {offsets = [0, 32], sizes = [3, 32], strides = [1, 1]} : vector<3x128xf32> to vector<3x32xf32>
    %616 = arith.negf %615 : vector<3x32xf32>
    %617 = math.exp %616 : vector<3x32xf32>
    %cst_95 = arith.constant 1.000000e+00 : f32
    %618 = vector.broadcast %cst_95 : f32 to vector<3x32xf32>
    %619 = arith.addf %618, %617 : vector<3x32xf32>
    %620 = arith.divf %618, %619 : vector<3x32xf32>
    %621 = vector.extract_strided_slice %583 {offsets = [0, 64], sizes = [3, 32], strides = [1, 1]} : vector<3x128xf32> to vector<3x32xf32>
    %622 = math.tanh %621 : vector<3x32xf32>
    %623 = vector.extract_strided_slice %583 {offsets = [0, 96], sizes = [3, 32], strides = [1, 1]} : vector<3x128xf32> to vector<3x32xf32>
    %624 = arith.negf %623 : vector<3x32xf32>
    %625 = math.exp %624 : vector<3x32xf32>
    %cst_96 = arith.constant 1.000000e+00 : f32
    %626 = vector.broadcast %cst_96 : f32 to vector<3x32xf32>
    %627 = arith.addf %626, %625 : vector<3x32xf32>
    %628 = arith.divf %626, %627 : vector<3x32xf32>
    %629 = arith.mulf %620, %573 : vector<3x32xf32>
    %630 = arith.mulf %614, %622 : vector<3x32xf32>
    %631 = arith.addf %629, %630 : vector<3x32xf32>
    %632 = math.tanh %631 : vector<3x32xf32>
    %633 = arith.mulf %628, %632 : vector<3x32xf32>
    %634 = tpu.concatenate %608, %633 in 1 : vector<3x32xf32>, vector<3x32xf32> -> vector<3x64xf32>
    %cst_97 = arith.constant dense<0.000000e+00> : vector<3x256xf32>
    %635 = tpu.matmul %634, %515, %cst_97 {dimension_numbers = #tpu.dot_dimension_numbers<[1], [0], [0], [1], [0, 0, 1, 1], [], []>} : vector<3x64xf32>, vector<64x256xf32>, vector<3x256xf32> -> vector<3x256xf32>
    %636 = vector.extract_strided_slice %494 {offsets = [0, 0], sizes = [3, 128], strides = [1, 1]} : vector<3x256xf32> to vector<3x128xf32>
    %637 = vector.extract_strided_slice %635 {offsets = [0, 0], sizes = [3, 128], strides = [1, 1]} : vector<3x256xf32> to vector<3x128xf32>
    %638 = arith.addf %636, %637 : vector<3x128xf32>
    %639 = vector.extract_strided_slice %506 {offsets = [0, 128], sizes = [3, 128], strides = [1, 1]} : vector<3x256xf32> to vector<3x128xf32>
    %640 = vector.extract_strided_slice %635 {offsets = [0, 128], sizes = [3, 128], strides = [1, 1]} : vector<3x256xf32> to vector<3x128xf32>
    %641 = arith.addf %639, %640 : vector<3x128xf32>
    %642 = vector.extract_strided_slice %638 {offsets = [0, 0], sizes = [3, 32], strides = [1, 1]} : vector<3x128xf32> to vector<3x32xf32>
    %643 = arith.negf %642 : vector<3x32xf32>
    %644 = math.exp %643 : vector<3x32xf32>
    %cst_98 = arith.constant 1.000000e+00 : f32
    %645 = vector.broadcast %cst_98 : f32 to vector<3x32xf32>
    %646 = arith.addf %645, %644 : vector<3x32xf32>
    %647 = arith.divf %645, %646 : vector<3x32xf32>
    %648 = vector.extract_strided_slice %638 {offsets = [0, 32], sizes = [3, 32], strides = [1, 1]} : vector<3x128xf32> to vector<3x32xf32>
    %649 = arith.negf %648 : vector<3x32xf32>
    %650 = math.exp %649 : vector<3x32xf32>
    %cst_99 = arith.constant 1.000000e+00 : f32
    %651 = vector.broadcast %cst_99 : f32 to vector<3x32xf32>
    %652 = arith.addf %651, %650 : vector<3x32xf32>
    %653 = arith.divf %651, %652 : vector<3x32xf32>
    %654 = vector.extract_strided_slice %638 {offsets = [0, 64], sizes = [3, 32], strides = [1, 1]} : vector<3x128xf32> to vector<3x32xf32>
    %655 = math.tanh %654 : vector<3x32xf32>
    %656 = vector.extract_strided_slice %638 {offsets = [0, 96], sizes = [3, 32], strides = [1, 1]} : vector<3x128xf32> to vector<3x32xf32>
    %657 = arith.negf %656 : vector<3x32xf32>
    %658 = math.exp %657 : vector<3x32xf32>
    %cst_100 = arith.constant 1.000000e+00 : f32
    %659 = vector.broadcast %cst_100 : f32 to vector<3x32xf32>
    %660 = arith.addf %659, %658 : vector<3x32xf32>
    %661 = arith.divf %659, %660 : vector<3x32xf32>
    %662 = arith.mulf %653, %606 : vector<3x32xf32>
    %663 = arith.mulf %647, %655 : vector<3x32xf32>
    %664 = arith.addf %662, %663 : vector<3x32xf32>
    %665 = math.tanh %664 : vector<3x32xf32>
    %666 = arith.mulf %661, %665 : vector<3x32xf32>
    %667 = vector.extract_strided_slice %641 {offsets = [0, 0], sizes = [3, 32], strides = [1, 1]} : vector<3x128xf32> to vector<3x32xf32>
    %668 = arith.negf %667 : vector<3x32xf32>
    %669 = math.exp %668 : vector<3x32xf32>
    %cst_101 = arith.constant 1.000000e+00 : f32
    %670 = vector.broadcast %cst_101 : f32 to vector<3x32xf32>
    %671 = arith.addf %670, %669 : vector<3x32xf32>
    %672 = arith.divf %670, %671 : vector<3x32xf32>
    %673 = vector.extract_strided_slice %641 {offsets = [0, 32], sizes = [3, 32], strides = [1, 1]} : vector<3x128xf32> to vector<3x32xf32>
    %674 = arith.negf %673 : vector<3x32xf32>
    %675 = math.exp %674 : vector<3x32xf32>
    %cst_102 = arith.constant 1.000000e+00 : f32
    %676 = vector.broadcast %cst_102 : f32 to vector<3x32xf32>
    %677 = arith.addf %676, %675 : vector<3x32xf32>
    %678 = arith.divf %676, %677 : vector<3x32xf32>
    %679 = vector.extract_strided_slice %641 {offsets = [0, 64], sizes = [3, 32], strides = [1, 1]} : vector<3x128xf32> to vector<3x32xf32>
    %680 = math.tanh %679 : vector<3x32xf32>
    %681 = vector.extract_strided_slice %641 {offsets = [0, 96], sizes = [3, 32], strides = [1, 1]} : vector<3x128xf32> to vector<3x32xf32>
    %682 = arith.negf %681 : vector<3x32xf32>
    %683 = math.exp %682 : vector<3x32xf32>
    %cst_103 = arith.constant 1.000000e+00 : f32
    %684 = vector.broadcast %cst_103 : f32 to vector<3x32xf32>
    %685 = arith.addf %684, %683 : vector<3x32xf32>
    %686 = arith.divf %684, %685 : vector<3x32xf32>
    %687 = arith.mulf %678, %631 : vector<3x32xf32>
    %688 = arith.mulf %672, %680 : vector<3x32xf32>
    %689 = arith.addf %687, %688 : vector<3x32xf32>
    %690 = math.tanh %689 : vector<3x32xf32>
    %691 = arith.mulf %686, %690 : vector<3x32xf32>
    %692 = tpu.concatenate %666, %691 in 1 : vector<3x32xf32>, vector<3x32xf32> -> vector<3x64xf32>
    %cst_104 = arith.constant dense<0.000000e+00> : vector<3x256xf32>
    %693 = tpu.matmul %692, %515, %cst_104 {dimension_numbers = #tpu.dot_dimension_numbers<[1], [0], [0], [1], [0, 0, 1, 1], [], []>} : vector<3x64xf32>, vector<64x256xf32>, vector<3x256xf32> -> vector<3x256xf32>
    %694 = vector.extract_strided_slice %498 {offsets = [0, 0], sizes = [3, 128], strides = [1, 1]} : vector<3x256xf32> to vector<3x128xf32>
    %695 = vector.extract_strided_slice %693 {offsets = [0, 0], sizes = [3, 128], strides = [1, 1]} : vector<3x256xf32> to vector<3x128xf32>
    %696 = arith.addf %694, %695 : vector<3x128xf32>
    %697 = vector.extract_strided_slice %502 {offsets = [0, 128], sizes = [3, 128], strides = [1, 1]} : vector<3x256xf32> to vector<3x128xf32>
    %698 = vector.extract_strided_slice %693 {offsets = [0, 128], sizes = [3, 128], strides = [1, 1]} : vector<3x256xf32> to vector<3x128xf32>
    %699 = arith.addf %697, %698 : vector<3x128xf32>
    %700 = vector.extract_strided_slice %696 {offsets = [0, 0], sizes = [3, 32], strides = [1, 1]} : vector<3x128xf32> to vector<3x32xf32>
    %701 = arith.negf %700 : vector<3x32xf32>
    %702 = math.exp %701 : vector<3x32xf32>
    %cst_105 = arith.constant 1.000000e+00 : f32
    %703 = vector.broadcast %cst_105 : f32 to vector<3x32xf32>
    %704 = arith.addf %703, %702 : vector<3x32xf32>
    %705 = arith.divf %703, %704 : vector<3x32xf32>
    %706 = vector.extract_strided_slice %696 {offsets = [0, 32], sizes = [3, 32], strides = [1, 1]} : vector<3x128xf32> to vector<3x32xf32>
    %707 = arith.negf %706 : vector<3x32xf32>
    %708 = math.exp %707 : vector<3x32xf32>
    %cst_106 = arith.constant 1.000000e+00 : f32
    %709 = vector.broadcast %cst_106 : f32 to vector<3x32xf32>
    %710 = arith.addf %709, %708 : vector<3x32xf32>
    %711 = arith.divf %709, %710 : vector<3x32xf32>
    %712 = vector.extract_strided_slice %696 {offsets = [0, 64], sizes = [3, 32], strides = [1, 1]} : vector<3x128xf32> to vector<3x32xf32>
    %713 = math.tanh %712 : vector<3x32xf32>
    %714 = vector.extract_strided_slice %696 {offsets = [0, 96], sizes = [3, 32], strides = [1, 1]} : vector<3x128xf32> to vector<3x32xf32>
    %715 = arith.negf %714 : vector<3x32xf32>
    %716 = math.exp %715 : vector<3x32xf32>
    %cst_107 = arith.constant 1.000000e+00 : f32
    %717 = vector.broadcast %cst_107 : f32 to vector<3x32xf32>
    %718 = arith.addf %717, %716 : vector<3x32xf32>
    %719 = arith.divf %717, %718 : vector<3x32xf32>
    %720 = arith.mulf %711, %664 : vector<3x32xf32>
    %721 = arith.mulf %705, %713 : vector<3x32xf32>
    %722 = arith.addf %720, %721 : vector<3x32xf32>
    %723 = math.tanh %722 : vector<3x32xf32>
    %724 = arith.mulf %719, %723 : vector<3x32xf32>
    %725 = vector.extract_strided_slice %699 {offsets = [0, 0], sizes = [3, 32], strides = [1, 1]} : vector<3x128xf32> to vector<3x32xf32>
    %726 = arith.negf %725 : vector<3x32xf32>
    %727 = math.exp %726 : vector<3x32xf32>
    %cst_108 = arith.constant 1.000000e+00 : f32
    %728 = vector.broadcast %cst_108 : f32 to vector<3x32xf32>
    %729 = arith.addf %728, %727 : vector<3x32xf32>
    %730 = arith.divf %728, %729 : vector<3x32xf32>
    %731 = vector.extract_strided_slice %699 {offsets = [0, 32], sizes = [3, 32], strides = [1, 1]} : vector<3x128xf32> to vector<3x32xf32>
    %732 = arith.negf %731 : vector<3x32xf32>
    %733 = math.exp %732 : vector<3x32xf32>
    %cst_109 = arith.constant 1.000000e+00 : f32
    %734 = vector.broadcast %cst_109 : f32 to vector<3x32xf32>
    %735 = arith.addf %734, %733 : vector<3x32xf32>
    %736 = arith.divf %734, %735 : vector<3x32xf32>
    %737 = vector.extract_strided_slice %699 {offsets = [0, 64], sizes = [3, 32], strides = [1, 1]} : vector<3x128xf32> to vector<3x32xf32>
    %738 = math.tanh %737 : vector<3x32xf32>
    %739 = vector.extract_strided_slice %699 {offsets = [0, 96], sizes = [3, 32], strides = [1, 1]} : vector<3x128xf32> to vector<3x32xf32>
    %740 = arith.negf %739 : vector<3x32xf32>
    %741 = math.exp %740 : vector<3x32xf32>
    %cst_110 = arith.constant 1.000000e+00 : f32
    %742 = vector.broadcast %cst_110 : f32 to vector<3x32xf32>
    %743 = arith.addf %742, %741 : vector<3x32xf32>
    %744 = arith.divf %742, %743 : vector<3x32xf32>
    %745 = arith.mulf %736, %689 : vector<3x32xf32>
    %746 = arith.mulf %730, %738 : vector<3x32xf32>
    %747 = arith.addf %745, %746 : vector<3x32xf32>
    %748 = math.tanh %747 : vector<3x32xf32>
    %749 = arith.mulf %744, %748 : vector<3x32xf32>
    %750 = tpu.concatenate %724, %749 in 1 : vector<3x32xf32>, vector<3x32xf32> -> vector<3x64xf32>
    %cst_111 = arith.constant dense<0.000000e+00> : vector<3x256xf32>
    %751 = tpu.matmul %750, %515, %cst_111 {dimension_numbers = #tpu.dot_dimension_numbers<[1], [0], [0], [1], [0, 0, 1, 1], [], []>} : vector<3x64xf32>, vector<64x256xf32>, vector<3x256xf32> -> vector<3x256xf32>
    %752 = vector.extract_strided_slice %502 {offsets = [0, 0], sizes = [3, 128], strides = [1, 1]} : vector<3x256xf32> to vector<3x128xf32>
    %753 = vector.extract_strided_slice %751 {offsets = [0, 0], sizes = [3, 128], strides = [1, 1]} : vector<3x256xf32> to vector<3x128xf32>
    %754 = arith.addf %752, %753 : vector<3x128xf32>
    %755 = vector.extract_strided_slice %498 {offsets = [0, 128], sizes = [3, 128], strides = [1, 1]} : vector<3x256xf32> to vector<3x128xf32>
    %756 = vector.extract_strided_slice %751 {offsets = [0, 128], sizes = [3, 128], strides = [1, 1]} : vector<3x256xf32> to vector<3x128xf32>
    %757 = arith.addf %755, %756 : vector<3x128xf32>
    %758 = vector.extract_strided_slice %754 {offsets = [0, 0], sizes = [3, 32], strides = [1, 1]} : vector<3x128xf32> to vector<3x32xf32>
    %759 = arith.negf %758 : vector<3x32xf32>
    %760 = math.exp %759 : vector<3x32xf32>
    %cst_112 = arith.constant 1.000000e+00 : f32
    %761 = vector.broadcast %cst_112 : f32 to vector<3x32xf32>
    %762 = arith.addf %761, %760 : vector<3x32xf32>
    %763 = arith.divf %761, %762 : vector<3x32xf32>
    %764 = vector.extract_strided_slice %754 {offsets = [0, 32], sizes = [3, 32], strides = [1, 1]} : vector<3x128xf32> to vector<3x32xf32>
    %765 = arith.negf %764 : vector<3x32xf32>
    %766 = math.exp %765 : vector<3x32xf32>
    %cst_113 = arith.constant 1.000000e+00 : f32
    %767 = vector.broadcast %cst_113 : f32 to vector<3x32xf32>
    %768 = arith.addf %767, %766 : vector<3x32xf32>
    %769 = arith.divf %767, %768 : vector<3x32xf32>
    %770 = vector.extract_strided_slice %754 {offsets = [0, 64], sizes = [3, 32], strides = [1, 1]} : vector<3x128xf32> to vector<3x32xf32>
    %771 = math.tanh %770 : vector<3x32xf32>
    %772 = vector.extract_strided_slice %754 {offsets = [0, 96], sizes = [3, 32], strides = [1, 1]} : vector<3x128xf32> to vector<3x32xf32>
    %773 = arith.negf %772 : vector<3x32xf32>
    %774 = math.exp %773 : vector<3x32xf32>
    %cst_114 = arith.constant 1.000000e+00 : f32
    %775 = vector.broadcast %cst_114 : f32 to vector<3x32xf32>
    %776 = arith.addf %775, %774 : vector<3x32xf32>
    %777 = arith.divf %775, %776 : vector<3x32xf32>
    %778 = arith.mulf %769, %722 : vector<3x32xf32>
    %779 = arith.mulf %763, %771 : vector<3x32xf32>
    %780 = arith.addf %778, %779 : vector<3x32xf32>
    %781 = math.tanh %780 : vector<3x32xf32>
    %782 = arith.mulf %777, %781 : vector<3x32xf32>
    %783 = vector.extract_strided_slice %757 {offsets = [0, 0], sizes = [3, 32], strides = [1, 1]} : vector<3x128xf32> to vector<3x32xf32>
    %784 = arith.negf %783 : vector<3x32xf32>
    %785 = math.exp %784 : vector<3x32xf32>
    %cst_115 = arith.constant 1.000000e+00 : f32
    %786 = vector.broadcast %cst_115 : f32 to vector<3x32xf32>
    %787 = arith.addf %786, %785 : vector<3x32xf32>
    %788 = arith.divf %786, %787 : vector<3x32xf32>
    %789 = vector.extract_strided_slice %757 {offsets = [0, 32], sizes = [3, 32], strides = [1, 1]} : vector<3x128xf32> to vector<3x32xf32>
    %790 = arith.negf %789 : vector<3x32xf32>
    %791 = math.exp %790 : vector<3x32xf32>
    %cst_116 = arith.constant 1.000000e+00 : f32
    %792 = vector.broadcast %cst_116 : f32 to vector<3x32xf32>
    %793 = arith.addf %792, %791 : vector<3x32xf32>
    %794 = arith.divf %792, %793 : vector<3x32xf32>
    %795 = vector.extract_strided_slice %757 {offsets = [0, 64], sizes = [3, 32], strides = [1, 1]} : vector<3x128xf32> to vector<3x32xf32>
    %796 = math.tanh %795 : vector<3x32xf32>
    %797 = vector.extract_strided_slice %757 {offsets = [0, 96], sizes = [3, 32], strides = [1, 1]} : vector<3x128xf32> to vector<3x32xf32>
    %798 = arith.negf %797 : vector<3x32xf32>
    %799 = math.exp %798 : vector<3x32xf32>
    %cst_117 = arith.constant 1.000000e+00 : f32
    %800 = vector.broadcast %cst_117 : f32 to vector<3x32xf32>
    %801 = arith.addf %800, %799 : vector<3x32xf32>
    %802 = arith.divf %800, %801 : vector<3x32xf32>
    %803 = arith.mulf %794, %747 : vector<3x32xf32>
    %804 = arith.mulf %788, %796 : vector<3x32xf32>
    %805 = arith.addf %803, %804 : vector<3x32xf32>
    %806 = math.tanh %805 : vector<3x32xf32>
    %807 = arith.mulf %802, %806 : vector<3x32xf32>
    %808 = tpu.concatenate %782, %807 in 1 : vector<3x32xf32>, vector<3x32xf32> -> vector<3x64xf32>
    %cst_118 = arith.constant dense<0.000000e+00> : vector<3x256xf32>
    %809 = tpu.matmul %808, %515, %cst_118 {dimension_numbers = #tpu.dot_dimension_numbers<[1], [0], [0], [1], [0, 0, 1, 1], [], []>} : vector<3x64xf32>, vector<64x256xf32>, vector<3x256xf32> -> vector<3x256xf32>
    %810 = vector.extract_strided_slice %506 {offsets = [0, 0], sizes = [3, 128], strides = [1, 1]} : vector<3x256xf32> to vector<3x128xf32>
    %811 = vector.extract_strided_slice %809 {offsets = [0, 0], sizes = [3, 128], strides = [1, 1]} : vector<3x256xf32> to vector<3x128xf32>
    %812 = arith.addf %810, %811 : vector<3x128xf32>
    %813 = vector.extract_strided_slice %494 {offsets = [0, 128], sizes = [3, 128], strides = [1, 1]} : vector<3x256xf32> to vector<3x128xf32>
    %814 = vector.extract_strided_slice %809 {offsets = [0, 128], sizes = [3, 128], strides = [1, 1]} : vector<3x256xf32> to vector<3x128xf32>
    %815 = arith.addf %813, %814 : vector<3x128xf32>
    %816 = vector.extract_strided_slice %812 {offsets = [0, 0], sizes = [3, 32], strides = [1, 1]} : vector<3x128xf32> to vector<3x32xf32>
    %817 = arith.negf %816 : vector<3x32xf32>
    %818 = math.exp %817 : vector<3x32xf32>
    %cst_119 = arith.constant 1.000000e+00 : f32
    %819 = vector.broadcast %cst_119 : f32 to vector<3x32xf32>
    %820 = arith.addf %819, %818 : vector<3x32xf32>
    %821 = arith.divf %819, %820 : vector<3x32xf32>
    %822 = vector.extract_strided_slice %812 {offsets = [0, 32], sizes = [3, 32], strides = [1, 1]} : vector<3x128xf32> to vector<3x32xf32>
    %823 = arith.negf %822 : vector<3x32xf32>
    %824 = math.exp %823 : vector<3x32xf32>
    %cst_120 = arith.constant 1.000000e+00 : f32
    %825 = vector.broadcast %cst_120 : f32 to vector<3x32xf32>
    %826 = arith.addf %825, %824 : vector<3x32xf32>
    %827 = arith.divf %825, %826 : vector<3x32xf32>
    %828 = vector.extract_strided_slice %812 {offsets = [0, 64], sizes = [3, 32], strides = [1, 1]} : vector<3x128xf32> to vector<3x32xf32>
    %829 = math.tanh %828 : vector<3x32xf32>
    %830 = vector.extract_strided_slice %812 {offsets = [0, 96], sizes = [3, 32], strides = [1, 1]} : vector<3x128xf32> to vector<3x32xf32>
    %831 = arith.negf %830 : vector<3x32xf32>
    %832 = math.exp %831 : vector<3x32xf32>
    %cst_121 = arith.constant 1.000000e+00 : f32
    %833 = vector.broadcast %cst_121 : f32 to vector<3x32xf32>
    %834 = arith.addf %833, %832 : vector<3x32xf32>
    %835 = arith.divf %833, %834 : vector<3x32xf32>
    %836 = arith.mulf %827, %780 : vector<3x32xf32>
    %837 = arith.mulf %821, %829 : vector<3x32xf32>
    %838 = arith.addf %836, %837 : vector<3x32xf32>
    %839 = math.tanh %838 : vector<3x32xf32>
    %840 = arith.mulf %835, %839 : vector<3x32xf32>
    %841 = vector.extract_strided_slice %815 {offsets = [0, 0], sizes = [3, 32], strides = [1, 1]} : vector<3x128xf32> to vector<3x32xf32>
    %842 = arith.negf %841 : vector<3x32xf32>
    %843 = math.exp %842 : vector<3x32xf32>
    %cst_122 = arith.constant 1.000000e+00 : f32
    %844 = vector.broadcast %cst_122 : f32 to vector<3x32xf32>
    %845 = arith.addf %844, %843 : vector<3x32xf32>
    %846 = arith.divf %844, %845 : vector<3x32xf32>
    %847 = vector.extract_strided_slice %815 {offsets = [0, 32], sizes = [3, 32], strides = [1, 1]} : vector<3x128xf32> to vector<3x32xf32>
    %848 = arith.negf %847 : vector<3x32xf32>
    %849 = math.exp %848 : vector<3x32xf32>
    %cst_123 = arith.constant 1.000000e+00 : f32
    %850 = vector.broadcast %cst_123 : f32 to vector<3x32xf32>
    %851 = arith.addf %850, %849 : vector<3x32xf32>
    %852 = arith.divf %850, %851 : vector<3x32xf32>
    %853 = vector.extract_strided_slice %815 {offsets = [0, 64], sizes = [3, 32], strides = [1, 1]} : vector<3x128xf32> to vector<3x32xf32>
    %854 = math.tanh %853 : vector<3x32xf32>
    %855 = vector.extract_strided_slice %815 {offsets = [0, 96], sizes = [3, 32], strides = [1, 1]} : vector<3x128xf32> to vector<3x32xf32>
    %856 = arith.negf %855 : vector<3x32xf32>
    %857 = math.exp %856 : vector<3x32xf32>
    %cst_124 = arith.constant 1.000000e+00 : f32
    %858 = vector.broadcast %cst_124 : f32 to vector<3x32xf32>
    %859 = arith.addf %858, %857 : vector<3x32xf32>
    %860 = arith.divf %858, %859 : vector<3x32xf32>
    %861 = arith.mulf %852, %805 : vector<3x32xf32>
    %862 = arith.mulf %846, %854 : vector<3x32xf32>
    %863 = arith.addf %861, %862 : vector<3x32xf32>
    %864 = math.tanh %863 : vector<3x32xf32>
    %865 = arith.mulf %860, %864 : vector<3x32xf32>
    %866 = tpu.concatenate %840, %865 in 1 : vector<3x32xf32>, vector<3x32xf32> -> vector<3x64xf32>
    %cst_125 = arith.constant dense<0.000000e+00> : vector<3x256xf32>
    %867 = tpu.matmul %866, %515, %cst_125 {dimension_numbers = #tpu.dot_dimension_numbers<[1], [0], [0], [1], [0, 0, 1, 1], [], []>} : vector<3x64xf32>, vector<64x256xf32>, vector<3x256xf32> -> vector<3x256xf32>
    %868 = vector.extract_strided_slice %510 {offsets = [0, 0], sizes = [3, 128], strides = [1, 1]} : vector<3x256xf32> to vector<3x128xf32>
    %869 = vector.extract_strided_slice %867 {offsets = [0, 0], sizes = [3, 128], strides = [1, 1]} : vector<3x256xf32> to vector<3x128xf32>
    %870 = arith.addf %868, %869 : vector<3x128xf32>
    %871 = vector.extract_strided_slice %490 {offsets = [0, 128], sizes = [3, 128], strides = [1, 1]} : vector<3x256xf32> to vector<3x128xf32>
    %872 = vector.extract_strided_slice %867 {offsets = [0, 128], sizes = [3, 128], strides = [1, 1]} : vector<3x256xf32> to vector<3x128xf32>
    %873 = arith.addf %871, %872 : vector<3x128xf32>
    %874 = vector.extract_strided_slice %870 {offsets = [0, 0], sizes = [3, 32], strides = [1, 1]} : vector<3x128xf32> to vector<3x32xf32>
    %875 = arith.negf %874 : vector<3x32xf32>
    %876 = math.exp %875 : vector<3x32xf32>
    %cst_126 = arith.constant 1.000000e+00 : f32
    %877 = vector.broadcast %cst_126 : f32 to vector<3x32xf32>
    %878 = arith.addf %877, %876 : vector<3x32xf32>
    %879 = arith.divf %877, %878 : vector<3x32xf32>
    %880 = vector.extract_strided_slice %870 {offsets = [0, 32], sizes = [3, 32], strides = [1, 1]} : vector<3x128xf32> to vector<3x32xf32>
    %881 = arith.negf %880 : vector<3x32xf32>
    %882 = math.exp %881 : vector<3x32xf32>
    %cst_127 = arith.constant 1.000000e+00 : f32
    %883 = vector.broadcast %cst_127 : f32 to vector<3x32xf32>
    %884 = arith.addf %883, %882 : vector<3x32xf32>
    %885 = arith.divf %883, %884 : vector<3x32xf32>
    %886 = vector.extract_strided_slice %870 {offsets = [0, 64], sizes = [3, 32], strides = [1, 1]} : vector<3x128xf32> to vector<3x32xf32>
    %887 = math.tanh %886 : vector<3x32xf32>
    %888 = vector.extract_strided_slice %870 {offsets = [0, 96], sizes = [3, 32], strides = [1, 1]} : vector<3x128xf32> to vector<3x32xf32>
    %889 = arith.negf %888 : vector<3x32xf32>
    %890 = math.exp %889 : vector<3x32xf32>
    %cst_128 = arith.constant 1.000000e+00 : f32
    %891 = vector.broadcast %cst_128 : f32 to vector<3x32xf32>
    %892 = arith.addf %891, %890 : vector<3x32xf32>
    %893 = arith.divf %891, %892 : vector<3x32xf32>
    %894 = arith.mulf %885, %838 : vector<3x32xf32>
    %895 = arith.mulf %879, %887 : vector<3x32xf32>
    %896 = arith.addf %894, %895 : vector<3x32xf32>
    %897 = math.tanh %896 : vector<3x32xf32>
    %898 = arith.mulf %893, %897 : vector<3x32xf32>
    %899 = vector.extract_strided_slice %873 {offsets = [0, 0], sizes = [3, 32], strides = [1, 1]} : vector<3x128xf32> to vector<3x32xf32>
    %900 = arith.negf %899 : vector<3x32xf32>
    %901 = math.exp %900 : vector<3x32xf32>
    %cst_129 = arith.constant 1.000000e+00 : f32
    %902 = vector.broadcast %cst_129 : f32 to vector<3x32xf32>
    %903 = arith.addf %902, %901 : vector<3x32xf32>
    %904 = arith.divf %902, %903 : vector<3x32xf32>
    %905 = vector.extract_strided_slice %873 {offsets = [0, 32], sizes = [3, 32], strides = [1, 1]} : vector<3x128xf32> to vector<3x32xf32>
    %906 = arith.negf %905 : vector<3x32xf32>
    %907 = math.exp %906 : vector<3x32xf32>
    %cst_130 = arith.constant 1.000000e+00 : f32
    %908 = vector.broadcast %cst_130 : f32 to vector<3x32xf32>
    %909 = arith.addf %908, %907 : vector<3x32xf32>
    %910 = arith.divf %908, %909 : vector<3x32xf32>
    %911 = vector.extract_strided_slice %873 {offsets = [0, 64], sizes = [3, 32], strides = [1, 1]} : vector<3x128xf32> to vector<3x32xf32>
    %912 = math.tanh %911 : vector<3x32xf32>
    %913 = vector.extract_strided_slice %873 {offsets = [0, 96], sizes = [3, 32], strides = [1, 1]} : vector<3x128xf32> to vector<3x32xf32>
    %914 = arith.negf %913 : vector<3x32xf32>
    %915 = math.exp %914 : vector<3x32xf32>
    %cst_131 = arith.constant 1.000000e+00 : f32
    %916 = vector.broadcast %cst_131 : f32 to vector<3x32xf32>
    %917 = arith.addf %916, %915 : vector<3x32xf32>
    %918 = arith.divf %916, %917 : vector<3x32xf32>
    %919 = arith.mulf %910, %863 : vector<3x32xf32>
    %920 = arith.mulf %904, %912 : vector<3x32xf32>
    %921 = arith.addf %919, %920 : vector<3x32xf32>
    %922 = math.tanh %921 : vector<3x32xf32>
    %923 = arith.mulf %918, %922 : vector<3x32xf32>
    %924 = tpu.concatenate %898, %923 in 1 : vector<3x32xf32>, vector<3x32xf32> -> vector<3x64xf32>
    %cst_132 = arith.constant dense<0.000000e+00> : vector<3x256xf32>
    %925 = tpu.matmul %924, %515, %cst_132 {dimension_numbers = #tpu.dot_dimension_numbers<[1], [0], [0], [1], [0, 0, 1, 1], [], []>} : vector<3x64xf32>, vector<64x256xf32>, vector<3x256xf32> -> vector<3x256xf32>
    %926 = vector.extract_strided_slice %514 {offsets = [0, 0], sizes = [3, 128], strides = [1, 1]} : vector<3x256xf32> to vector<3x128xf32>
    %927 = vector.extract_strided_slice %925 {offsets = [0, 0], sizes = [3, 128], strides = [1, 1]} : vector<3x256xf32> to vector<3x128xf32>
    %928 = arith.addf %926, %927 : vector<3x128xf32>
    %929 = vector.extract_strided_slice %486 {offsets = [0, 128], sizes = [3, 128], strides = [1, 1]} : vector<3x256xf32> to vector<3x128xf32>
    %930 = vector.extract_strided_slice %925 {offsets = [0, 128], sizes = [3, 128], strides = [1, 1]} : vector<3x256xf32> to vector<3x128xf32>
    %931 = arith.addf %929, %930 : vector<3x128xf32>
    %932 = vector.extract_strided_slice %928 {offsets = [0, 0], sizes = [3, 32], strides = [1, 1]} : vector<3x128xf32> to vector<3x32xf32>
    %933 = arith.negf %932 : vector<3x32xf32>
    %934 = math.exp %933 : vector<3x32xf32>
    %cst_133 = arith.constant 1.000000e+00 : f32
    %935 = vector.broadcast %cst_133 : f32 to vector<3x32xf32>
    %936 = arith.addf %935, %934 : vector<3x32xf32>
    %937 = arith.divf %935, %936 : vector<3x32xf32>
    %938 = vector.extract_strided_slice %928 {offsets = [0, 32], sizes = [3, 32], strides = [1, 1]} : vector<3x128xf32> to vector<3x32xf32>
    %939 = arith.negf %938 : vector<3x32xf32>
    %940 = math.exp %939 : vector<3x32xf32>
    %cst_134 = arith.constant 1.000000e+00 : f32
    %941 = vector.broadcast %cst_134 : f32 to vector<3x32xf32>
    %942 = arith.addf %941, %940 : vector<3x32xf32>
    %943 = arith.divf %941, %942 : vector<3x32xf32>
    %944 = vector.extract_strided_slice %928 {offsets = [0, 64], sizes = [3, 32], strides = [1, 1]} : vector<3x128xf32> to vector<3x32xf32>
    %945 = math.tanh %944 : vector<3x32xf32>
    %946 = vector.extract_strided_slice %928 {offsets = [0, 96], sizes = [3, 32], strides = [1, 1]} : vector<3x128xf32> to vector<3x32xf32>
    %947 = arith.negf %946 : vector<3x32xf32>
    %948 = math.exp %947 : vector<3x32xf32>
    %cst_135 = arith.constant 1.000000e+00 : f32
    %949 = vector.broadcast %cst_135 : f32 to vector<3x32xf32>
    %950 = arith.addf %949, %948 : vector<3x32xf32>
    %951 = arith.divf %949, %950 : vector<3x32xf32>
    %952 = arith.mulf %943, %896 : vector<3x32xf32>
    %953 = arith.mulf %937, %945 : vector<3x32xf32>
    %954 = arith.addf %952, %953 : vector<3x32xf32>
    %955 = math.tanh %954 : vector<3x32xf32>
    %956 = arith.mulf %951, %955 : vector<3x32xf32>
    %957 = vector.extract_strided_slice %931 {offsets = [0, 0], sizes = [3, 32], strides = [1, 1]} : vector<3x128xf32> to vector<3x32xf32>
    %958 = arith.negf %957 : vector<3x32xf32>
    %959 = math.exp %958 : vector<3x32xf32>
    %cst_136 = arith.constant 1.000000e+00 : f32
    %960 = vector.broadcast %cst_136 : f32 to vector<3x32xf32>
    %961 = arith.addf %960, %959 : vector<3x32xf32>
    %962 = arith.divf %960, %961 : vector<3x32xf32>
    %963 = vector.extract_strided_slice %931 {offsets = [0, 32], sizes = [3, 32], strides = [1, 1]} : vector<3x128xf32> to vector<3x32xf32>
    %964 = arith.negf %963 : vector<3x32xf32>
    %965 = math.exp %964 : vector<3x32xf32>
    %cst_137 = arith.constant 1.000000e+00 : f32
    %966 = vector.broadcast %cst_137 : f32 to vector<3x32xf32>
    %967 = arith.addf %966, %965 : vector<3x32xf32>
    %968 = arith.divf %966, %967 : vector<3x32xf32>
    %969 = vector.extract_strided_slice %931 {offsets = [0, 64], sizes = [3, 32], strides = [1, 1]} : vector<3x128xf32> to vector<3x32xf32>
    %970 = math.tanh %969 : vector<3x32xf32>
    %971 = vector.extract_strided_slice %931 {offsets = [0, 96], sizes = [3, 32], strides = [1, 1]} : vector<3x128xf32> to vector<3x32xf32>
    %972 = arith.negf %971 : vector<3x32xf32>
    %973 = math.exp %972 : vector<3x32xf32>
    %cst_138 = arith.constant 1.000000e+00 : f32
    %974 = vector.broadcast %cst_138 : f32 to vector<3x32xf32>
    %975 = arith.addf %974, %973 : vector<3x32xf32>
    %976 = arith.divf %974, %975 : vector<3x32xf32>
    %977 = arith.mulf %968, %921 : vector<3x32xf32>
    %978 = arith.mulf %962, %970 : vector<3x32xf32>
    %979 = arith.addf %977, %978 : vector<3x32xf32>
    %980 = math.tanh %979 : vector<3x32xf32>
    %981 = arith.mulf %976, %980 : vector<3x32xf32>
    %c0_139 = arith.constant 0 : index
    %c0_140 = arith.constant 0 : index
    %982 = vector.load %arg7[%c0_139, %c0_140] : memref<64x5xf32, #tpu.memory_space<vmem>>, vector<64x5xf32>
    %c0_141 = arith.constant 0 : index
    %c0_142 = arith.constant 0 : index
    %983 = vector.load %arg8[%c0_141, %c0_142] : memref<1x5xf32, #tpu.memory_space<vmem>>, vector<1x5xf32>
    %984 = vector.extract_strided_slice %550 {offsets = [2, 0], sizes = [1, 32], strides = [1, 1]} : vector<3x32xf32> to vector<1x32xf32>
    %985 = vector.extract_strided_slice %981 {offsets = [2, 0], sizes = [1, 32], strides = [1, 1]} : vector<3x32xf32> to vector<1x32xf32>
    %986 = tpu.concatenate %984, %985 in 1 : vector<1x32xf32>, vector<1x32xf32> -> vector<1x64xf32>
    %cst_143 = arith.constant dense<0.000000e+00> : vector<1x5xf32>
    %987 = tpu.matmul %986, %982, %cst_143 {dimension_numbers = #tpu.dot_dimension_numbers<[1], [0], [0], [1], [0, 0, 1, 1], [], []>} : vector<1x64xf32>, vector<64x5xf32>, vector<1x5xf32> -> vector<1x5xf32>
    %988 = arith.addf %987, %983 : vector<1x5xf32>
    %c0_144 = arith.constant 0 : index
    %c0_145 = arith.constant 0 : index
    %989 = vector.load %arg9[%c0_144, %c0_145] : memref<8x5xf32, #tpu.memory_space<vmem>>, vector<1x5xf32>
    tpu.vector_store %arg9[%c0_144, %c0_145], %988 {strides = array<i32>} : memref<8x5xf32, #tpu.memory_space<vmem>>, vector<1x5xf32>,
    %990 = vector.extract_strided_slice %608 {offsets = [2, 0], sizes = [1, 32], strides = [1, 1]} : vector<3x32xf32> to vector<1x32xf32>
    %991 = vector.extract_strided_slice %923 {offsets = [2, 0], sizes = [1, 32], strides = [1, 1]} : vector<3x32xf32> to vector<1x32xf32>
    %992 = tpu.concatenate %990, %991 in 1 : vector<1x32xf32>, vector<1x32xf32> -> vector<1x64xf32>
    %cst_146 = arith.constant dense<0.000000e+00> : vector<1x5xf32>
    %993 = tpu.matmul %992, %982, %cst_146 {dimension_numbers = #tpu.dot_dimension_numbers<[1], [0], [0], [1], [0, 0, 1, 1], [], []>} : vector<1x64xf32>, vector<64x5xf32>, vector<1x5xf32> -> vector<1x5xf32>
    %994 = arith.addf %993, %983 : vector<1x5xf32>
    %c1 = arith.constant 1 : index
    %c0_147 = arith.constant 0 : index
    %995 = vector.load %arg9[%c1, %c0_147] : memref<8x5xf32, #tpu.memory_space<vmem>>, vector<1x5xf32>
    tpu.vector_store %arg9[%c1, %c0_147], %994 {strides = array<i32>} : memref<8x5xf32, #tpu.memory_space<vmem>>, vector<1x5xf32>,
    %996 = vector.extract_strided_slice %666 {offsets = [2, 0], sizes = [1, 32], strides = [1, 1]} : vector<3x32xf32> to vector<1x32xf32>
    %997 = vector.extract_strided_slice %865 {offsets = [2, 0], sizes = [1, 32], strides = [1, 1]} : vector<3x32xf32> to vector<1x32xf32>
    %998 = tpu.concatenate %996, %997 in 1 : vector<1x32xf32>, vector<1x32xf32> -> vector<1x64xf32>
    %cst_148 = arith.constant dense<0.000000e+00> : vector<1x5xf32>
    %999 = tpu.matmul %998, %982, %cst_148 {dimension_numbers = #tpu.dot_dimension_numbers<[1], [0], [0], [1], [0, 0, 1, 1], [], []>} : vector<1x64xf32>, vector<64x5xf32>, vector<1x5xf32> -> vector<1x5xf32>
    %1000 = arith.addf %999, %983 : vector<1x5xf32>
    %c2 = arith.constant 2 : index
    %c0_149 = arith.constant 0 : index
    %1001 = vector.load %arg9[%c2, %c0_149] : memref<8x5xf32, #tpu.memory_space<vmem>>, vector<1x5xf32>
    tpu.vector_store %arg9[%c2, %c0_149], %1000 {strides = array<i32>} : memref<8x5xf32, #tpu.memory_space<vmem>>, vector<1x5xf32>,
    %1002 = vector.extract_strided_slice %724 {offsets = [2, 0], sizes = [1, 32], strides = [1, 1]} : vector<3x32xf32> to vector<1x32xf32>
    %1003 = vector.extract_strided_slice %807 {offsets = [2, 0], sizes = [1, 32], strides = [1, 1]} : vector<3x32xf32> to vector<1x32xf32>
    %1004 = tpu.concatenate %1002, %1003 in 1 : vector<1x32xf32>, vector<1x32xf32> -> vector<1x64xf32>
    %cst_150 = arith.constant dense<0.000000e+00> : vector<1x5xf32>
    %1005 = tpu.matmul %1004, %982, %cst_150 {dimension_numbers = #tpu.dot_dimension_numbers<[1], [0], [0], [1], [0, 0, 1, 1], [], []>} : vector<1x64xf32>, vector<64x5xf32>, vector<1x5xf32> -> vector<1x5xf32>
    %1006 = arith.addf %1005, %983 : vector<1x5xf32>
    %c3 = arith.constant 3 : index
    %c0_151 = arith.constant 0 : index
    %1007 = vector.load %arg9[%c3, %c0_151] : memref<8x5xf32, #tpu.memory_space<vmem>>, vector<1x5xf32>
    tpu.vector_store %arg9[%c3, %c0_151], %1006 {strides = array<i32>} : memref<8x5xf32, #tpu.memory_space<vmem>>, vector<1x5xf32>,
    %1008 = vector.extract_strided_slice %782 {offsets = [2, 0], sizes = [1, 32], strides = [1, 1]} : vector<3x32xf32> to vector<1x32xf32>
    %1009 = vector.extract_strided_slice %749 {offsets = [2, 0], sizes = [1, 32], strides = [1, 1]} : vector<3x32xf32> to vector<1x32xf32>
    %1010 = tpu.concatenate %1008, %1009 in 1 : vector<1x32xf32>, vector<1x32xf32> -> vector<1x64xf32>
    %cst_152 = arith.constant dense<0.000000e+00> : vector<1x5xf32>
    %1011 = tpu.matmul %1010, %982, %cst_152 {dimension_numbers = #tpu.dot_dimension_numbers<[1], [0], [0], [1], [0, 0, 1, 1], [], []>} : vector<1x64xf32>, vector<64x5xf32>, vector<1x5xf32> -> vector<1x5xf32>
    %1012 = arith.addf %1011, %983 : vector<1x5xf32>
    %c4 = arith.constant 4 : index
    %c0_153 = arith.constant 0 : index
    %1013 = vector.load %arg9[%c4, %c0_153] : memref<8x5xf32, #tpu.memory_space<vmem>>, vector<1x5xf32>
    tpu.vector_store %arg9[%c4, %c0_153], %1012 {strides = array<i32>} : memref<8x5xf32, #tpu.memory_space<vmem>>, vector<1x5xf32>,
    %1014 = vector.extract_strided_slice %840 {offsets = [2, 0], sizes = [1, 32], strides = [1, 1]} : vector<3x32xf32> to vector<1x32xf32>
    %1015 = vector.extract_strided_slice %691 {offsets = [2, 0], sizes = [1, 32], strides = [1, 1]} : vector<3x32xf32> to vector<1x32xf32>
    %1016 = tpu.concatenate %1014, %1015 in 1 : vector<1x32xf32>, vector<1x32xf32> -> vector<1x64xf32>
    %cst_154 = arith.constant dense<0.000000e+00> : vector<1x5xf32>
    %1017 = tpu.matmul %1016, %982, %cst_154 {dimension_numbers = #tpu.dot_dimension_numbers<[1], [0], [0], [1], [0, 0, 1, 1], [], []>} : vector<1x64xf32>, vector<64x5xf32>, vector<1x5xf32> -> vector<1x5xf32>
    %1018 = arith.addf %1017, %983 : vector<1x5xf32>
    %c5 = arith.constant 5 : index
    %c0_155 = arith.constant 0 : index
    %1019 = vector.load %arg9[%c5, %c0_155] : memref<8x5xf32, #tpu.memory_space<vmem>>, vector<1x5xf32>
    tpu.vector_store %arg9[%c5, %c0_155], %1018 {strides = array<i32>} : memref<8x5xf32, #tpu.memory_space<vmem>>, vector<1x5xf32>,
    %1020 = vector.extract_strided_slice %898 {offsets = [2, 0], sizes = [1, 32], strides = [1, 1]} : vector<3x32xf32> to vector<1x32xf32>
    %1021 = vector.extract_strided_slice %633 {offsets = [2, 0], sizes = [1, 32], strides = [1, 1]} : vector<3x32xf32> to vector<1x32xf32>
    %1022 = tpu.concatenate %1020, %1021 in 1 : vector<1x32xf32>, vector<1x32xf32> -> vector<1x64xf32>
    %cst_156 = arith.constant dense<0.000000e+00> : vector<1x5xf32>
    %1023 = tpu.matmul %1022, %982, %cst_156 {dimension_numbers = #tpu.dot_dimension_numbers<[1], [0], [0], [1], [0, 0, 1, 1], [], []>} : vector<1x64xf32>, vector<64x5xf32>, vector<1x5xf32> -> vector<1x5xf32>
    %1024 = arith.addf %1023, %983 : vector<1x5xf32>
    %c6 = arith.constant 6 : index
    %c0_157 = arith.constant 0 : index
    %1025 = vector.load %arg9[%c6, %c0_157] : memref<8x5xf32, #tpu.memory_space<vmem>>, vector<1x5xf32>
    tpu.vector_store %arg9[%c6, %c0_157], %1024 {strides = array<i32>} : memref<8x5xf32, #tpu.memory_space<vmem>>, vector<1x5xf32>,
    %1026 = vector.extract_strided_slice %956 {offsets = [2, 0], sizes = [1, 32], strides = [1, 1]} : vector<3x32xf32> to vector<1x32xf32>
    %1027 = vector.extract_strided_slice %575 {offsets = [2, 0], sizes = [1, 32], strides = [1, 1]} : vector<3x32xf32> to vector<1x32xf32>
    %1028 = tpu.concatenate %1026, %1027 in 1 : vector<1x32xf32>, vector<1x32xf32> -> vector<1x64xf32>
    %cst_158 = arith.constant dense<0.000000e+00> : vector<1x5xf32>
    %1029 = tpu.matmul %1028, %982, %cst_158 {dimension_numbers = #tpu.dot_dimension_numbers<[1], [0], [0], [1], [0, 0, 1, 1], [], []>} : vector<1x64xf32>, vector<64x5xf32>, vector<1x5xf32> -> vector<1x5xf32>
    %1030 = arith.addf %1029, %983 : vector<1x5xf32>
    %c7 = arith.constant 7 : index
    %c0_159 = arith.constant 0 : index
    %1031 = vector.load %arg9[%c7, %c0_159] : memref<8x5xf32, #tpu.memory_space<vmem>>, vector<1x5xf32>
    tpu.vector_store %arg9[%c7, %c0_159], %1030 {strides = array<i32>} : memref<8x5xf32, #tpu.memory_space<vmem>>, vector<1x5xf32>,
    return
  }
}

</mosaic_0001>

<bundles_post_ra>
// kernel: tpu_custom_call.1
= control target key start
LH: loop header
LB: loop body
LE: loop exit
PB: predicated region body
PF: predicated region fallthrough
CT: control target
= control target key end

     0   :  { %14 = vsyncpa [#allocation3], 0  ;;  %s6126_s0 = inlined_call_operand.vmem [shape: f32[24,4], index: 0, kind: input, shape index: {}]   ;;  %s6127_s1 = inlined_call_operand.vmem [shape: f32[4,256], index: 1, kind: input, shape index: {}]   ;;  %s6128_s2 = inlined_call_operand.hbm [shape: f32[64,256], index: 2, kind: input, shape index: {}]   ;;  %s6129_s3 = inlined_call_operand.vmem [shape: f32[1,256], index: 3, kind: input, shape index: {}]   ;;  %s6130_s4 = inlined_call_operand.hbm [shape: f32[64,256], index: 4, kind: input, shape index: {}]   ;;  %s6131_s5 = inlined_call_operand.hbm [shape: f32[64,256], index: 5, kind: input, shape index: {}]   ;;  %s6132_s6 = inlined_call_operand.vmem [shape: f32[1,256], index: 6, kind: input, shape index: {}]   ;;  %s6133_s7 = inlined_call_operand.vmem [shape: f32[64,5], index: 7, kind: input, shape index: {}]   ;;  %s6134_s8 = inlined_call_operand.vmem [shape: f32[1,5], index: 8, kind: input, shape index: {}]   ;;  %s6135_s9 = inlined_call_operand.hbm [shape: f32[8,5], index: 9, kind: output, shape index: {}]  }
   0x1   :  { %15 = vsyncpa [#allocation6], 0 }
   0x2   :  { %16 = vsyncpa [#allocation4], 0  ;;  %s5062_s30 = smov [#allocation5]   ;;  %s5063_s11 = smov [#allocation2]  }
   0x3   :  { %s40_s10 = sshll.u32 %s5062_s30, 4  ;;  %s26_s12 = sshll.u32 %s5063_s11, 4  ;;  %s41_s10 = int_to_ptr.vmem [resolvable:$true] %s40_s10  ;;  %s5123_s12 = int_to_ptr.vmem [resolvable:$true] %s26_s12 }
   0x4   :  { %s4968_s15 = scalar_lea.hbm %s6130_s4, 2048 }
   0x5   :  { %p4969_p0 = scmp.ne.s32.totalorder %s6130_s4, %s4968_s15  ;;  %p4972_p1 = scmp.lt.u32.totalorder %s4968_s15, %s6130_s4 }
   0x7   :  { %p4974_p2 = pnand %p4972_p1, %p4969_p0 }
   0x9   :  { %4977 = shalt.err (!%p4974_p2)
}
   0xa   :  { %s4978_s20 = scalar_lea.vmem %s41_s10, 2048  ;;  %p4983_p4 = scmp.lt.s32.totalorder %s41_s10, %s41_s10 }
   0xb   :  { %p4979_p3 = scmp.ne.s32.totalorder %s41_s10, %s4978_s20  ;;  %p4984_p5 = scmp.lt.s32.totalorder %s4978_s20, %s4978_s20 }
   0xd   :  { %p4985_p6 = por %p4984_p5, %p4983_p4 }
   0xf   :  { %p4986_p7 = pnand %p4985_p6, %p4979_p3 }
  0x11   :  { %4989 = shalt.err (!%p4986_p7)
}
  0x12   :  { %s5064_s21 = smov 256   ;;  %s5065_s22 = smov 16  }
  0x13   :  { %46 = dma.hbm_to_vmem [thread:$0]  %s6130_s4, 2048, %s41_s10, [#allocation6], %s5064_s21, %s5064_s21, %s5065_s22  }
  0x14   :  { %s4990_s27 = scalar_lea.hbm %s6128_s2, 2048 }
  0x15   :  { %p4991_p8 = scmp.ne.s32.totalorder %s6128_s2, %s4990_s27  ;;  %p4994_p9 = scmp.lt.u32.totalorder %s4990_s27, %s6128_s2 }
  0x17   :  { %p4996_p10 = pnand %p4994_p9, %p4991_p8 }
  0x19   :  { %4999 = shalt.err (!%p4996_p10)
}
  0x1a   :  { %s5000_s13 = scalar_lea.vmem %s5123_s12, 2048  ;;  %p5005_p12 = scmp.lt.s32.totalorder %s5123_s12, %s5123_s12 }
  0x1b   :  { %p5001_p11 = scmp.ne.s32.totalorder %s5123_s12, %s5000_s13  ;;  %p5006_p13 = scmp.lt.s32.totalorder %s5000_s13, %s5000_s13 }
  0x1d   :  { %p5007_p0 = por %p5006_p13, %p5005_p12 }
  0x1f   :  { %p5008_p1 = pnand %p5007_p0, %p5001_p11 }
  0x21   :  { %5011 = shalt.err (!%p5008_p1)
}
  0x22   :  { %32 = dma.hbm_to_vmem [thread:$0]  %s6128_s2, 2048, %s5123_s12, [#allocation3], %s5064_s21, %s5064_s21, %s5065_s22  }
  0x23   :  { %s5066_s14 = smov [#allocation7]   ;;  %s5012_s18 = scalar_lea.hbm %s6131_s5, 2048 }
  0x24   :  { %s52_s15 = sshll.u32 %s5066_s14, 4  ;;  %p5013_p2 = scmp.ne.s32.totalorder %s6131_s5, %s5012_s18  ;;  %s53_s15 = int_to_ptr.vmem [resolvable:$true] %s52_s15 }
  0x25   :  { %p5016_p3 = scmp.lt.u32.totalorder %s5012_s18, %s6131_s5 }
  0x27   :  { %p5018_p4 = pnand %p5016_p3, %p5013_p2 }
  0x29   :  { %5021 = shalt.err (!%p5018_p4)
}
  0x2a   :  { %s5022_s25 = scalar_lea.vmem %s53_s15, 2048  ;;  %p5027_p6 = scmp.lt.s32.totalorder %s53_s15, %s53_s15 }
  0x2b   :  { %p5023_p5 = scmp.ne.s32.totalorder %s53_s15, %s5022_s25  ;;  %p5028_p7 = scmp.lt.s32.totalorder %s5022_s25, %s5022_s25 }
  0x2d   :  { %p5029_p8 = por %p5028_p7, %p5027_p6 }
  0x2f   :  { %p5030_p9 = pnand %p5029_p8, %p5023_p5 }
  0x31   :  { %5033 = shalt.err (!%p5030_p9)
}
  0x32   :  { %58 = dma.hbm_to_vmem [thread:$0]  %s6131_s5, 2048, %s53_s15, [#allocation6], %s5064_s21, %s5064_s21, %s5065_s22  }
  0x33   :  { %5056 = dma.done.wait [#allocation3], 2048  }
  0x34   :  { %5057 = vsyncadd [#allocation3], 4294965248 }
  0x35   :  { %5058 = dma.done.wait [#allocation6], 4096  }
  0x36   :  { %5059 = vsyncadd [#allocation6], 4294963200  ;;  %v5067_v0 = vmov 0.0   ;;  %v191_v1 = vld [vmem:[#allocation2 + $0x8] sm:$0xff]  ;;  %v193_v2 = vld [vmem:[#allocation2 + $0x18] sm:$0xff]  ;;  %vm102_vm0 = vcmask 1043456   ;;  %v80_v30 = vlaneseq }
  0x37   :  { %171 = vmatprep.mubr.f32.mxu0 %v5067_v0  ;;  %274 = vmatprep.mubr.f32.mxu1 %v5067_v0  ;;  %v190_v3 = vld [vmem:[#allocation2] sm:$0xff]  ;;  %v5177_v4 = vpack.c.bf16 %v193_v2, %v191_v1  ;;  %v192_v5 = vld [vmem:[#allocation2 + $0x10] sm:$0xff]  ;;  %v195_v6 = vld [vmem:[#allocation2 + $0x28] sm:$0xff]  ;;  %vm92_vm1 = vcmask 31744   ;;  %s5069_s11 = smov 32   ;;  %vm343_vm2 = vcmask 261120  }
  0x38   :  { %v197_v7 = vld [vmem:[#allocation2 + $0x38] sm:$0xff]  ;;  %v5179_v8 = vpack.c.bf16 %v192_v5, %v190_v3  ;;  %v77_v10 = vld [vmem:[%s6127_s1] sm:$0xff]  ;;  %v196_v12 = vld [vmem:[#allocation2 + $0x30] sm:$0xff]  ;;  %v5241_v31 = vshrl.u32 %v80_v30, 7  ;;  %vm206_vm3 = vcmask 523264   ;;  %vm827_vm4 = vcmask 1044480  }
  0x39   :  { %v5181_v9 = vpack.c.bf16 %v197_v7, %v195_v6  ;;  %v194_v11 = vld [vmem:[#allocation2 + $0x20] sm:$0xff]  ;;  %4189 = vmatprep.subr.bf16.mxu1 %v5177_v4  ;;  %v91_v13 = vcombine.high %v77_v10, %v77_v10  ;;  %v199_v14 = vld [vmem:[#allocation2 + $0x48] sm:$0xff]  ;;  %v201_v15 = vld [vmem:[#allocation2 + $0x58] sm:$0xff]  ;;  %vm796_vm5 = vcmask 1042432   ;;  %vm688_vm6 = vcmask 1046528  }
  0x3a   :  { %4191 = vmatpush1.bf16.msra.mxu1 %v5179_v8  ;;  %v5188_v16 = vpack.c.bf16 %v196_v12, %v194_v11  ;;  %v74_v17 = vld [vmem:[%s6126_s0] sm:$0xff]  ;;  %v5195_v18 = vpack.c.bf16 %v201_v15, %v199_v14  ;;  %v200_v20 = vld [vmem:[#allocation2 + $0x50] sm:$0xff]  ;;  %v203_v21 = vld [vmem:[#allocation2 + $0x68] sm:$0xff]  ;;  %v86_v32 = vsub.s32 1, %v5241_v31  ;;  %v82_v35 = vsub.s32 0, %v5241_v31 }
  0x3b   :  { %4193 = vmatprep.subr.bf16.mxu1 %v5181_v9  ;;  %3893 = vmatprep.subr.msk.mxu0 %vm102_vm0, %v91_v13  ;;  %v198_v19 = vld [vmem:[#allocation2 + $0x40] sm:$0xff]  ;;  %v205_v22 = vld [vmem:[#allocation2 + $0x78] sm:$0xff]  ;;  %v75_v24 = vld [vmem:[%s6126_s0 + $0x8] sm:$0xff]  ;;  %vm702_vm7 = vcmask 1041408   ;;  %vm1203_vm8 = vcmask 1040384   ;;  %vm5071_vm9 = vmmov 0  }
  0x3c   :  { %3894 = vmatpush1.msk.msra.mxu0 %vm102_vm0, %v77_v10  ;;  %v5201_v23 = vpack.c.bf16 %v200_v20, %v198_v19  ;;  %v5208_v25 = vpack.c.bf16 %v205_v22, %v203_v21  ;;  %v202_v26 = vld [vmem:[#allocation2 + $0x60] sm:$0xff]  ;;  %v204_v27 = vld [vmem:[#allocation2 + $0x70] sm:$0xff]  ;;  %vm3339_vm10 = vcmask 32768  }
  0x3d   :  { %3895 = vmatmul.mubr.msk.f32.vlgmr.msra.gmra.mrb[0].mxu0 %vm92_vm1, %v74_v17  ;;  %4205 = vmatprep.subr.bf16.mxu0 %v5177_v4  ;;  %v5214_v28 = vpack.c.bf16 %v204_v27, %v202_v26  ;;  %v76_v29 = vld [vmem:[%s6126_s0 + $0x10] sm:$0xff]  ;;  %v78_v33 = vld [vmem:[%s6129_s3] sm:$0x3]  ;;  %s5068_s3 = smov 64  }
  0x3e   :  { %4195 = vmatpush1.bf16.msra.mxu1 %v5188_v16  ;;  %177 = vmatprep.mubr.f32.mxu0 %v5067_v0  ;;  %v87_v34 = vrot.slane %v78_v33, %v86_v32  ;;  %v83_v39 = vrot.slane %v78_v33, %v82_v35 }
  0x3f   :  { %4197 = vmatprep.subr.bf16.mxu1 %v5195_v18  ;;  %4207 = vmatpush1.bf16.msra.mxu0 %v5179_v8 }
  0x40   :  { %4209 = vmatprep.subr.bf16.mxu0 %v5181_v9 }
  0x41   :  { %3896 = vmatmul.mubr.msk.f32.gmra.mrb[2].mxu0 %vm92_vm1, %v75_v24 }
  0x42   :  { %4199 = vmatpush1.bf16.msra.mxu1 %v5201_v23  ;;  %183 = vmatprep.mubr.f32.mxu0 %v5067_v0 }
  0x43   :  { %4201 = vmatprep.subr.bf16.mxu1 %v5208_v25  ;;  %4211 = vmatpush1.bf16.msra.mxu0 %v5188_v16 }
  0x44   :  { %4213 = vmatprep.subr.bf16.mxu0 %v5195_v18 }
  0x45   :  { %3897 = vmatmul.mubr.msk.f32.gmra.mrb[4].mxu0 %vm92_vm1, %v76_v29 }
  0x46   :  { %4203 = vmatpush1.bf16.msra.mxu1 %v5214_v28  ;;  %412 = vmatprep.mubr.f32.mxu0 %v5067_v0 }
  0x47   :  { %4215 = vmatpush1.bf16.msra.mxu0 %v5201_v23  ;;  %4221 = vmatprep.subr.bf16.mxu1 %v5177_v4 }
  0x48   :  { %4217 = vmatprep.subr.bf16.mxu0 %v5208_v25 }
  0x49   :  { %275 = vmatmul.mubr.f32.vlgmr.msra.gmra.mrb[0].mxu1 %v5067_v0 }
  0x4a   :  { %4223 = vmatpush1.bf16.msra.mxu1 %v5179_v8  ;;  %559 = vmatprep.mubr.f32.mxu1 %v5067_v0 }
  0x4b   :  { %4219 = vmatpush1.bf16.msra.mxu0 %v5214_v28  ;;  %4225 = vmatprep.subr.bf16.mxu1 %v5181_v9 }
  0x4c   :  { %4237 = vmatprep.subr.bf16.mxu0 %v5177_v4 }
  0x4e   :  { %4227 = vmatpush1.bf16.msra.mxu1 %v5188_v16 }
  0x4f   :  { %4229 = vmatprep.subr.bf16.mxu1 %v5195_v18 }
  0x52   :  { %4231 = vmatpush1.bf16.msra.mxu1 %v5201_v23 }
  0x53   :  { %4233 = vmatprep.subr.bf16.mxu1 %v5208_v25 }
  0x56   :  { %4235 = vmatpush1.bf16.msra.mxu1 %v5214_v28 }
  0x57   :  { %4253 = vmatprep.subr.bf16.mxu1 %v5177_v4 }
 0x110   :  { %v173_v36 = vpop.f32.mrb[0].mxu0 }
 0x111   :  { %v175_v37 = vpop.f32.mrb[1].mxu0  ;;  %v5262_v51 = vadd.f32 %v173_v36, %v83_v39 }
 0x112   :  { %v5250_v38 = vadd.f32 %v175_v37, %v87_v34 }
 0x114   :  { %v179_v40 = vpop.f32.mrb[2].mxu0 }
 0x115   :  { %v5254_v41 = vadd.f32 %v179_v40, %v83_v39  ;;  %v181_v42 = vpop.f32.mrb[3].mxu0 }
 0x116   :  { %v5256_v43 = vadd.f32 %v181_v42, %v87_v34 }
 0x118   :  { %v185_v44 = vpop.f32.mrb[4].mxu0 }
 0x119   :  { %v5258_v45 = vadd.f32 %v185_v44, %v83_v39  ;;  %v187_v46 = vpop.f32.mrb[5].mxu0 }
 0x11a   :  { %v5260_v47 = vadd.f32 %v187_v46, %v87_v34 }
 0x11c   :  { %v276_v48 = vpop.f32.mrb[0].mxu1 }
 0x11d   :  { %v278_v49 = vpop.f32.mrb[1].mxu1  ;;  %v281_v53 = vadd.f32 %v276_v48, %v5262_v51 }
 0x11e   :  { %v283_v50 = vrot.slane %v278_v49, 3 }
 0x11f   :  { %v3898_v57 = vmul.f32 -1.442695, %v281_v53 }
 0x120   :  { %v285_v52 = vadd.f32 %v283_v50, %v5260_v47 }
 0x122   :  { %4680 = vtanh.f32 %v285_v52  ;;  %v3899_v56 = vmul.f32 -1.442695, %v285_v52 }
 0x123   :  { %4682 = vtanh.f32 %v281_v53 }
 0x124   :  { %4684 = vpow2.f32 %v3899_v56 }
 0x125   :  { %4686 = vpow2.f32 %v3898_v57 }
 0x12c   :  { %v4681_v54 = vpop.eup %4680 }
 0x12d   :  { %319 = vrot.lane.b32.xlu0 %v4681_v54, %s5068_s3  ;;  %v4683_v55 = vpop.eup %4682 }
 0x12e   :  { %v4685_v58 = vpop.eup %4684 }
 0x12f   :  { %v313_v59 = vadd.f32 1.0, %v4685_v58  ;;  %v4687_v60 = vpop.eup %4686 }
 0x130   :  { %v289_v61 = vadd.f32 1.0, %v4687_v60 }
 0x131   :  { %295 = vrot.lane.b32.xlu0 %v4683_v55, %s5068_s3  ;;  %4688 = vrcp.f32 %v313_v59 }
 0x132   :  { %4690 = vrcp.f32 %v289_v61 }
 0x13b   :  { %v4689_v62 = vpop.eup %4688 }
 0x13c   :  { %v4691_v2 = vpop.eup %4690  ;;  %v317_v6 = vmul.f32 0.0, %v4689_v62 }
 0x13d   :  { %v293_v11 = vmul.f32 0.0, %v4691_v2 }
 0x19f   :  { %v320_v63 = vpop.permute.xlu0 %319 }
 0x1a0   :  { %v322_v1 = vmul.f32 %v4689_v62, %v320_v63 }
 0x1a2   :  { %324 = vrot.lane.b32.xlu1 %v322_v1, %s5069_s11 }
 0x1a3   :  { %v296_v3 = vpop.permute.xlu0 %295 }
 0x1a4   :  { %v298_v5 = vmul.f32 %v4691_v2, %v296_v3 }
 0x1a6   :  { %300 = vrot.lane.b32.xlu1 %v298_v5, %s5069_s11 }
 0x214   :  { %v325_v7 = vpop.permute.xlu1 %324 }
 0x215   :  { %v5270_v10 = vadd.f32 %v325_v7, %v317_v6 }
 0x217   :  { %4692 = vtanh.f32 %v5270_v10  ;;  %v462_v59 = vrot.slane %v5270_v10, 3 }
 0x218   :  { %v301_v12 = vpop.permute.xlu1 %300 }
 0x219   :  { %v303_v13 = vadd.f32 %v301_v12, %v293_v11 }
 0x21b   :  { %4694 = vtanh.f32 %v303_v13  ;;  %v435_v58 = vrot.slane %v303_v13, 5 }
 0x221   :  { %v4693_v14 = vpop.eup %4692 }
 0x222   :  { %330 = vrot.lane.b32.xlu0 %v4693_v14, %s5068_s3 }
 0x225   :  { %v4695_v15 = vpop.eup %4694 }
 0x226   :  { %306 = vrot.lane.b32.xlu1 %v4695_v15, %s5068_s3 }
 0x294   :  { %v331_v17 = vpop.permute.xlu0 %330 }
 0x295   :  { %v5275_v19 = vmul.f32 %v4689_v62, %v331_v17 }
 0x297   :  { %v339_v20 = vrot.slane %v5275_v19, 5 }
 0x298   :  { %v307_v21 = vpop.permute.xlu1 %306 }
 0x299   :  { %v309_v22 = vmul.f32 %v4691_v2, %v307_v21  ;;  %340 = vrot.lane.b32.xlu1 %v339_v20, %s5068_s3 }
 0x29b   :  { %335 = vrot.lane.b32.xlu0 %v309_v22, %s5069_s11 }
 0x30b   :  { %v341_v24 = vpop.permute.xlu1 %340 }
 0x30d   :  { %v5280_v26 = vpop.permute.xlu0 %335 }
 0x30e   :  { %v344_v27 = vsel %vm343_vm2, %v5280_v26, %v341_v24 }
 0x30f   :  { %3900 = vmatmul.mubr.msk.f32.vlgmr.msra.gmra.mrb[6].mxu0 %vm206_vm3, %v344_v27 }
 0x310   :  { %4239 = vmatpush1.bf16.msra.mxu0 %v5179_v8  ;;  %772 = vmatprep.mubr.f32.mxu0 %v5067_v0 }
 0x311   :  { %4241 = vmatprep.subr.bf16.mxu0 %v5181_v9 }
 0x314   :  { %4243 = vmatpush1.bf16.msra.mxu0 %v5188_v16 }
 0x315   :  { %4245 = vmatprep.subr.bf16.mxu0 %v5195_v18 }
 0x318   :  { %4247 = vmatpush1.bf16.msra.mxu0 %v5201_v23 }
 0x319   :  { %4249 = vmatprep.subr.bf16.mxu0 %v5208_v25 }
 0x31c   :  { %4251 = vmatpush1.bf16.msra.mxu0 %v5214_v28 }
 0x31d   :  { %4269 = vmatprep.subr.bf16.mxu0 %v5177_v4 }
 0x3e2   :  { %v414_v29 = vpop.f32.mrb[6].mxu0 }
 0x3e3   :  { %v420_v30 = vrot.slane %v414_v29, 5  ;;  %v416_v33 = vpop.f32.mrb[7].mxu0 }
 0x3e4   :  { %v424_v34 = vrot.slane %v416_v33, 6 }
 0x3e5   :  { %v422_v36 = vadd.f32 %v420_v30, %v5262_v51 }
 0x3e6   :  { %v426_v37 = vadd.f32 %v424_v34, %v5260_v47 }
 0x3e7   :  { %4696 = vtanh.f32 %v422_v36  ;;  %v3901_v42 = vmul.f32 -1.442695, %v422_v36 }
 0x3e8   :  { %4698 = vtanh.f32 %v426_v37  ;;  %v3902_v44 = vmul.f32 -1.442695, %v426_v37 }
 0x3e9   :  { %4700 = vpow2.f32 %v3901_v42 }
 0x3ea   :  { %4702 = vpow2.f32 %v3902_v44 }
 0x3f1   :  { %v4697_v39 = vpop.eup %4696 }
 0x3f2   :  { %v4699_v40 = vpop.eup %4698  ;;  %439 = vrot.lane.b32.xlu1 %v4697_v39, %s5068_s3 }
 0x3f3   :  { %466 = vrot.lane.b32.xlu0 %v4699_v40, %s5068_s3  ;;  %v4701_v46 = vpop.eup %4700 }
 0x3f4   :  { %v4703_v48 = vpop.eup %4702  ;;  %v430_v49 = vadd.f32 1.0, %v4701_v46 }
 0x3f5   :  { %v457_v50 = vadd.f32 1.0, %v4703_v48 }
 0x3f6   :  { %4704 = vrcp.f32 %v430_v49 }
 0x3f7   :  { %4706 = vrcp.f32 %v457_v50 }
 0x400   :  { %v4705_v52 = vpop.eup %4704 }
 0x401   :  { %v4707_v54 = vpop.eup %4706  ;;  %v437_v60 = vmul.f32 %v4705_v52, %v435_v58 }
 0x402   :  { %v464_v62 = vmul.f32 %v4707_v54, %v462_v59 }
 0x464   :  { %v440_v53 = vpop.permute.xlu1 %439 }
 0x465   :  { %v442_v55 = vmul.f32 %v4705_v52, %v440_v53  ;;  %v467_v56 = vpop.permute.xlu0 %466 }
 0x466   :  { %v469_v57 = vmul.f32 %v4707_v54, %v467_v56 }
 0x467   :  { %444 = vrot.lane.b32.xlu1 %v442_v55, %s5069_s11 }
 0x468   :  { %471 = vrot.lane.b32.xlu0 %v469_v57, %s5069_s11 }
 0x4d9   :  { %v445_v61 = vpop.permute.xlu1 %444 }
 0x4da   :  { %v5301_v63 = vadd.f32 %v445_v61, %v437_v60  ;;  %v472_v1 = vpop.permute.xlu0 %471 }
 0x4db   :  { %v5303_v2 = vadd.f32 %v472_v1, %v464_v62 }
 0x4dc   :  { %4708 = vtanh.f32 %v5301_v63 }
 0x4dd   :  { %4710 = vtanh.f32 %v5303_v2 }
 0x4e6   :  { %v4709_v3 = vpop.eup %4708 }
 0x4e7   :  { %v4711_v5 = vpop.eup %4710  ;;  %450 = vrot.lane.b32.xlu1 %v4709_v3, %s5068_s3 }
 0x4e8   :  { %477 = vrot.lane.b32.xlu0 %v4711_v5, %s5068_s3 }
 0x559   :  { %v451_v6 = vpop.permute.xlu1 %450 }
 0x55a   :  { %v453_v7 = vmul.f32 %v4705_v52, %v451_v6  ;;  %v478_v10 = vpop.permute.xlu0 %477 }
 0x55b   :  { %v5309_v11 = vmul.f32 %v4707_v54, %v478_v10 }
 0x55c   :  { %482 = vrot.lane.b32.xlu0 %v453_v7, %s5069_s11  ;;  %v642_v7 = vrot.slane %v5303_v2, 3 }
 0x55d   :  { %v486_v12 = vrot.slane %v5309_v11, 7 }
 0x55f   :  { %487 = vrot.lane.b32.xlu1 %v486_v12, %s5068_s3 }
 0x5ce   :  { %v5314_v13 = vpop.permute.xlu0 %482 }
 0x5d1   :  { %v488_v14 = vpop.permute.xlu1 %487 }
 0x5d2   :  { %v490_v15 = vsel %vm343_vm2, %v5314_v13, %v488_v14 }
 0x5d3   :  { %v492_v17 = vrot.slane %v490_v15, 3  ;;  %v591_v15 = vrot.slane %v5301_v63, 5 }
 0x5d5   :  { %3903 = vmatmul.mubr.msk.f32.vlgmr.msra.gmra.mrb[2].mxu1 %vm206_vm3, %v492_v17 }
 0x5d6   :  { %4255 = vmatpush1.bf16.msra.mxu1 %v5179_v8  ;;  %927 = vmatprep.mubr.f32.mxu1 %v5067_v0 }
 0x5d7   :  { %4257 = vmatprep.subr.bf16.mxu1 %v5181_v9 }
 0x5da   :  { %4259 = vmatpush1.bf16.msra.mxu1 %v5188_v16 }
 0x5db   :  { %4261 = vmatprep.subr.bf16.mxu1 %v5195_v18 }
 0x5de   :  { %4263 = vmatpush1.bf16.msra.mxu1 %v5201_v23 }
 0x5df   :  { %4265 = vmatprep.subr.bf16.mxu1 %v5208_v25 }
 0x5e2   :  { %4267 = vmatpush1.bf16.msra.mxu1 %v5214_v28 }
 0x5e3   :  { %4285 = vmatprep.subr.bf16.mxu1 %v5177_v4 }
 0x6a8   :  { %v561_v20 = vpop.f32.mrb[2].mxu1 }
 0x6a9   :  { %v563_v21 = vpop.f32.mrb[3].mxu1  ;;  %v567_v24 = vrot.slane %v561_v20, 2 }
 0x6aa   :  { %v572_v22 = vrot.slane %v563_v21, 1 }
 0x6ab   :  { %v569_v30 = vadd.f32 %v567_v24, %v5262_v51  ;;  %v570_v33 = vadd.f32 %v567_v24, %v5254_v41 }
 0x6ac   :  { %v574_v27 = vadd.f32 %v572_v22, %v5256_v43  ;;  %v575_v29 = vadd.f32 %v572_v22, %v5260_v47 }
 0x6ad   :  { %v3904_v40 = vmul.f32 -1.442695, %v569_v30  ;;  %v3905_v42 = vmul.f32 -1.442695, %v570_v33 }
 0x6ae   :  { %4712 = vtanh.f32 %v574_v27  ;;  %v3906_v47 = vmul.f32 -1.442695, %v574_v27  ;;  %v3907_v51 = vmul.f32 -1.442695, %v575_v29 }
 0x6af   :  { %4714 = vtanh.f32 %v575_v29 }
 0x6b0   :  { %4716 = vtanh.f32 %v569_v30 }
 0x6b1   :  { %4718 = vtanh.f32 %v570_v33 }
 0x6b2   :  { %4720 = vpow2.f32 %v3906_v47 }
 0x6b3   :  { %4722 = vpow2.f32 %v3907_v51 }
 0x6b4   :  { %4724 = vpow2.f32 %v3904_v40 }
 0x6b5   :  { %4726 = vpow2.f32 %v3905_v42 }
 0x6b8   :  { %v4713_v34 = vpop.eup %4712 }
 0x6b9   :  { %v4715_v36 = vpop.eup %4714  ;;  %648 = vrot.lane.b32.xlu0 %v4713_v34, %s5068_s3 }
 0x6ba   :  { %650 = vrot.lane.b32.xlu1 %v4715_v36, %s5068_s3  ;;  %v4717_v37 = vpop.eup %4716 }
 0x6bb   :  { %v4719_v39 = vpop.eup %4718 }
 0x6bc   :  { %v4721_v44 = vpop.eup %4720 }
 0x6bd   :  { %597 = vrot.lane.b32.xlu0 %v4717_v37, %s5068_s3  ;;  %v4723_v46 = vpop.eup %4722  ;;  %v633_v48 = vadd.f32 1.0, %v4721_v44 }
 0x6be   :  { %599 = vrot.lane.b32.xlu1 %v4719_v39, %s5068_s3  ;;  %v4725_v49 = vpop.eup %4724  ;;  %v634_v50 = vadd.f32 1.0, %v4723_v46 }
 0x6bf   :  { %v4727_v52 = vpop.eup %4726  ;;  %v582_v53 = vadd.f32 1.0, %v4725_v49  ;;  %4728 = vrcp.f32 %v633_v48 }
 0x6c0   :  { %v583_v54 = vadd.f32 1.0, %v4727_v52  ;;  %4730 = vrcp.f32 %v634_v50 }
 0x6c1   :  { %4732 = vrcp.f32 %v582_v53 }
 0x6c2   :  { %4734 = vrcp.f32 %v583_v54 }
 0x6c9   :  { %v4729_v55 = vpop.eup %4728 }
 0x6ca   :  { %v4731_v57 = vpop.eup %4730  ;;  %v644_v10 = vmul.f32 %v4729_v55, %v642_v7 }
 0x6cb   :  { %v4733_v61 = vpop.eup %4732  ;;  %v645_v12 = vmul.f32 %v4731_v57, %v642_v7 }
 0x6cc   :  { %v4735_v1 = vpop.eup %4734  ;;  %v593_v24 = vmul.f32 %v4733_v61, %v591_v15 }
 0x6cd   :  { %v594_v29 = vmul.f32 %v4735_v1, %v591_v15 }
 0x72b   :  { %v649_v56 = vpop.permute.xlu0 %648 }
 0x72c   :  { %v651_v58 = vpop.permute.xlu1 %650  ;;  %v654_v59 = vmul.f32 %v4729_v55, %v649_v56 }
 0x72d   :  { %v655_v60 = vmul.f32 %v4731_v57, %v651_v58 }
 0x72e   :  { %658 = vrot.lane.b32.xlu0 %v654_v59, %s5069_s11 }
 0x72f   :  { %660 = vrot.lane.b32.xlu1 %v655_v60, %s5069_s11  ;;  %v598_v62 = vpop.permute.xlu0 %597 }
 0x730   :  { %v600_v3 = vpop.permute.xlu1 %599  ;;  %v603_v5 = vmul.f32 %v4733_v61, %v598_v62 }
 0x731   :  { %v604_v6 = vmul.f32 %v4735_v1, %v600_v3 }
 0x732   :  { %607 = vrot.lane.b32.xlu0 %v603_v5, %s5069_s11 }
 0x733   :  { %609 = vrot.lane.b32.xlu1 %v604_v6, %s5069_s11 }
 0x7a0   :  { %v659_v14 = vpop.permute.xlu0 %658 }
 0x7a1   :  { %v661_v17 = vpop.permute.xlu1 %660  ;;  %v664_v20 = vadd.f32 %v659_v14, %v644_v10 }
 0x7a2   :  { %v665_v21 = vadd.f32 %v661_v17, %v645_v12 }
 0x7a3   :  { %4736 = vtanh.f32 %v664_v20  ;;  %v828_v22 = vrot.slane %v664_v20, 3 }
 0x7a4   :  { %4738 = vtanh.f32 %v665_v21  ;;  %v829_v27 = vrot.slane %v665_v21, 3  ;;  %v608_v30 = vpop.permute.xlu0 %607 }
 0x7a5   :  { %v610_v33 = vpop.permute.xlu1 %609  ;;  %v613_v34 = vadd.f32 %v608_v30, %v593_v24 }
 0x7a6   :  { %v614_v36 = vadd.f32 %v610_v33, %v594_v29  ;;  %v5343_v2 = vsel %vm827_vm4, %v828_v22, %v829_v27 }
 0x7a7   :  { %4740 = vtanh.f32 %v613_v34  ;;  %v797_v37 = vrot.slane %v613_v34, 5 }
 0x7a8   :  { %4742 = vtanh.f32 %v614_v36  ;;  %v798_v63 = vrot.slane %v614_v36, 5 }
 0x7aa   :  { %v5346_v39 = vsel %vm796_vm5, %v797_v37, %v798_v63 }
 0x7ad   :  { %v4737_v47 = vpop.eup %4736 }
 0x7ae   :  { %v4739_v51 = vpop.eup %4738  ;;  %670 = vrot.lane.b32.xlu0 %v4737_v47, %s5068_s3 }
 0x7af   :  { %672 = vrot.lane.b32.xlu1 %v4739_v51, %s5068_s3 }
 0x7b1   :  { %v4741_v40 = vpop.eup %4740 }
 0x7b2   :  { %v4743_v42 = vpop.eup %4742  ;;  %619 = vrot.lane.b32.xlu0 %v4741_v40, %s5068_s3 }
 0x7b3   :  { %621 = vrot.lane.b32.xlu1 %v4743_v42, %s5068_s3 }
 0x820   :  { %v671_v44 = vpop.permute.xlu0 %670 }
 0x821   :  { %v673_v46 = vpop.permute.xlu1 %672  ;;  %v5354_v49 = vmul.f32 %v4729_v55, %v671_v44 }
 0x822   :  { %v5352_v48 = vmul.f32 %v4731_v57, %v673_v46 }
 0x823   :  { %v689_v56 = vrot.slane %v5354_v49, 1 }
 0x824   :  { %v620_v50 = vpop.permute.xlu0 %619  ;;  %v690_v54 = vrot.slane %v5352_v48, 1 }
 0x825   :  { %v622_v52 = vpop.permute.xlu1 %621  ;;  %v625_v53 = vmul.f32 %v4733_v61, %v620_v50 }
 0x826   :  { %v626_v58 = vmul.f32 %v4735_v1, %v622_v52  ;;  %v691_v59 = vsel %vm688_vm6, %v689_v56, %v690_v54 }
 0x827   :  { %680 = vrot.lane.b32.xlu0 %v625_v53, %s5069_s11 }
 0x828   :  { %682 = vrot.lane.b32.xlu1 %v626_v58, %s5069_s11 }
 0x82b   :  { %692 = vrot.lane.b32.xlu0 %v691_v59, %s5068_s3 }
 0x82c   :  { %694 = vrot.lane.b32.xlu1 %v690_v54, %s5068_s3 }
 0x899   :  { %v5362_v55 = vpop.permute.xlu0 %680 }
 0x89a   :  { %v5364_v57 = vpop.permute.xlu1 %682 }
 0x89d   :  { %v693_v60 = vpop.permute.xlu0 %692 }
 0x89e   :  { %v695_v61 = vpop.permute.xlu1 %694  ;;  %v698_v62 = vsel %vm343_vm2, %v5362_v55, %v693_v60 }
 0x89f   :  { %v699_v1 = vsel %vm343_vm2, %v5364_v57, %v695_v61  ;;  %v703_v3 = vrot.slane %v698_v62, 6 }
 0x8a0   :  { %v704_v5 = vrot.slane %v699_v1, 6 }
 0x8a2   :  { %v705_v6 = vsel %vm702_vm7, %v703_v3, %v704_v5 }
 0x8a3   :  { %3908 = vmatmul.mubr.msk.f32.vlgmr.msra.gmra.mrb[8].mxu0 %vm206_vm3, %v705_v6 }
 0x8a4   :  { %4271 = vmatpush1.bf16.msra.mxu0 %v5179_v8  ;;  %1074 = vmatprep.mubr.f32.mxu0 %v5067_v0 }
 0x8a5   :  { %4273 = vmatprep.subr.bf16.mxu0 %v5181_v9 }
 0x8a8   :  { %4275 = vmatpush1.bf16.msra.mxu0 %v5188_v16 }
 0x8a9   :  { %4277 = vmatprep.subr.bf16.mxu0 %v5195_v18 }
 0x8ac   :  { %4279 = vmatpush1.bf16.msra.mxu0 %v5201_v23 }
 0x8ad   :  { %4281 = vmatprep.subr.bf16.mxu0 %v5208_v25 }
 0x8b0   :  { %4283 = vmatpush1.bf16.msra.mxu0 %v5214_v28 }
 0x8b1   :  { %4301 = vmatprep.subr.bf16.mxu0 %v5177_v4 }
 0x976   :  { %v774_v7 = vpop.f32.mrb[8].mxu0 }
 0x977   :  { %v780_v10 = vrot.slane %v774_v7, 7  ;;  %v776_v12 = vpop.f32.mrb[9].mxu0 }
 0x978   :  { %v784_v14 = vrot.slane %v776_v12, 4 }
 0x979   :  { %v782_v15 = vadd.f32 %v780_v10, %v5254_v41 }
 0x97a   :  { %v786_v17 = vadd.f32 %v784_v14, %v5256_v43 }
 0x97b   :  { %4744 = vtanh.f32 %v782_v15  ;;  %v3909_v22 = vmul.f32 -1.442695, %v782_v15 }
 0x97c   :  { %4746 = vtanh.f32 %v786_v17  ;;  %v3910_v24 = vmul.f32 -1.442695, %v786_v17 }
 0x97d   :  { %4748 = vpow2.f32 %v3909_v22 }
 0x97e   :  { %4750 = vpow2.f32 %v3910_v24 }
 0x985   :  { %v4745_v20 = vpop.eup %4744 }
 0x986   :  { %v4747_v21 = vpop.eup %4746  ;;  %803 = vrot.lane.b32.xlu1 %v4745_v20, %s5068_s3 }
 0x987   :  { %834 = vrot.lane.b32.xlu0 %v4747_v21, %s5068_s3  ;;  %v4749_v4 = vpop.eup %4748 }
 0x988   :  { %v4751_v27 = vpop.eup %4750  ;;  %v790_v29 = vadd.f32 1.0, %v4749_v4 }
 0x989   :  { %v821_v30 = vadd.f32 1.0, %v4751_v27 }
 0x98a   :  { %4752 = vrcp.f32 %v790_v29 }
 0x98b   :  { %4754 = vrcp.f32 %v821_v30 }
 0x994   :  { %v4753_v33 = vpop.eup %4752 }
 0x995   :  { %v4755_v36 = vpop.eup %4754  ;;  %v801_v51 = vmul.f32 %v4753_v33, %v5346_v39 }
 0x996   :  { %v832_v42 = vmul.f32 %v4755_v36, %v5343_v2 }
 0x9f8   :  { %v804_v34 = vpop.permute.xlu1 %803 }
 0x9f9   :  { %v806_v37 = vmul.f32 %v4753_v33, %v804_v34  ;;  %v835_v63 = vpop.permute.xlu0 %834 }
 0x9fa   :  { %v837_v47 = vmul.f32 %v4755_v36, %v835_v63 }
 0x9fb   :  { %808 = vrot.lane.b32.xlu1 %v806_v37, %s5069_s11 }
 0x9fc   :  { %839 = vrot.lane.b32.xlu0 %v837_v47, %s5069_s11 }
 0xa6d   :  { %v809_v40 = vpop.permute.xlu1 %808 }
 0xa6e   :  { %v811_v44 = vadd.f32 %v809_v40, %v801_v51  ;;  %v840_v46 = vpop.permute.xlu0 %839 }
 0xa6f   :  { %v842_v50 = vadd.f32 %v840_v46, %v832_v42 }
 0xa70   :  { %4756 = vtanh.f32 %v811_v44 }
 0xa71   :  { %4758 = vtanh.f32 %v842_v50  ;;  %v977_v37 = vrot.slane %v842_v50, 3 }
 0xa7a   :  { %v4757_v52 = vpop.eup %4756 }
 0xa7b   :  { %v4759_v53 = vpop.eup %4758  ;;  %814 = vrot.lane.b32.xlu1 %v4757_v52, %s5068_s3 }
 0xa7c   :  { %845 = vrot.lane.b32.xlu0 %v4759_v53, %s5068_s3 }
 0xaed   :  { %v815_v54 = vpop.permute.xlu1 %814 }
 0xaee   :  { %v817_v56 = vmul.f32 %v4753_v33, %v815_v54  ;;  %v846_v58 = vpop.permute.xlu0 %845 }
 0xaef   :  { %v5391_v59 = vmul.f32 %v4755_v36, %v846_v58  ;;  %v950_v36 = vrot.slane %v811_v44, 5 }
 0xaf0   :  { %850 = vrot.lane.b32.xlu0 %v817_v56, %s5069_s11 }
 0xaf1   :  { %v854_v2 = vrot.slane %v5391_v59, 3 }
 0xaf3   :  { %855 = vrot.lane.b32.xlu1 %v854_v2, %s5068_s3 }
 0xb62   :  { %v5396_v39 = vpop.permute.xlu0 %850 }
 0xb65   :  { %v856_v60 = vpop.permute.xlu1 %855 }
 0xb66   :  { %v858_v61 = vsel %vm343_vm2, %v5396_v39, %v856_v60 }
 0xb67   :  { %v860_v62 = vrot.slane %v858_v61, 1 }
 0xb69   :  { %3911 = vmatmul.mubr.msk.f32.vlgmr.msra.gmra.mrb[4].mxu1 %vm206_vm3, %v860_v62 }
 0xb6a   :  { %4287 = vmatpush1.bf16.msra.mxu1 %v5179_v8  ;;  %1286 = vmatprep.mubr.f32.mxu1 %v5067_v0 }
 0xb6b   :  { %4289 = vmatprep.subr.bf16.mxu1 %v5181_v9 }
 0xb6e   :  { %4291 = vmatpush1.bf16.msra.mxu1 %v5188_v16 }
 0xb6f   :  { %4293 = vmatprep.subr.bf16.mxu1 %v5195_v18 }
 0xb72   :  { %4295 = vmatpush1.bf16.msra.mxu1 %v5201_v23 }
 0xb73   :  { %4297 = vmatprep.subr.bf16.mxu1 %v5208_v25 }
 0xb76   :  { %4299 = vmatpush1.bf16.msra.mxu1 %v5214_v28 }
 0xc3c   :  { %v929_v1 = vpop.f32.mrb[4].mxu1 }
 0xc3d   :  { %v935_v3 = vrot.slane %v929_v1, 4  ;;  %v931_v5 = vpop.f32.mrb[5].mxu1 }
 0xc3e   :  { %v939_v6 = vrot.slane %v931_v5, 7 }
 0xc3f   :  { %v937_v7 = vadd.f32 %v935_v3, %v5254_v41 }
 0xc40   :  { %v941_v10 = vadd.f32 %v939_v6, %v5256_v43 }
 0xc41   :  { %4760 = vtanh.f32 %v937_v7  ;;  %v3912_v15 = vmul.f32 -1.442695, %v937_v7 }
 0xc42   :  { %4762 = vtanh.f32 %v941_v10  ;;  %v3913_v17 = vmul.f32 -1.442695, %v941_v10 }
 0xc43   :  { %4764 = vpow2.f32 %v3912_v15 }
 0xc44   :  { %4766 = vpow2.f32 %v3913_v17 }
 0xc4b   :  { %v4761_v12 = vpop.eup %4760 }
 0xc4c   :  { %v4763_v14 = vpop.eup %4762  ;;  %954 = vrot.lane.b32.xlu1 %v4761_v12, %s5068_s3 }
 0xc4d   :  { %981 = vrot.lane.b32.xlu0 %v4763_v14, %s5068_s3  ;;  %v4765_v20 = vpop.eup %4764 }
 0xc4e   :  { %v4767_v21 = vpop.eup %4766  ;;  %v945_v22 = vadd.f32 1.0, %v4765_v20 }
 0xc4f   :  { %v972_v24 = vadd.f32 1.0, %v4767_v21 }
 0xc50   :  { %4768 = vrcp.f32 %v945_v22 }
 0xc51   :  { %4770 = vrcp.f32 %v972_v24 }
 0xc5a   :  { %v4769_v4 = vpop.eup %4768 }
 0xc5b   :  { %v4771_v29 = vpop.eup %4770  ;;  %v952_v63 = vmul.f32 %v4769_v4, %v950_v36 }
 0xc5c   :  { %v979_v51 = vmul.f32 %v4771_v29, %v977_v37 }
 0xcbe   :  { %v955_v27 = vpop.permute.xlu1 %954 }
 0xcbf   :  { %v957_v30 = vmul.f32 %v4769_v4, %v955_v27  ;;  %v982_v33 = vpop.permute.xlu0 %981 }
 0xcc0   :  { %v984_v34 = vmul.f32 %v4771_v29, %v982_v33 }
 0xcc1   :  { %959 = vrot.lane.b32.xlu1 %v957_v30, %s5069_s11 }
 0xcc2   :  { %986 = vrot.lane.b32.xlu0 %v984_v34, %s5069_s11 }
 0xd33   :  { %v960_v47 = vpop.permute.xlu1 %959 }
 0xd34   :  { %v5415_v40 = vadd.f32 %v960_v47, %v952_v63  ;;  %v987_v42 = vpop.permute.xlu0 %986 }
 0xd35   :  { %v5417_v46 = vadd.f32 %v987_v42, %v979_v51 }
 0xd36   :  { %4772 = vtanh.f32 %v5415_v40 }
 0xd37   :  { %4774 = vtanh.f32 %v5417_v46 }
 0xd40   :  { %v4773_v52 = vpop.eup %4772 }
 0xd41   :  { %v4775_v53 = vpop.eup %4774  ;;  %965 = vrot.lane.b32.xlu1 %v4773_v52, %s5068_s3 }
 0xd42   :  { %992 = vrot.lane.b32.xlu0 %v4775_v53, %s5068_s3  ;;  %v1157_v53 = vrot.slane %v5417_v46, 3 }
 0xdb3   :  { %v966_v44 = vpop.permute.xlu1 %965 }
 0xdb4   :  { %v968_v50 = vmul.f32 %v4769_v4, %v966_v44  ;;  %v993_v54 = vpop.permute.xlu0 %992 }
 0xdb5   :  { %v5423_v56 = vmul.f32 %v4771_v29, %v993_v54 }
 0xdb6   :  { %997 = vrot.lane.b32.xlu0 %v968_v50, %s5069_s11 }
 0xdb7   :  { %v1001_v58 = vrot.slane %v5423_v56, 5 }
 0xdb9   :  { %1002 = vrot.lane.b32.xlu1 %v1001_v58, %s5068_s3  ;;  %v1106_v58 = vrot.slane %v5415_v40, 5 }
 0xe28   :  { %v5428_v2 = vpop.permute.xlu0 %997 }
 0xe2b   :  { %v1003_v60 = vpop.permute.xlu1 %1002 }
 0xe2c   :  { %v1005_v61 = vsel %vm343_vm2, %v5428_v2, %v1003_v60 }
 0xe2d   :  { %v1007_v62 = vrot.slane %v1005_v61, 4 }
 0xe2f   :  { %3914 = vmatmul.mubr.msk.f32.vlgmr.msra.gmra.mrb[10].mxu0 %vm206_vm3, %v1007_v62 }
 0xe30   :  { %4303 = vmatpush1.bf16.msra.mxu0 %v5179_v8  ;;  %1439 = vmatprep.mubr.f32.mxu0 %v5067_v0 }
 0xe31   :  { %4305 = vmatprep.subr.bf16.mxu0 %v5181_v9 }
 0xe34   :  { %4307 = vmatpush1.bf16.msra.mxu0 %v5188_v16 }
 0xe35   :  { %4309 = vmatprep.subr.bf16.mxu0 %v5195_v18 }
 0xe38   :  { %4311 = vmatpush1.bf16.msra.mxu0 %v5201_v23 }
 0xe39   :  { %4313 = vmatprep.subr.bf16.mxu0 %v5208_v25 }
 0xe3c   :  { %4315 = vmatpush1.bf16.msra.mxu0 %v5214_v28 }
 0xf02   :  { %v1076_v1 = vpop.f32.mrb[10].mxu0 }
 0xf03   :  { %v1078_v3 = vpop.f32.mrb[11].mxu0  ;;  %v1082_v6 = vrot.slane %v1076_v1, 1 }
 0xf04   :  { %v1087_v5 = vrot.slane %v1078_v3, 2 }
 0xf05   :  { %v1084_v9 = vadd.f32 %v1082_v6, %v5254_v41  ;;  %v1085_v16 = vadd.f32 %v1082_v6, %v5258_v45 }
 0xf06   :  { %v1089_v8 = vadd.f32 %v1087_v5, %v5250_v38  ;;  %v1090_v7 = vadd.f32 %v1087_v5, %v5256_v43 }
 0xf07   :  { %v3915_v10 = vmul.f32 -1.442695, %v1084_v9  ;;  %v3916_v12 = vmul.f32 -1.442695, %v1085_v16 }
 0xf08   :  { %4776 = vtanh.f32 %v1089_v8  ;;  %v3917_v43 = vmul.f32 -1.442695, %v1089_v8  ;;  %v3918_v41 = vmul.f32 -1.442695, %v1090_v7 }
 0xf09   :  { %4778 = vtanh.f32 %v1090_v7 }
 0xf0a   :  { %4780 = vtanh.f32 %v1084_v9 }
 0xf0b   :  { %4782 = vtanh.f32 %v1085_v16 }
 0xf0c   :  { %4784 = vpow2.f32 %v3917_v43 }
 0xf0d   :  { %4786 = vpow2.f32 %v3918_v41 }
 0xf0e   :  { %4788 = vpow2.f32 %v3915_v10 }
 0xf0f   :  { %4790 = vpow2.f32 %v3916_v12 }
 0xf12   :  { %v4777_v18 = vpop.eup %4776 }
 0xf13   :  { %v4779_v23 = vpop.eup %4778  ;;  %1163 = vrot.lane.b32.xlu0 %v4777_v18, %s5068_s3 }
 0xf14   :  { %1165 = vrot.lane.b32.xlu1 %v4779_v23, %s5068_s3  ;;  %v4781_v25 = vpop.eup %4780 }
 0xf15   :  { %v4783_v28 = vpop.eup %4782 }
 0xf16   :  { %v4785_v14 = vpop.eup %4784 }
 0xf17   :  { %1112 = vrot.lane.b32.xlu0 %v4781_v25, %s5068_s3  ;;  %v4787_v15 = vpop.eup %4786  ;;  %v1148_v17 = vadd.f32 1.0, %v4785_v14 }
 0xf18   :  { %1114 = vrot.lane.b32.xlu1 %v4783_v28, %s5068_s3  ;;  %v4789_v20 = vpop.eup %4788  ;;  %v1149_v21 = vadd.f32 1.0, %v4787_v15 }
 0xf19   :  { %v4791_v22 = vpop.eup %4790  ;;  %v1097_v24 = vadd.f32 1.0, %v4789_v20  ;;  %4792 = vrcp.f32 %v1148_v17 }
 0xf1a   :  { %v1098_v4 = vadd.f32 1.0, %v4791_v22  ;;  %4794 = vrcp.f32 %v1149_v21 }
 0xf1b   :  { %4796 = vrcp.f32 %v1097_v24 }
 0xf1c   :  { %4798 = vrcp.f32 %v1098_v4 }
 0xf23   :  { %v4793_v27 = vpop.eup %4792 }
 0xf24   :  { %v4795_v30 = vpop.eup %4794  ;;  %v1159_v44 = vmul.f32 %v4793_v27, %v1157_v53 }
 0xf25   :  { %v4797_v37 = vpop.eup %4796  ;;  %v1160_v50 = vmul.f32 %v4795_v30, %v1157_v53 }
 0xf26   :  { %v4799_v47 = vpop.eup %4798  ;;  %v1108_v3 = vmul.f32 %v4797_v37, %v1106_v58 }
 0xf27   :  { %v1109_v6 = vmul.f32 %v4799_v47, %v1106_v58 }
 0xf85   :  { %v1164_v29 = vpop.permute.xlu0 %1163 }
 0xf86   :  { %v1166_v33 = vpop.permute.xlu1 %1165  ;;  %v1169_v34 = vmul.f32 %v4793_v27, %v1164_v29 }
 0xf87   :  { %v1170_v36 = vmul.f32 %v4795_v30, %v1166_v33 }
 0xf88   :  { %1173 = vrot.lane.b32.xlu0 %v1169_v34, %s5069_s11 }
 0xf89   :  { %1175 = vrot.lane.b32.xlu1 %v1170_v36, %s5069_s11  ;;  %v1113_v63 = vpop.permute.xlu0 %1112 }
 0xf8a   :  { %v1115_v51 = vpop.permute.xlu1 %1114  ;;  %v1118_v42 = vmul.f32 %v4797_v37, %v1113_v63 }
 0xf8b   :  { %v1119_v52 = vmul.f32 %v4799_v47, %v1115_v51 }
 0xf8c   :  { %1122 = vrot.lane.b32.xlu0 %v1118_v42, %s5069_s11 }
 0xf8d   :  { %1124 = vrot.lane.b32.xlu1 %v1119_v52, %s5069_s11 }
 0xffa   :  { %v1174_v54 = vpop.permute.xlu0 %1173 }
 0xffb   :  { %v1176_v60 = vpop.permute.xlu1 %1175  ;;  %v1179_v61 = vadd.f32 %v1174_v54, %v1159_v44 }
 0xffc   :  { %v1180_v62 = vadd.f32 %v1176_v60, %v1160_v50 }
 0xffd   :  { %4800 = vtanh.f32 %v1179_v61  ;;  %v1340_v1 = vrot.slane %v1179_v61, 3 }
 0xffe   :  { %4802 = vtanh.f32 %v1180_v62  ;;  %v1341_v5 = vrot.slane %v1180_v62, 3  ;;  %v1123_v8 = vpop.permute.xlu0 %1122 }
 0xfff   :  { %v1125_v7 = vpop.permute.xlu1 %1124  ;;  %v1128_v9 = vadd.f32 %v1123_v8, %v1108_v3 }
0x1000   :  { %v1129_v16 = vadd.f32 %v1125_v7, %v1109_v6  ;;  %v5456_v46 = vsel %vm827_vm4, %v1340_v1, %v1341_v5 }
0x1001   :  { %4804 = vtanh.f32 %v1128_v9  ;;  %v1310_v18 = vrot.slane %v1128_v9, 5 }
0x1002   :  { %4806 = vtanh.f32 %v1129_v16  ;;  %v1311_v40 = vrot.slane %v1129_v16, 5 }
0x1004   :  { %v5459_v23 = vsel %vm796_vm5, %v1310_v18, %v1311_v40 }
0x1007   :  { %v4801_v25 = vpop.eup %4800 }
0x1008   :  { %v4803_v28 = vpop.eup %4802  ;;  %1185 = vrot.lane.b32.xlu0 %v4801_v25, %s5068_s3 }
0x1009   :  { %1187 = vrot.lane.b32.xlu1 %v4803_v28, %s5068_s3 }
0x100b   :  { %v4805_v43 = vpop.eup %4804 }
0x100c   :  { %v4807_v41 = vpop.eup %4806  ;;  %1134 = vrot.lane.b32.xlu0 %v4805_v43, %s5068_s3 }
0x100d   :  { %1136 = vrot.lane.b32.xlu1 %v4807_v41, %s5068_s3 }
0x107a   :  { %v1186_v10 = vpop.permute.xlu0 %1185 }
0x107b   :  { %v1188_v12 = vpop.permute.xlu1 %1187  ;;  %v5467_v15 = vmul.f32 %v4793_v27, %v1186_v10 }
0x107c   :  { %v5465_v14 = vmul.f32 %v4795_v30, %v1188_v12 }
0x107d   :  { %v1204_v4 = vrot.slane %v5467_v15, 7 }
0x107e   :  { %v1135_v17 = vpop.permute.xlu0 %1134  ;;  %v1205_v24 = vrot.slane %v5465_v14, 7 }
0x107f   :  { %v1137_v20 = vpop.permute.xlu1 %1136  ;;  %v1140_v21 = vmul.f32 %v4797_v37, %v1135_v17 }
0x1080   :  { %v1141_v22 = vmul.f32 %v4799_v47, %v1137_v20  ;;  %v1206_v29 = vsel %vm1203_vm8, %v1204_v4, %v1205_v24 }
0x1081   :  { %1195 = vrot.lane.b32.xlu0 %v1140_v21, %s5069_s11 }
0x1082   :  { %1197 = vrot.lane.b32.xlu1 %v1141_v22, %s5069_s11 }
0x1085   :  { %1207 = vrot.lane.b32.xlu0 %v1204_v4, %s5068_s3 }
0x1086   :  { %1209 = vrot.lane.b32.xlu1 %v1206_v29, %s5068_s3 }
0x10f3   :  { %v5476_v27 = vpop.permute.xlu0 %1195 }
0x10f4   :  { %v5478_v30 = vpop.permute.xlu1 %1197 }
0x10f7   :  { %v1208_v33 = vpop.permute.xlu0 %1207 }
0x10f8   :  { %v1210_v34 = vpop.permute.xlu1 %1209  ;;  %v1213_v36 = vsel %vm343_vm2, %v5476_v27, %v1208_v33 }
0x10f9   :  { %v1214_v37 = vsel %vm343_vm2, %v5478_v30, %v1210_v34  ;;  %v1217_v63 = vrot.slane %v1213_v36, 7 }
0x10fa   :  { %v1218_v47 = vrot.slane %v1214_v37, 7 }
0x10fc   :  { %v1219_v51 = vsel %vm1203_vm8, %v1217_v63, %v1218_v47 }
0x10fd   :  { %3919 = vmatmul.mubr.msk.f32.vlgmr.msra.gmra.mrb[6].mxu1 %vm206_vm3, %v1219_v51 }
0x10fe   :  { %1605 = vmatprep.mubr.f32.mxu1 %v5067_v0 }
0x11d0   :  { %v1288_v42 = vpop.f32.mrb[6].mxu1 }
0x11d1   :  { %v1294_v52 = vrot.slane %v1288_v42, 6  ;;  %v1290_v53 = vpop.f32.mrb[7].mxu1 }
0x11d2   :  { %v1298_v44 = vrot.slane %v1290_v53, 5 }
0x11d3   :  { %v1296_v50 = vadd.f32 %v1294_v52, %v5258_v45 }
0x11d4   :  { %v1300_v54 = vadd.f32 %v1298_v44, %v5250_v38 }
0x11d5   :  { %4808 = vtanh.f32 %v1296_v50  ;;  %v3920_v61 = vmul.f32 -1.442695, %v1296_v50 }
0x11d6   :  { %4810 = vtanh.f32 %v1300_v54  ;;  %v3921_v62 = vmul.f32 -1.442695, %v1300_v54 }
0x11d7   :  { %4812 = vpow2.f32 %v3920_v61 }
0x11d8   :  { %4814 = vpow2.f32 %v3921_v62 }
0x11df   :  { %v4809_v58 = vpop.eup %4808 }
0x11e0   :  { %v4811_v60 = vpop.eup %4810  ;;  %1316 = vrot.lane.b32.xlu1 %v4809_v58, %s5068_s3 }
0x11e1   :  { %1346 = vrot.lane.b32.xlu0 %v4811_v60, %s5068_s3  ;;  %v4813_v1 = vpop.eup %4812 }
0x11e2   :  { %v4815_v3 = vpop.eup %4814  ;;  %v1304_v5 = vadd.f32 1.0, %v4813_v1 }
0x11e3   :  { %v1334_v6 = vadd.f32 1.0, %v4815_v3 }
0x11e4   :  { %4816 = vrcp.f32 %v1304_v5  ;;  %v1506_v5 = vld [vmem:[#allocation5 + $0x8] sm:$0xff] }
0x11e5   :  { %4818 = vrcp.f32 %v1334_v6  ;;  %v1508_v6 = vld [vmem:[#allocation5 + $0x18] sm:$0xff] }
0x11ee   :  { %v4817_v8 = vpop.eup %4816 }
0x11ef   :  { %v4819_v9 = vpop.eup %4818  ;;  %v1314_v25 = vmul.f32 %v4817_v8, %v5459_v23 }
0x11f0   :  { %v1344_v43 = vmul.f32 %v4819_v9, %v5456_v46 }
0x1252   :  { %v1317_v7 = vpop.permute.xlu1 %1316 }
0x1253   :  { %v1319_v16 = vmul.f32 %v4817_v8, %v1317_v7  ;;  %v1347_v18 = vpop.permute.xlu0 %1346  ;;  %v5526_v7 = vpack.c.bf16 %v1508_v6, %v1506_v5 }
0x1254   :  { %v1349_v40 = vmul.f32 %v4819_v9, %v1347_v18  ;;  %v1512_v18 = vld [vmem:[#allocation5 + $0x38] sm:$0xff] }
0x1255   :  { %1321 = vrot.lane.b32.xlu1 %v1319_v16, %s5069_s11  ;;  %v1510_v16 = vld [vmem:[#allocation5 + $0x28] sm:$0xff]  ;;  %4333 = vmatprep.subr.bf16.mxu0 %v5526_v7 }
0x1256   :  { %1351 = vrot.lane.b32.xlu0 %v1349_v40, %s5069_s11  ;;  %4317 = vmatprep.subr.bf16.mxu1 %v5526_v7 }
0x12c7   :  { %v1322_v28 = vpop.permute.xlu1 %1321 }
0x12c8   :  { %v5495_v41 = vadd.f32 %v1322_v28, %v1314_v25  ;;  %v1352_v10 = vpop.permute.xlu0 %1351  ;;  %v5530_v25 = vpack.c.bf16 %v1512_v18, %v1510_v16  ;;  %v1509_v28 = vld [vmem:[#allocation5 + $0x20] sm:$0xff] }
0x12c9   :  { %v5497_v12 = vadd.f32 %v1352_v10, %v1344_v43  ;;  %v1511_v43 = vld [vmem:[#allocation5 + $0x30] sm:$0xff] }
0x12ca   :  { %4820 = vtanh.f32 %v5495_v41  ;;  %v5535_v10 = vpack.c.bf16 %v1511_v43, %v1509_v28  ;;  %v2184_v28 = vld [vmem:[#allocation7 + $0x8] sm:$0xff]  ;;  %v2186_v43 = vld [vmem:[#allocation7 + $0x18] sm:$0xff] }
0x12cb   :  { %4822 = vtanh.f32 %v5497_v12 }
0x12d4   :  { %v4821_v17 = vpop.eup %4820 }
0x12d5   :  { %v4823_v20 = vpop.eup %4822  ;;  %1327 = vrot.lane.b32.xlu1 %v4821_v17, %s5068_s3  ;;  %v1486_v17 = vrot.slane %v5497_v12, 3  ;;  %v1518_v12 = vld [vmem:[#allocation5 + $0x68] sm:$0xff] }
0x12d6   :  { %1357 = vrot.lane.b32.xlu0 %v4823_v20, %s5068_s3  ;;  %v1459_v20 = vrot.slane %v5495_v41, 5 }
0x1347   :  { %v1328_v21 = vpop.permute.xlu1 %1327 }
0x1348   :  { %v1330_v23 = vmul.f32 %v4817_v8, %v1328_v21  ;;  %v1358_v22 = vpop.permute.xlu0 %1357  ;;  %v1505_v8 = vld [vmem:[#allocation5] sm:$0xff]  ;;  %v1514_v21 = vld [vmem:[#allocation5 + $0x48] sm:$0xff] }
0x1349   :  { %v5503_v24 = vmul.f32 %v4819_v9, %v1358_v22  ;;  %v1507_v9 = vld [vmem:[#allocation5 + $0x10] sm:$0xff] }
0x134a   :  { %1362 = vrot.lane.b32.xlu0 %v1330_v23, %s5069_s11  ;;  %v5528_v40 = vpack.c.bf16 %v1507_v9, %v1505_v8  ;;  %v1516_v23 = vld [vmem:[#allocation5 + $0x58] sm:$0xff] }
0x134b   :  { %v1366_v46 = vrot.slane %v5503_v24, 1 }
0x134c   :  { %4319 = vmatpush1.bf16.msra.mxu1 %v5528_v40 }
0x134d   :  { %1367 = vrot.lane.b32.xlu1 %v1366_v46, %s5068_s3  ;;  %4321 = vmatprep.subr.bf16.mxu1 %v5530_v25  ;;  %v5545_v46 = vpack.c.bf16 %v1516_v23, %v1514_v21  ;;  %v2185_v21 = vld [vmem:[#allocation7 + $0x10] sm:$0xff]  ;;  %v2190_v23 = vld [vmem:[#allocation7 + $0x38] sm:$0xff] }
0x1350   :  { %4323 = vmatpush1.bf16.msra.mxu1 %v5535_v10 }
0x1351   :  { %4325 = vmatprep.subr.bf16.mxu1 %v5545_v46 }
0x13bc   :  { %v5508_v4 = vpop.permute.xlu0 %1362 }
0x13bf   :  { %v1368_v29 = vpop.permute.xlu1 %1367 }
0x13c0   :  { %v1370_v33 = vsel %vm343_vm2, %v5508_v4, %v1368_v29  ;;  %v1513_v29 = vld [vmem:[#allocation5 + $0x40] sm:$0xff] }
0x13c1   :  { %v1372_v34 = vrot.slane %v1370_v33, 2  ;;  %v1515_v33 = vld [vmem:[#allocation5 + $0x50] sm:$0xff] }
0x13c3   :  { %3922 = vmatmul.mubr.msk.f32.vlgmr.msra.gmra.mrb[12].mxu0 %vm206_vm3, %v1372_v34 }
0x13c4   :  { %1684 = vmatprep.mubr.f32.mxu0 %v5067_v0  ;;  %4335 = vmatpush1.bf16.msra.mxu0 %v5528_v40 }
0x13c5   :  { %4337 = vmatprep.subr.bf16.mxu0 %v5530_v25 }
0x13c8   :  { %4339 = vmatpush1.bf16.msra.mxu0 %v5535_v10 }
0x13c9   :  { %4341 = vmatprep.subr.bf16.mxu0 %v5545_v46 }
0x1496   :  { %v1441_v36 = vpop.f32.mrb[12].mxu0 }
0x1497   :  { %v1447_v37 = vrot.slane %v1441_v36, 3  ;;  %v1443_v63 = vpop.f32.mrb[13].mxu0 }
0x1498   :  { %v1450_v47 = vadd.f32 %v1443_v63, %v5250_v38 }
0x1499   :  { %v1449_v51 = vadd.f32 %v1447_v37, %v5258_v45  ;;  %v5548_v37 = vpack.c.bf16 %v1515_v33, %v1513_v29  ;;  %v2189_v33 = vld [vmem:[#allocation7 + $0x30] sm:$0xff] }
0x149a   :  { %4824 = vtanh.f32 %v1450_v47  ;;  %v3924_v53 = vmul.f32 -1.442695, %v1450_v47 }
0x149b   :  { %4826 = vtanh.f32 %v1449_v51  ;;  %v3923_v44 = vmul.f32 -1.442695, %v1449_v51  ;;  %4343 = vmatpush1.bf16.msra.mxu0 %v5548_v37  ;;  %v1520_v51 = vld [vmem:[#allocation5 + $0x78] sm:$0xff]  ;;  %4327 = vmatpush1.bf16.msra.mxu1 %v5548_v37 }
0x149c   :  { %4828 = vpow2.f32 %v3924_v53  ;;  %v1519_v53 = vld [vmem:[#allocation5 + $0x70] sm:$0xff] }
0x149d   :  { %4830 = vpow2.f32 %v3923_v44 }
0x14a4   :  { %v4825_v42 = vpop.eup %4824 }
0x14a5   :  { %v4827_v52 = vpop.eup %4826  ;;  %1490 = vrot.lane.b32.xlu0 %v4825_v42, %s5068_s3  ;;  %v5554_v42 = vpack.c.bf16 %v1520_v51, %v1518_v12  ;;  %v2191_v12 = vld [vmem:[#allocation7 + $0x40] sm:$0xff]  ;;  %v2193_v51 = vld [vmem:[#allocation7 + $0x50] sm:$0xff] }
0x14a6   :  { %1463 = vrot.lane.b32.xlu1 %v4827_v52, %s5068_s3  ;;  %v4829_v50 = vpop.eup %4828  ;;  %v1517_v52 = vld [vmem:[#allocation5 + $0x60] sm:$0xff] }
0x14a7   :  { %v4831_v54 = vpop.eup %4830  ;;  %v1481_v58 = vadd.f32 1.0, %v4829_v50  ;;  %v5556_v44 = vpack.c.bf16 %v1519_v53, %v1517_v52  ;;  %4345 = vmatprep.subr.bf16.mxu0 %v5554_v42  ;;  %4329 = vmatprep.subr.bf16.mxu1 %v5554_v42  ;;  %v5687_v52 = vpack.c.bf16 %v2193_v51, %v2191_v12 }
0x14a8   :  { %v1454_v60 = vadd.f32 1.0, %v4831_v54 }
0x14a9   :  { %4832 = vrcp.f32 %v1481_v58  ;;  %4347 = vmatpush1.bf16.msra.mxu0 %v5556_v44  ;;  %4331 = vmatpush1.bf16.msra.mxu1 %v5556_v44 }
0x14aa   :  { %4834 = vrcp.f32 %v1454_v60  ;;  %4365 = vmatprep.subr.bf16.mxu0 %v5526_v7  ;;  %4349 = vmatprep.subr.bf16.mxu1 %v5526_v7 }
0x14b3   :  { %v5518_v38 = vpop.eup %4832 }
0x14b4   :  { %v5520_v61 = vpop.eup %4834  ;;  %v1488_v22 = vmul.f32 %v5518_v38, %v1486_v17 }
0x14b5   :  { %v1461_v36 = vmul.f32 %v5520_v61, %v1459_v20  ;;  %v5661_v20 = vpack.c.bf16 %v2186_v43, %v2184_v28 }
0x1517   :  { %v1491_v45 = vpop.permute.xlu0 %1490 }
0x1518   :  { %v1493_v62 = vmul.f32 %v5518_v38, %v1491_v45  ;;  %v1464_v1 = vpop.permute.xlu1 %1463 }
0x1519   :  { %v1466_v3 = vmul.f32 %v5520_v61, %v1464_v1 }
0x151a   :  { %1495 = vrot.lane.b32.xlu0 %v1493_v62, %s5069_s11 }
0x151b   :  { %1468 = vrot.lane.b32.xlu1 %v1466_v3, %s5069_s11 }
0x158c   :  { %v1496_v34 = vpop.permute.xlu0 %1495 }
0x158d   :  { %v1498_v63 = vadd.f32 %v1496_v34, %v1488_v22  ;;  %v1469_v47 = vpop.permute.xlu1 %1468 }
0x158e   :  { %v1471_v41 = vadd.f32 %v1469_v47, %v1461_v36  ;;  %v2192_v36 = vld [vmem:[#allocation7 + $0x48] sm:$0xff] }
0x158f   :  { %4836 = vtanh.f32 %v1498_v63  ;;  %v2194_v63 = vld [vmem:[#allocation7 + $0x58] sm:$0xff] }
0x1590   :  { %4838 = vtanh.f32 %v1471_v41  ;;  %v5681_v41 = vpack.c.bf16 %v2194_v63, %v2192_v36 }
0x1599   :  { %v4837_v50 = vpop.eup %4836 }
0x159a   :  { %v4839_v54 = vpop.eup %4838  ;;  %1501 = vrot.lane.b32.xlu0 %v4837_v50, %s5068_s3  ;;  %v2197_v50 = vld [vmem:[#allocation7 + $0x70] sm:$0xff] }
0x159b   :  { %1474 = vrot.lane.b32.xlu1 %v4839_v54, %s5068_s3 }
0x159f   :  { %1612 = vrot.lane.b32.xlu1 %v5503_v24, %s5068_s3 }
0x15a3   :  { %1693 = vrot.lane.b32.xlu1 %v5465_v14, %s5068_s3 }
0x15a7   :  { %1856 = vrot.lane.b32.xlu1 %v5391_v59, %s5068_s3 }
0x15ab   :  { %1937 = vrot.lane.b32.xlu1 %v5352_v48, %s5068_s3 }
0x160c   :  { %v1502_v58 = vpop.permute.xlu0 %1501 }
0x160d   :  { %v1504_v60 = vmul.f32 %v5518_v38, %v1502_v58  ;;  %v1475_v45 = vpop.permute.xlu1 %1474 }
0x160e   :  { %v1477_v62 = vmul.f32 %v5520_v61, %v1475_v45 }
0x160f   :  { %1523 = vrot.lane.b32.xlu0 %v1504_v60, %s5068_s3 }
0x1610   :  { %2101 = vrot.lane.b32.xlu1 %v1477_v62, %s5069_s11 }
0x1611   :  { %v1613_v24 = vpop.permute.xlu1 %1612 }
0x1612   :  { %v1615_v14 = vsel %vm343_vm2, %v5314_v13, %v1613_v24 }
0x1613   :  { %v1617_v1 = vrot.slane %v1615_v14, 3  ;;  %1691 = vrot.lane.b32.xlu0 %v5467_v15, %s5068_s3 }
0x1615   :  { %3926 = vmatmul.mubr.msk.f32.vlgmr.msra.gmra.mrb[14].mxu0 %vm206_vm3, %v1617_v1 }
0x1616   :  { %4367 = vmatpush1.bf16.msra.mxu0 %v5528_v40  ;;  %1849 = vmatprep.mubr.f32.mxu0 %v5067_v0 }
0x1617   :  { %1777 = vrot.lane.b32.xlu0 %v5423_v56, %s5068_s3  ;;  %4369 = vmatprep.subr.bf16.mxu0 %v5530_v25 }
0x161a   :  { %4371 = vmatpush1.bf16.msra.mxu0 %v5535_v10 }
0x161b   :  { %1935 = vrot.lane.b32.xlu0 %v5354_v49, %s5068_s3  ;;  %4373 = vmatprep.subr.bf16.mxu0 %v5545_v46  ;;  %v1694_v49 = vpop.permute.xlu1 %1693 }
0x161c   :  { %v1698_v15 = vsel %vm343_vm2, %v5364_v57, %v1694_v49 }
0x161e   :  { %4375 = vmatpush1.bf16.msra.mxu0 %v5548_v37 }
0x161f   :  { %2021 = vrot.lane.b32.xlu0 %v5309_v11, %s5068_s3  ;;  %4377 = vmatprep.subr.bf16.mxu0 %v5554_v42  ;;  %v1857_v38 = vpop.permute.xlu1 %1856 }
0x1622   :  { %4379 = vmatpush1.bf16.msra.mxu0 %v5556_v44 }
0x1623   :  { %2104 = vrot.lane.b32.xlu0 %v5275_v19, %s5068_s3  ;;  %4397 = vmatprep.subr.bf16.mxu0 %v5526_v7  ;;  %v1938_v3 = vpop.permute.xlu1 %1937 }
0x1624   :  { %v1942_v6 = vsel %vm343_vm2, %v5478_v30, %v1938_v3  ;;  %v1859_v30 = vsel %vm343_vm2, %v5428_v2, %v1857_v38  ;;  %v1521_v38 = vld [vmem:[%s6132_s6] sm:$0x3] }
0x1625   :  { %v1946_v9 = vrot.slane %v1942_v6, 7  ;;  %v1861_v18 = vrot.slane %v1859_v30, 4 }
0x1681   :  { %v1524_v13 = vpop.permute.xlu0 %1523 }
0x1682   :  { %v1526_v48 = vsel %vm343_vm2, %v5280_v26, %v1524_v13  ;;  %v2102_v17 = vpop.permute.xlu1 %2101 }
0x1683   :  { %3925 = vmatmul.mubr.msk.f32.vlgmr.msra.gmra.mrb[8].mxu1 %vm206_vm3, %v1526_v48 }
0x1684   :  { %4351 = vmatpush1.bf16.msra.mxu1 %v5528_v40  ;;  %1770 = vmatprep.mubr.f32.mxu1 %v5067_v0 }
0x1685   :  { %v1692_v11 = vpop.permute.xlu0 %1691  ;;  %4353 = vmatprep.subr.bf16.mxu1 %v5530_v25 }
0x1686   :  { %v1697_v26 = vsel %vm343_vm2, %v5362_v55, %v1692_v11 }
0x1687   :  { %v1701_v61 = vrot.slane %v1697_v26, 6 }
0x1688   :  { %4355 = vmatpush1.bf16.msra.mxu1 %v5535_v10 }
0x1689   :  { %v1778_v59 = vpop.permute.xlu0 %1777  ;;  %4357 = vmatprep.subr.bf16.mxu1 %v5545_v46 }
0x168a   :  { %v1780_v19 = vsel %vm343_vm2, %v5396_v39, %v1778_v59  ;;  %v1702_v39 = vrot.slane %v1698_v15, 6 }
0x168b   :  { %v1782_v56 = vrot.slane %v1780_v19, 1 }
0x168c   :  { %4359 = vmatpush1.bf16.msra.mxu1 %v5548_v37  ;;  %v1703_v57 = vsel %vm702_vm7, %v1701_v61, %v1702_v39  ;;  %v5748_v61 = vrot.slane %v1521_v38, %v82_v35  ;;  %v5752_v39 = vrot.slane %v1521_v38, %v86_v32 }
0x168d   :  { %3928 = vmatmul.mubr.msk.f32.vlgmr.msra.gmra.mrb[16].mxu0 %vm206_vm3, %v1782_v56  ;;  %4361 = vmatprep.subr.bf16.mxu1 %v5554_v42  ;;  %v1936_v55 = vpop.permute.xlu0 %1935 }
0x168e   :  { %4399 = vmatpush1.bf16.msra.mxu0 %v5528_v40  ;;  %2014 = vmatprep.mubr.f32.mxu0 %v5067_v0  ;;  %v1941_v5 = vsel %vm343_vm2, %v5476_v27, %v1936_v55 }
0x168f   :  { %4401 = vmatprep.subr.bf16.mxu0 %v5530_v25  ;;  %v1945_v8 = vrot.slane %v1941_v5, 7 }
0x1690   :  { %4363 = vmatpush1.bf16.msra.mxu1 %v5556_v44 }
0x1691   :  { %4381 = vmatprep.subr.bf16.mxu1 %v5526_v7  ;;  %v1947_v27 = vsel %vm1203_vm8, %v1945_v8, %v1946_v9  ;;  %v2022_v16 = vpop.permute.xlu0 %2021 }
0x1692   :  { %4403 = vmatpush1.bf16.msra.mxu0 %v5535_v10  ;;  %v2024_v34 = vsel %vm343_vm2, %v5508_v4, %v2022_v16  ;;  %v2196_v4 = vld [vmem:[#allocation7 + $0x68] sm:$0xff] }
0x1693   :  { %3927 = vmatmul.mubr.msk.f32.vlgmr.msra.gmra.mrb[10].mxu1 %vm206_vm3, %v1703_v57  ;;  %4405 = vmatprep.subr.bf16.mxu0 %v5545_v46  ;;  %v2026_v47 = vrot.slane %v2024_v34, 2 }
0x1694   :  { %4383 = vmatpush1.bf16.msra.mxu1 %v5528_v40  ;;  %1928 = vmatprep.mubr.f32.mxu1 %v5067_v0 }
0x1695   :  { %4385 = vmatprep.subr.bf16.mxu1 %v5530_v25  ;;  %v2105_v2 = vpop.permute.xlu0 %2104 }
0x1696   :  { %4407 = vmatpush1.bf16.msra.mxu0 %v5548_v37 }
0x1697   :  { %4409 = vmatprep.subr.bf16.mxu0 %v5554_v42 }
0x1698   :  { %4387 = vmatpush1.bf16.msra.mxu1 %v5535_v10 }
0x1699   :  { %4389 = vmatprep.subr.bf16.mxu1 %v5545_v46 }
0x169a   :  { %4411 = vmatpush1.bf16.msra.mxu0 %v5556_v44 }
0x169b   :  { %4429 = vmatprep.subr.bf16.mxu0 %v5526_v7 }
0x169c   :  { %4391 = vmatpush1.bf16.msra.mxu1 %v5548_v37 }
0x169d   :  { %3930 = vmatmul.mubr.msk.f32.vlgmr.msra.gmra.mrb[18].mxu0 %vm206_vm3, %v1947_v27  ;;  %4393 = vmatprep.subr.bf16.mxu1 %v5554_v42 }
0x169e   :  { %4431 = vmatpush1.bf16.msra.mxu0 %v5528_v40  ;;  %2176 = vmatprep.mubr.f32.mxu0 %v5067_v0 }
0x169f   :  { %4433 = vmatprep.subr.bf16.mxu0 %v5530_v25 }
0x16a0   :  { %4395 = vmatpush1.bf16.msra.mxu1 %v5556_v44 }
0x16a1   :  { %4413 = vmatprep.subr.bf16.mxu1 %v5526_v7  ;;  %v2107_v7 = vsel %vm343_vm2, %v2102_v17, %v2105_v2 }
0x16a2   :  { %4435 = vmatpush1.bf16.msra.mxu0 %v5535_v10  ;;  %v2109_v22 = vrot.slane %v2107_v7, 5 }
0x16a3   :  { %3929 = vmatmul.mubr.msk.f32.vlgmr.msra.gmra.mrb[12].mxu1 %vm206_vm3, %v1861_v18  ;;  %4437 = vmatprep.subr.bf16.mxu0 %v5545_v46 }
0x16a4   :  { %4415 = vmatpush1.bf16.msra.mxu1 %v5528_v40  ;;  %2093 = vmatprep.mubr.f32.mxu1 %v5067_v0  ;;  %v2183_v40 = vld [vmem:[#allocation7] sm:$0xff] }
0x16a5   :  { %4417 = vmatprep.subr.bf16.mxu1 %v5530_v25  ;;  %v2188_v25 = vld [vmem:[#allocation7 + $0x28] sm:$0xff]  ;;  %v5666_v29 = vpack.c.bf16 %v2185_v21, %v2183_v40 }
0x16a6   :  { %4439 = vmatpush1.bf16.msra.mxu0 %v5548_v37 }
0x16a7   :  { %4441 = vmatprep.subr.bf16.mxu0 %v5554_v42 }
0x16a8   :  { %4419 = vmatpush1.bf16.msra.mxu1 %v5535_v10  ;;  %v5670_v10 = vpack.c.bf16 %v2190_v23, %v2188_v25 }
0x16a9   :  { %4421 = vmatprep.subr.bf16.mxu1 %v5545_v46  ;;  %v2187_v46 = vld [vmem:[#allocation7 + $0x20] sm:$0xff] }
0x16aa   :  { %4443 = vmatpush1.bf16.msra.mxu0 %v5556_v44 }
0x16ab   :  { %4461 = vmatprep.subr.bf16.mxu0 %v5661_v20 }
0x16ac   :  { %4423 = vmatpush1.bf16.msra.mxu1 %v5548_v37  ;;  %v5678_v37 = vpack.c.bf16 %v2189_v33, %v2187_v46 }
0x16ad   :  { %3932 = vmatmul.mubr.msk.f32.vlgmr.msra.gmra.mrb[20].mxu0 %vm206_vm3, %v2109_v22  ;;  %4425 = vmatprep.subr.bf16.mxu1 %v5554_v42  ;;  %v2198_v42 = vld [vmem:[#allocation7 + $0x78] sm:$0xff] }
0x16ae   :  { %4463 = vmatpush1.bf16.msra.mxu0 %v5666_v29  ;;  %2396 = vmatprep.mubr.f32.mxu0 %v5067_v0  ;;  %v5691_v53 = vpack.c.bf16 %v2198_v42, %v2196_v4 }
0x16af   :  { %4465 = vmatprep.subr.bf16.mxu0 %v5670_v10 }
0x16b0   :  { %4427 = vmatpush1.bf16.msra.mxu1 %v5556_v44  ;;  %v2195_v44 = vld [vmem:[#allocation7 + $0x60] sm:$0xff] }
0x16b1   :  { %4445 = vmatprep.subr.bf16.mxu1 %v5661_v20  ;;  %v5696_v54 = vpack.c.bf16 %v2197_v50, %v2195_v44 }
0x16b2   :  { %4467 = vmatpush1.bf16.msra.mxu0 %v5678_v37 }
0x16b3   :  { %3931 = vmatmul.mubr.msk.f32.vlgmr.msra.gmra.mrb[14].mxu1 %vm206_vm3, %v2026_v47  ;;  %4469 = vmatprep.subr.bf16.mxu0 %v5681_v41 }
0x16b4   :  { %4447 = vmatpush1.bf16.msra.mxu1 %v5666_v29  ;;  %2263 = vmatprep.mubr.f32.mxu1 %v5067_v0 }
0x16b5   :  { %4449 = vmatprep.subr.bf16.mxu1 %v5670_v10 }
0x16b6   :  { %4471 = vmatpush1.bf16.msra.mxu0 %v5687_v52 }
0x16b7   :  { %4473 = vmatprep.subr.bf16.mxu0 %v5691_v53 }
0x16b8   :  { %4451 = vmatpush1.bf16.msra.mxu1 %v5678_v37 }
0x16b9   :  { %4453 = vmatprep.subr.bf16.mxu1 %v5681_v41 }
0x16ba   :  { %4475 = vmatpush1.bf16.msra.mxu0 %v5696_v54 }
0x16bb   :  { %4493 = vmatprep.subr.bf16.mxu0 %v5661_v20 }
0x16bc   :  { %4455 = vmatpush1.bf16.msra.mxu1 %v5687_v52 }
0x16bd   :  { %4457 = vmatprep.subr.bf16.mxu1 %v5691_v53 }
0x16c0   :  { %4459 = vmatpush1.bf16.msra.mxu1 %v5696_v54 }
0x16c1   :  { %4477 = vmatprep.subr.bf16.mxu1 %v5661_v20 }
0x16c3   :  { %2264 = vmatmul.mubr.f32.vlgmr.msra.gmra.mrb[16].mxu1 %v5067_v0 }
0x16c4   :  { %4479 = vmatpush1.bf16.msra.mxu1 %v5666_v29  ;;  %2529 = vmatprep.mubr.f32.mxu1 %v5067_v0 }
0x16c5   :  { %4481 = vmatprep.subr.bf16.mxu1 %v5670_v10 }
0x16c8   :  { %4483 = vmatpush1.bf16.msra.mxu1 %v5678_v37 }
0x16c9   :  { %4485 = vmatprep.subr.bf16.mxu1 %v5681_v41 }
0x16cc   :  { %4487 = vmatpush1.bf16.msra.mxu1 %v5687_v52 }
0x16cd   :  { %4489 = vmatprep.subr.bf16.mxu1 %v5691_v53 }
0x16d0   :  { %4491 = vmatpush1.bf16.msra.mxu1 %v5696_v54 }
0x16d1   :  { %4509 = vmatprep.subr.bf16.mxu1 %v5661_v20 }
0x16e8   :  { %v5715_v58 = vpop.f32.mrb[14].mxu0 }
0x16e9   :  { %v5717_v60 = vpop.f32.mrb[15].mxu0  ;;  %v1687_v50 = vadd.f32 %v5715_v58, %v5748_v61 }
0x1756   :  { %v1607_v45 = vpop.f32.mrb[8].mxu1 }
0x1757   :  { %v5719_v62 = vpop.f32.mrb[9].mxu1  ;;  %v1608_v55 = vadd.f32 %v1607_v45, %v5748_v61 }
0x1760   :  { %v5721_v24 = vpop.f32.mrb[16].mxu0 }
0x1761   :  { %v5723_v14 = vpop.f32.mrb[17].mxu0 }
0x1766   :  { %v5725_v1 = vpop.f32.mrb[10].mxu1 }
0x1767   :  { %v5727_v13 = vpop.f32.mrb[11].mxu1 }
0x1770   :  { %v5729_v48 = vpop.f32.mrb[18].mxu0 }
0x1771   :  { %v5731_v11 = vpop.f32.mrb[19].mxu0 }
0x1776   :  { %v5733_v49 = vpop.f32.mrb[12].mxu1 }
0x1777   :  { %v5735_v59 = vpop.f32.mrb[13].mxu1 }
0x1780   :  { %v5737_v19 = vpop.f32.mrb[20].mxu0 }
0x1781   :  { %v2180_v26 = vpop.f32.mrb[21].mxu0 }
0x1782   :  { %v2181_v57 = vadd.f32 %v2180_v26, %v5752_v39 }
0x1786   :  { %v5739_v56 = vpop.f32.mrb[14].mxu1 }
0x1787   :  { %v5741_v15 = vpop.f32.mrb[15].mxu1 }
0x1788   :  { %v2098_v45 = vadd.f32 %v5741_v15, %v5752_v39 }
0x1796   :  { %v2265_v3 = vpop.f32.mrb[16].mxu1 }
0x1797   :  { %v2270_v5 = vadd.f32 %v2265_v3, %v1608_v55  ;;  %v2267_v6 = vpop.f32.mrb[17].mxu1 }
0x1798   :  { %v2271_v8 = vadd.f32 %v2267_v6, %v2181_v57 }
0x1799   :  { %4840 = vtanh.f32 %v2270_v5  ;;  %v3933_v35 = vmul.f32 -1.442695, %v2270_v5 }
0x179a   :  { %4842 = vtanh.f32 %v2271_v8  ;;  %v3934_v31 = vmul.f32 -1.442695, %v2271_v8 }
0x179b   :  { %4844 = vpow2.f32 %v3933_v35 }
0x179c   :  { %4846 = vpow2.f32 %v3934_v31 }
0x17a3   :  { %v4841_v9 = vpop.eup %4840 }
0x17a4   :  { %v4843_v27 = vpop.eup %4842  ;;  %2281 = vrot.lane.b32.xlu1 %v4841_v9, %s5068_s3 }
0x17a5   :  { %2305 = vrot.lane.b32.xlu0 %v4843_v27, %s5068_s3  ;;  %v4845_v32 = vpop.eup %4844 }
0x17a6   :  { %v4847_v30 = vpop.eup %4846  ;;  %v2275_v16 = vadd.f32 1.0, %v4845_v32 }
0x17a7   :  { %v2299_v18 = vadd.f32 1.0, %v4847_v30 }
0x17a8   :  { %4848 = vrcp.f32 %v2275_v16 }
0x17a9   :  { %4850 = vrcp.f32 %v2299_v18 }
0x17b2   :  { %v4849_v2 = vpop.eup %4848 }
0x17b3   :  { %v4851_v43 = vpop.eup %4850  ;;  %v2279_v21 = vmul.f32 0.0, %v4849_v2 }
0x17b4   :  { %v2303_v23 = vmul.f32 0.0, %v4851_v43 }
0x1816   :  { %v2282_v28 = vpop.permute.xlu1 %2281 }
0x1817   :  { %v2284_v17 = vmul.f32 %v4849_v2, %v2282_v28  ;;  %v2306_v7 = vpop.permute.xlu0 %2305 }
0x1818   :  { %v2308_v40 = vmul.f32 %v4851_v43, %v2306_v7 }
0x1819   :  { %2286 = vrot.lane.b32.xlu1 %v2284_v17, %s5069_s11 }
0x181a   :  { %2310 = vrot.lane.b32.xlu0 %v2308_v40, %s5069_s11 }
0x188b   :  { %v2287_v25 = vpop.permute.xlu1 %2286 }
0x188c   :  { %v2289_v22 = vadd.f32 %v2287_v25, %v2279_v21  ;;  %v2311_v46 = vpop.permute.xlu0 %2310 }
0x188d   :  { %v2313_v33 = vadd.f32 %v2311_v46, %v2303_v23 }
0x188e   :  { %4852 = vtanh.f32 %v2289_v22 }
0x188f   :  { %4854 = vtanh.f32 %v2313_v33 }
0x1898   :  { %v4853_v34 = vpop.eup %4852 }
0x1899   :  { %v4855_v36 = vpop.eup %4854  ;;  %2292 = vrot.lane.b32.xlu1 %v4853_v34, %s5068_s3 }
0x189a   :  { %2316 = vrot.lane.b32.xlu0 %v4855_v36, %s5068_s3 }
0x190b   :  { %v2293_v63 = vpop.permute.xlu1 %2292 }
0x190c   :  { %v2295_v47 = vmul.f32 %v4849_v2, %v2293_v63  ;;  %v2317_v12 = vpop.permute.xlu0 %2316 }
0x190d   :  { %v2319_v51 = vmul.f32 %v4851_v43, %v2317_v12  ;;  %v2019_v12 = vadd.f32 %v5731_v11, %v5752_v39 }
0x190e   :  { %2321 = vrot.lane.b32.xlu1 %v2295_v47, %s5069_s11  ;;  %v1773_v47 = vadd.f32 %v5725_v1, %v5748_v61 }
0x190f   :  { %2325 = vrot.lane.b32.xlu0 %v2319_v51, %s5068_s3 }
0x1980   :  { %v5764_v4 = vpop.permute.xlu1 %2321 }
0x1981   :  { %v5766_v42 = vpop.permute.xlu0 %2325 }
0x1982   :  { %v2328_v44 = vsel %vm343_vm2, %v5764_v4, %v5766_v42 }
0x1983   :  { %3935 = vmatmul.mubr.msk.f32.vlgmr.msra.gmra.mrb[22].mxu0 %vm206_vm3, %v2328_v44 }
0x1984   :  { %4495 = vmatpush1.bf16.msra.mxu0 %v5666_v29  ;;  %2662 = vmatprep.mubr.f32.mxu0 %v5067_v0 }
0x1985   :  { %4497 = vmatprep.subr.bf16.mxu0 %v5670_v10 }
0x1988   :  { %4499 = vmatpush1.bf16.msra.mxu0 %v5678_v37 }
0x1989   :  { %4501 = vmatprep.subr.bf16.mxu0 %v5681_v41 }
0x198c   :  { %4503 = vmatpush1.bf16.msra.mxu0 %v5687_v52 }
0x198d   :  { %4505 = vmatprep.subr.bf16.mxu0 %v5691_v53 }
0x1990   :  { %4507 = vmatpush1.bf16.msra.mxu0 %v5696_v54 }
0x1991   :  { %4525 = vmatprep.subr.bf16.mxu0 %v5661_v20 }
0x1a56   :  { %v2398_v26 = vpop.f32.mrb[22].mxu0 }
0x1a57   :  { %v2403_v38 = vadd.f32 %v2398_v26, %v1687_v50  ;;  %v2400_v55 = vpop.f32.mrb[23].mxu0 }
0x1a58   :  { %v2404_v57 = vadd.f32 %v2400_v55, %v2098_v45 }
0x1a59   :  { %4856 = vtanh.f32 %v2403_v38  ;;  %v3936_v6 = vmul.f32 -1.442695, %v2403_v38 }
0x1a5a   :  { %4858 = vtanh.f32 %v2404_v57  ;;  %v3937_v8 = vmul.f32 -1.442695, %v2404_v57 }
0x1a5b   :  { %4860 = vpow2.f32 %v3936_v6 }
0x1a5c   :  { %4862 = vpow2.f32 %v3937_v8 }
0x1a63   :  { %v4857_v3 = vpop.eup %4856 }
0x1a64   :  { %v4859_v5 = vpop.eup %4858  ;;  %2414 = vrot.lane.b32.xlu1 %v4857_v3, %s5068_s3 }
0x1a65   :  { %2438 = vrot.lane.b32.xlu0 %v4859_v5, %s5068_s3  ;;  %v4861_v58 = vpop.eup %4860 }
0x1a66   :  { %v4863_v9 = vpop.eup %4862  ;;  %v2408_v27 = vadd.f32 1.0, %v4861_v58 }
0x1a67   :  { %v2432_v15 = vadd.f32 1.0, %v4863_v9 }
0x1a68   :  { %4864 = vrcp.f32 %v2408_v27 }
0x1a69   :  { %4866 = vrcp.f32 %v2432_v15 }
0x1a72   :  { %v4865_v35 = vpop.eup %4864 }
0x1a73   :  { %v4867_v32 = vpop.eup %4866  ;;  %v2412_v2 = vmul.f32 %v4865_v35, %v2289_v22 }
0x1a74   :  { %v2436_v43 = vmul.f32 %v4867_v32, %v2313_v33 }
0x1ad6   :  { %v2415_v31 = vpop.permute.xlu1 %2414 }
0x1ad7   :  { %v2417_v30 = vmul.f32 %v4865_v35, %v2415_v31  ;;  %v2439_v16 = vpop.permute.xlu0 %2438 }
0x1ad8   :  { %v2441_v18 = vmul.f32 %v4867_v32, %v2439_v16 }
0x1ad9   :  { %2419 = vrot.lane.b32.xlu1 %v2417_v30, %s5069_s11 }
0x1ada   :  { %2443 = vrot.lane.b32.xlu0 %v2441_v18, %s5069_s11 }
0x1b4b   :  { %v2420_v28 = vpop.permute.xlu1 %2419 }
0x1b4c   :  { %v2422_v17 = vadd.f32 %v2420_v28, %v2412_v2  ;;  %v2444_v7 = vpop.permute.xlu0 %2443 }
0x1b4d   :  { %v2446_v40 = vadd.f32 %v2444_v7, %v2436_v43 }
0x1b4e   :  { %4868 = vtanh.f32 %v2422_v17 }
0x1b4f   :  { %4870 = vtanh.f32 %v2446_v40 }
0x1b58   :  { %v4869_v21 = vpop.eup %4868 }
0x1b59   :  { %v4871_v25 = vpop.eup %4870  ;;  %2425 = vrot.lane.b32.xlu1 %v4869_v21, %s5068_s3 }
0x1b5a   :  { %2449 = vrot.lane.b32.xlu0 %v4871_v25, %s5068_s3 }
0x1bcb   :  { %v2426_v23 = vpop.permute.xlu1 %2425 }
0x1bcc   :  { %v2428_v46 = vmul.f32 %v4865_v35, %v2426_v23  ;;  %v2450_v34 = vpop.permute.xlu0 %2449 }
0x1bcd   :  { %v2452_v36 = vmul.f32 %v4867_v32, %v2450_v34  ;;  %v1933_v34 = vadd.f32 %v5735_v59, %v5752_v39 }
0x1bce   :  { %2454 = vrot.lane.b32.xlu1 %v2428_v46, %s5069_s11  ;;  %v1852_v46 = vadd.f32 %v5721_v24, %v5748_v61 }
0x1bcf   :  { %2458 = vrot.lane.b32.xlu0 %v2452_v36, %s5068_s3 }
0x1c40   :  { %v5793_v22 = vpop.permute.xlu1 %2454 }
0x1c41   :  { %v5795_v33 = vpop.permute.xlu0 %2458 }
0x1c42   :  { %v2461_v63 = vsel %vm343_vm2, %v5793_v22, %v5795_v33 }
0x1c43   :  { %3938 = vmatmul.mubr.msk.f32.vlgmr.msra.gmra.mrb[18].mxu1 %vm206_vm3, %v2461_v63 }
0x1c44   :  { %4511 = vmatpush1.bf16.msra.mxu1 %v5666_v29  ;;  %2795 = vmatprep.mubr.f32.mxu1 %v5067_v0 }
0x1c45   :  { %4513 = vmatprep.subr.bf16.mxu1 %v5670_v10 }
0x1c48   :  { %4515 = vmatpush1.bf16.msra.mxu1 %v5678_v37 }
0x1c49   :  { %4517 = vmatprep.subr.bf16.mxu1 %v5681_v41 }
0x1c4c   :  { %4519 = vmatpush1.bf16.msra.mxu1 %v5687_v52 }
0x1c4d   :  { %4521 = vmatprep.subr.bf16.mxu1 %v5691_v53 }
0x1c50   :  { %4523 = vmatpush1.bf16.msra.mxu1 %v5696_v54 }
0x1c51   :  { %4541 = vmatprep.subr.bf16.mxu1 %v5661_v20 }
0x1d16   :  { %v2531_v51 = vpop.f32.mrb[18].mxu1 }
0x1d17   :  { %v2536_v44 = vadd.f32 %v2531_v51, %v1773_v47  ;;  %v2533_v50 = vpop.f32.mrb[19].mxu1 }
0x1d18   :  { %v2537_v45 = vadd.f32 %v2533_v50, %v2019_v12 }
0x1d19   :  { %4872 = vtanh.f32 %v2536_v44  ;;  %v3939_v55 = vmul.f32 -1.442695, %v2536_v44 }
0x1d1a   :  { %4874 = vtanh.f32 %v2537_v45  ;;  %v3940_v57 = vmul.f32 -1.442695, %v2537_v45 }
0x1d1b   :  { %4876 = vpow2.f32 %v3939_v55 }
0x1d1c   :  { %4878 = vpow2.f32 %v3940_v57 }
0x1d23   :  { %v4873_v26 = vpop.eup %4872 }
0x1d24   :  { %v4875_v38 = vpop.eup %4874  ;;  %2547 = vrot.lane.b32.xlu1 %v4873_v26, %s5068_s3 }
0x1d25   :  { %2571 = vrot.lane.b32.xlu0 %v4875_v38, %s5068_s3  ;;  %v4877_v1 = vpop.eup %4876 }
0x1d26   :  { %v4879_v3 = vpop.eup %4878  ;;  %v2541_v5 = vadd.f32 1.0, %v4877_v1 }
0x1d27   :  { %v2565_v11 = vadd.f32 1.0, %v4879_v3 }
0x1d28   :  { %4880 = vrcp.f32 %v2541_v5 }
0x1d29   :  { %4882 = vrcp.f32 %v2565_v11 }
0x1d32   :  { %v4881_v6 = vpop.eup %4880 }
0x1d33   :  { %v4883_v58 = vpop.eup %4882  ;;  %v2545_v35 = vmul.f32 %v4881_v6, %v2422_v17 }
0x1d34   :  { %v2569_v32 = vmul.f32 %v4883_v58, %v2446_v40 }
0x1d96   :  { %v2548_v8 = vpop.permute.xlu1 %2547 }
0x1d97   :  { %v2550_v9 = vmul.f32 %v4881_v6, %v2548_v8  ;;  %v2572_v27 = vpop.permute.xlu0 %2571 }
0x1d98   :  { %v2574_v15 = vmul.f32 %v4883_v58, %v2572_v27 }
0x1d99   :  { %2552 = vrot.lane.b32.xlu1 %v2550_v9, %s5069_s11 }
0x1d9a   :  { %2576 = vrot.lane.b32.xlu0 %v2574_v15, %s5069_s11 }
0x1e0b   :  { %v2553_v31 = vpop.permute.xlu1 %2552 }
0x1e0c   :  { %v2555_v30 = vadd.f32 %v2553_v31, %v2545_v35  ;;  %v2577_v16 = vpop.permute.xlu0 %2576 }
0x1e0d   :  { %v2579_v18 = vadd.f32 %v2577_v16, %v2569_v32 }
0x1e0e   :  { %4884 = vtanh.f32 %v2555_v30 }
0x1e0f   :  { %4886 = vtanh.f32 %v2579_v18 }
0x1e18   :  { %v4885_v2 = vpop.eup %4884 }
0x1e19   :  { %v4887_v28 = vpop.eup %4886  ;;  %2558 = vrot.lane.b32.xlu1 %v4885_v2, %s5068_s3 }
0x1e1a   :  { %2582 = vrot.lane.b32.xlu0 %v4887_v28, %s5068_s3 }
0x1e8b   :  { %v2559_v43 = vpop.permute.xlu1 %2558 }
0x1e8c   :  { %v2561_v7 = vmul.f32 %v4881_v6, %v2559_v43  ;;  %v2583_v21 = vpop.permute.xlu0 %2582  ;;  %v1931_v43 = vadd.f32 %v5733_v49, %v5748_v61 }
0x1e8d   :  { %v2585_v25 = vmul.f32 %v4883_v58, %v2583_v21 }
0x1e8e   :  { %2587 = vrot.lane.b32.xlu1 %v2561_v7, %s5069_s11  ;;  %v1854_v7 = vadd.f32 %v5723_v14, %v5752_v39 }
0x1e8f   :  { %2591 = vrot.lane.b32.xlu0 %v2585_v25, %s5068_s3 }
0x1f00   :  { %v5822_v17 = vpop.permute.xlu1 %2587 }
0x1f01   :  { %v5824_v40 = vpop.permute.xlu0 %2591 }
0x1f02   :  { %v2594_v23 = vsel %vm343_vm2, %v5822_v17, %v5824_v40 }
0x1f03   :  { %3941 = vmatmul.mubr.msk.f32.vlgmr.msra.gmra.mrb[24].mxu0 %vm206_vm3, %v2594_v23 }
0x1f04   :  { %4527 = vmatpush1.bf16.msra.mxu0 %v5666_v29  ;;  %2928 = vmatprep.mubr.f32.mxu0 %v5067_v0 }
0x1f05   :  { %4529 = vmatprep.subr.bf16.mxu0 %v5670_v10 }
0x1f08   :  { %4531 = vmatpush1.bf16.msra.mxu0 %v5678_v37 }
0x1f09   :  { %4533 = vmatprep.subr.bf16.mxu0 %v5681_v41 }
0x1f0c   :  { %4535 = vmatpush1.bf16.msra.mxu0 %v5687_v52 }
0x1f0d   :  { %4537 = vmatprep.subr.bf16.mxu0 %v5691_v53 }
0x1f10   :  { %4539 = vmatpush1.bf16.msra.mxu0 %v5696_v54 }
0x1f11   :  { %4557 = vmatprep.subr.bf16.mxu0 %v5661_v20 }
0x1fd6   :  { %v2664_v36 = vpop.f32.mrb[24].mxu0 }
0x1fd7   :  { %v2669_v63 = vadd.f32 %v2664_v36, %v1852_v46  ;;  %v2666_v47 = vpop.f32.mrb[25].mxu0 }
0x1fd8   :  { %v2670_v12 = vadd.f32 %v2666_v47, %v1933_v34 }
0x1fd9   :  { %4888 = vtanh.f32 %v2669_v63  ;;  %v3942_v50 = vmul.f32 -1.442695, %v2669_v63 }
0x1fda   :  { %4890 = vtanh.f32 %v2670_v12  ;;  %v3943_v20 = vmul.f32 -1.442695, %v2670_v12 }
0x1fdb   :  { %4892 = vpow2.f32 %v3942_v50 }
0x1fdc   :  { %4894 = vpow2.f32 %v3943_v20 }
0x1fe3   :  { %v4889_v51 = vpop.eup %4888 }
0x1fe4   :  { %v4891_v44 = vpop.eup %4890  ;;  %2680 = vrot.lane.b32.xlu1 %v4889_v51, %s5068_s3 }
0x1fe5   :  { %2704 = vrot.lane.b32.xlu0 %v4891_v44, %s5068_s3  ;;  %v4893_v24 = vpop.eup %4892 }
0x1fe6   :  { %v4895_v45 = vpop.eup %4894  ;;  %v2674_v26 = vadd.f32 1.0, %v4893_v24 }
0x1fe7   :  { %v2698_v59 = vadd.f32 1.0, %v4895_v45 }
0x1fe8   :  { %4896 = vrcp.f32 %v2674_v26 }
0x1fe9   :  { %4898 = vrcp.f32 %v2698_v59 }
0x1ff2   :  { %v4897_v38 = vpop.eup %4896 }
0x1ff3   :  { %v4899_v57 = vpop.eup %4898  ;;  %v2678_v11 = vmul.f32 %v4897_v38, %v2555_v30 }
0x1ff4   :  { %v2702_v8 = vmul.f32 %v4899_v57, %v2579_v18 }
0x2056   :  { %v2681_v55 = vpop.permute.xlu1 %2680 }
0x2057   :  { %v2683_v1 = vmul.f32 %v4897_v38, %v2681_v55  ;;  %v2705_v3 = vpop.permute.xlu0 %2704 }
0x2058   :  { %v2707_v5 = vmul.f32 %v4899_v57, %v2705_v3 }
0x2059   :  { %2685 = vrot.lane.b32.xlu1 %v2683_v1, %s5069_s11 }
0x205a   :  { %2709 = vrot.lane.b32.xlu0 %v2707_v5, %s5069_s11 }
0x20cb   :  { %v2686_v6 = vpop.permute.xlu1 %2685 }
0x20cc   :  { %v2688_v58 = vadd.f32 %v2686_v6, %v2678_v11  ;;  %v2710_v9 = vpop.permute.xlu0 %2709 }
0x20cd   :  { %v2712_v27 = vadd.f32 %v2710_v9, %v2702_v8 }
0x20ce   :  { %4900 = vtanh.f32 %v2688_v58 }
0x20cf   :  { %4902 = vtanh.f32 %v2712_v27 }
0x20d8   :  { %v4901_v15 = vpop.eup %4900 }
0x20d9   :  { %v4903_v35 = vpop.eup %4902  ;;  %2691 = vrot.lane.b32.xlu1 %v4901_v15, %s5068_s3 }
0x20da   :  { %2715 = vrot.lane.b32.xlu0 %v4903_v35, %s5068_s3 }
0x214b   :  { %v2692_v31 = vpop.permute.xlu1 %2691 }
0x214c   :  { %v2694_v32 = vmul.f32 %v4897_v38, %v2692_v31  ;;  %v2716_v16 = vpop.permute.xlu0 %2715  ;;  %v2017_v31 = vadd.f32 %v5729_v48, %v5748_v61 }
0x214d   :  { %v2718_v2 = vmul.f32 %v4899_v57, %v2716_v16 }
0x214e   :  { %2720 = vrot.lane.b32.xlu1 %v2694_v32, %s5069_s11 }
0x214f   :  { %2724 = vrot.lane.b32.xlu0 %v2718_v2, %s5068_s3 }
0x21c0   :  { %v5851_v30 = vpop.permute.xlu1 %2720 }
0x21c1   :  { %v5853_v18 = vpop.permute.xlu0 %2724 }
0x21c2   :  { %v2727_v28 = vsel %vm343_vm2, %v5851_v30, %v5853_v18 }
0x21c3   :  { %3944 = vmatmul.mubr.msk.f32.vlgmr.msra.gmra.mrb[20].mxu1 %vm206_vm3, %v2727_v28 }
0x21c4   :  { %4543 = vmatpush1.bf16.msra.mxu1 %v5666_v29  ;;  %3061 = vmatprep.mubr.f32.mxu1 %v5067_v0 }
0x21c5   :  { %4545 = vmatprep.subr.bf16.mxu1 %v5670_v10 }
0x21c8   :  { %4547 = vmatpush1.bf16.msra.mxu1 %v5678_v37 }
0x21c9   :  { %4549 = vmatprep.subr.bf16.mxu1 %v5681_v41 }
0x21cc   :  { %4551 = vmatpush1.bf16.msra.mxu1 %v5687_v52 }
0x21cd   :  { %4553 = vmatprep.subr.bf16.mxu1 %v5691_v53 }
0x21d0   :  { %4555 = vmatpush1.bf16.msra.mxu1 %v5696_v54 }
0x2296   :  { %v2797_v21 = vpop.f32.mrb[20].mxu1 }
0x2297   :  { %v2802_v25 = vadd.f32 %v2797_v21, %v1931_v43  ;;  %v2799_v23 = vpop.f32.mrb[21].mxu1 }
0x2298   :  { %v2803_v46 = vadd.f32 %v2799_v23, %v1854_v7 }
0x2299   :  { %4904 = vtanh.f32 %v2802_v25  ;;  %v3945_v63 = vmul.f32 -1.442695, %v2802_v25 }
0x229a   :  { %4906 = vtanh.f32 %v2803_v46  ;;  %v3946_v47 = vmul.f32 -1.442695, %v2803_v46 }
0x229b   :  { %4908 = vpow2.f32 %v3945_v63 }
0x229c   :  { %4910 = vpow2.f32 %v3946_v47 }
0x22a3   :  { %v4905_v34 = vpop.eup %4904 }
0x22a4   :  { %v4907_v36 = vpop.eup %4906  ;;  %2813 = vrot.lane.b32.xlu1 %v4905_v34, %s5068_s3 }
0x22a5   :  { %2837 = vrot.lane.b32.xlu0 %v4907_v36, %s5068_s3  ;;  %v4909_v49 = vpop.eup %4908 }
0x22a6   :  { %v4911_v12 = vpop.eup %4910  ;;  %v2807_v51 = vadd.f32 1.0, %v4909_v49 }
0x22a7   :  { %v2831_v14 = vadd.f32 1.0, %v4911_v12 }
0x22a8   :  { %4912 = vrcp.f32 %v2807_v51 }
0x22a9   :  { %4914 = vrcp.f32 %v2831_v14 }
0x22b2   :  { %v4913_v44 = vpop.eup %4912 }
0x22b3   :  { %v4915_v20 = vpop.eup %4914  ;;  %v2811_v59 = vmul.f32 %v4913_v44, %v2688_v58 }
0x22b4   :  { %v2835_v55 = vmul.f32 %v4915_v20, %v2712_v27 }
0x2316   :  { %v2814_v50 = vpop.permute.xlu1 %2813 }
0x2317   :  { %v2816_v24 = vmul.f32 %v4913_v44, %v2814_v50  ;;  %v2838_v45 = vpop.permute.xlu0 %2837 }
0x2318   :  { %v2840_v26 = vmul.f32 %v4915_v20, %v2838_v45 }
0x2319   :  { %2818 = vrot.lane.b32.xlu1 %v2816_v24, %s5069_s11 }
0x231a   :  { %2842 = vrot.lane.b32.xlu0 %v2840_v26, %s5069_s11 }
0x238b   :  { %v2819_v38 = vpop.permute.xlu1 %2818 }
0x238c   :  { %v2821_v57 = vadd.f32 %v2819_v38, %v2811_v59  ;;  %v2843_v1 = vpop.permute.xlu0 %2842  ;;  %v2096_v38 = vadd.f32 %v5739_v56, %v5748_v61 }
0x238d   :  { %v2845_v3 = vadd.f32 %v2843_v1, %v2835_v55  ;;  %v1689_v55 = vadd.f32 %v5717_v60, %v5752_v39 }
0x238e   :  { %4916 = vtanh.f32 %v2821_v57 }
0x238f   :  { %4918 = vtanh.f32 %v2845_v3 }
0x2398   :  { %v4917_v5 = vpop.eup %4916 }
0x2399   :  { %v4919_v11 = vpop.eup %4918  ;;  %2824 = vrot.lane.b32.xlu1 %v4917_v5, %s5068_s3 }
0x239a   :  { %2848 = vrot.lane.b32.xlu0 %v4919_v11, %s5068_s3 }
0x240b   :  { %v2825_v6 = vpop.permute.xlu1 %2824 }
0x240c   :  { %v2827_v8 = vmul.f32 %v4913_v44, %v2825_v6  ;;  %v2849_v9 = vpop.permute.xlu0 %2848 }
0x240d   :  { %v2851_v15 = vmul.f32 %v4915_v20, %v2849_v9 }
0x240e   :  { %2853 = vrot.lane.b32.xlu1 %v2827_v8, %s5069_s11 }
0x240f   :  { %2857 = vrot.lane.b32.xlu0 %v2851_v15, %s5068_s3 }
0x2480   :  { %v5879_v58 = vpop.permute.xlu1 %2853 }
0x2481   :  { %v5881_v27 = vpop.permute.xlu0 %2857 }
0x2482   :  { %v2860_v35 = vsel %vm343_vm2, %v5879_v58, %v5881_v27 }
0x2483   :  { %3947 = vmatmul.mubr.msk.f32.vlgmr.msra.gmra.mrb[26].mxu0 %vm206_vm3, %v2860_v35 }
0x2484   :  { %4559 = vmatpush1.bf16.msra.mxu0 %v5666_v29  ;;  %3194 = vmatprep.mubr.f32.mxu0 %v5067_v0  ;;  %v1775_v29 = vadd.f32 %v5727_v13, %v5752_v39 }
0x2485   :  { %4561 = vmatprep.subr.bf16.mxu0 %v5670_v10 }
0x2488   :  { %4563 = vmatpush1.bf16.msra.mxu0 %v5678_v37 }
0x2489   :  { %4565 = vmatprep.subr.bf16.mxu0 %v5681_v41 }
0x248c   :  { %4567 = vmatpush1.bf16.msra.mxu0 %v5687_v52 }
0x248d   :  { %4569 = vmatprep.subr.bf16.mxu0 %v5691_v53 }
0x2490   :  { %4571 = vmatpush1.bf16.msra.mxu0 %v5696_v54 }
0x2556   :  { %v2930_v32 = vpop.f32.mrb[26].mxu0 }
0x2557   :  { %v2935_v16 = vadd.f32 %v2930_v32, %v2017_v31  ;;  %v2932_v2 = vpop.f32.mrb[27].mxu0 }
0x2558   :  { %v2936_v10 = vadd.f32 %v2932_v2, %v1775_v29 }
0x2559   :  { %4920 = vtanh.f32 %v2935_v16  ;;  %v3948_v52 = vmul.f32 -1.442695, %v2935_v16 }
0x255a   :  { %4922 = vtanh.f32 %v2936_v10  ;;  %v3949_v53 = vmul.f32 -1.442695, %v2936_v10 }
0x255b   :  { %4924 = vpow2.f32 %v3948_v52 }
0x255c   :  { %4926 = vpow2.f32 %v3949_v53 }
0x2563   :  { %v4921_v37 = vpop.eup %4920 }
0x2564   :  { %v4923_v41 = vpop.eup %4922  ;;  %2946 = vrot.lane.b32.xlu1 %v4921_v37, %s5068_s3 }
0x2565   :  { %2970 = vrot.lane.b32.xlu0 %v4923_v41, %s5068_s3  ;;  %v4925_v54 = vpop.eup %4924 }
0x2566   :  { %v4927_v48 = vpop.eup %4926  ;;  %v2940_v28 = vadd.f32 1.0, %v4925_v54 }
0x2567   :  { %v2964_v13 = vadd.f32 1.0, %v4927_v48 }
0x2568   :  { %4928 = vrcp.f32 %v2940_v28 }
0x2569   :  { %4930 = vrcp.f32 %v2964_v13 }
0x2572   :  { %v4929_v43 = vpop.eup %4928 }
0x2573   :  { %v4931_v21 = vpop.eup %4930  ;;  %v2944_v34 = vmul.f32 %v4929_v43, %v2821_v57 }
0x2574   :  { %v2968_v63 = vmul.f32 %v4931_v21, %v2845_v3 }
0x25d6   :  { %v2947_v7 = vpop.permute.xlu1 %2946 }
0x25d7   :  { %v2949_v25 = vmul.f32 %v4929_v43, %v2947_v7  ;;  %v2971_v23 = vpop.permute.xlu0 %2970  ;;  %v3252_v7 = vld [vmem:[%s6133_s7 + $0x8] sm:$0xff] }
0x25d8   :  { %v2973_v46 = vmul.f32 %v4931_v21, %v2971_v23  ;;  %v3253_v23 = vld [vmem:[%s6133_s7 + $0x10] sm:$0xff] }
0x25d9   :  { %2951 = vrot.lane.b32.xlu1 %v2949_v25, %s5069_s11  ;;  %v5070_v25 = vmov 0.0|0.0  }
0x25da   :  { %2975 = vrot.lane.b32.xlu0 %v2973_v46, %s5069_s11  ;;  %4584 = vmatprep.subr.bf16.mxu0 %v5070_v25  ;;  %v3254_v46 = vld [vmem:[%s6133_s7 + $0x18] sm:$0xff] }
0x25db   :  { %4572 = vmatprep.subr.bf16.mxu1 %v5070_v25 }
0x264b   :  { %v2952_v36 = vpop.permute.xlu1 %2951 }
0x264c   :  { %v2954_v47 = vadd.f32 %v2952_v36, %v2944_v34  ;;  %v2976_v49 = vpop.permute.xlu0 %2975  ;;  %v5949_v34 = vpack.c.bf16 %v3254_v46, %v3253_v23  ;;  %v3255_v36 = vld [vmem:[%s6133_s7 + $0x20] sm:$0xff] }
0x264d   :  { %v2978_v12 = vadd.f32 %v2976_v49, %v2968_v63  ;;  %v3256_v63 = vld [vmem:[%s6133_s7 + $0x28] sm:$0xff] }
0x264e   :  { %4932 = vtanh.f32 %v2954_v47 }
0x264f   :  { %4934 = vtanh.f32 %v2978_v12 }
0x2658   :  { %v4933_v51 = vpop.eup %4932 }
0x2659   :  { %v4935_v14 = vpop.eup %4934  ;;  %2957 = vrot.lane.b32.xlu1 %v4933_v51, %s5068_s3 }
0x265a   :  { %2981 = vrot.lane.b32.xlu0 %v4935_v14, %s5068_s3 }
0x26cb   :  { %v2958_v44 = vpop.permute.xlu1 %2957 }
0x26cc   :  { %v2960_v50 = vmul.f32 %v4929_v43, %v2958_v44  ;;  %v2982_v20 = vpop.permute.xlu0 %2981  ;;  %v3251_v43 = vld [vmem:[%s6133_s7] sm:$0xff]  ;;  %v3257_v44 = vld [vmem:[%s6133_s7 + $0x30] sm:$0xff] }
0x26cd   :  { %v2984_v24 = vmul.f32 %v4931_v21, %v2982_v20  ;;  %v5937_v21 = vpack.c.bf16 %v3252_v7, %v3251_v43 }
0x26ce   :  { %2986 = vrot.lane.b32.xlu1 %v2960_v50, %s5069_s11  ;;  %v3258_v50 = vld [vmem:[%s6133_s7 + $0x38] sm:$0xff] }
0x26cf   :  { %2990 = vrot.lane.b32.xlu0 %v2984_v24, %s5068_s3  ;;  %v5970_v20 = vpack.c.bf16 %v3258_v50, %v3257_v44 }
0x2740   :  { %v5907_v45 = vpop.permute.xlu1 %2986 }
0x2741   :  { %v5909_v26 = vpop.permute.xlu0 %2990 }
0x2742   :  { %v2993_v59 = vsel %vm343_vm2, %v5907_v45, %v5909_v26 }
0x2743   :  { %3950 = vmatmul.mubr.msk.f32.vlgmr.msra.gmra.mrb[22].mxu1 %vm206_vm3, %v2993_v59 }
0x2744   :  { %4574 = vmatpush3.bf16.msra.mxu1 %v5937_v21  ;;  %4052 = vmatprep.mubr.msk.f32.mxu1 %vm5071_vm9, %v5067_v0 }
0x2745   :  { %4575 = vmatprep.subr.bf16.mxu1 %v5070_v25 }
0x2748   :  { %4577 = vmatpush3.bf16.msra.mxu1 %v5949_v34 }
0x2749   :  { %4578 = vmatprep.subr.bf16.mxu1 %v5070_v25 }
0x2816   :  { %v3063_v57 = vpop.f32.mrb[22].mxu1 }
0x2817   :  { %v3068_v1 = vadd.f32 %v3063_v57, %v2096_v38  ;;  %v3065_v3 = vpop.f32.mrb[23].mxu1 }
0x2818   :  { %v3069_v5 = vadd.f32 %v3065_v3, %v1689_v55 }
0x2819   :  { %4936 = vtanh.f32 %v3068_v1  ;;  %v3951_v8 = vmul.f32 -1.442695, %v3068_v1 }
0x281a   :  { %4938 = vtanh.f32 %v3069_v5  ;;  %v3952_v9 = vmul.f32 -1.442695, %v3069_v5 }
0x281b   :  { %4940 = vpow2.f32 %v3951_v8 }
0x281c   :  { %4942 = vpow2.f32 %v3952_v9 }
0x2823   :  { %v4937_v11 = vpop.eup %4936 }
0x2824   :  { %v4939_v6 = vpop.eup %4938  ;;  %3079 = vrot.lane.b32.xlu1 %v4937_v11, %s5068_s3 }
0x2825   :  { %3103 = vrot.lane.b32.xlu0 %v4939_v6, %s5068_s3  ;;  %v4941_v56 = vpop.eup %4940 }
0x2826   :  { %v4943_v15 = vpop.eup %4942  ;;  %v3073_v35 = vadd.f32 1.0, %v4941_v56  ;;  %v6040_v56 = vld [vmem:[%s6134_s8] sm:$0x1]  ;;  %s5072_s8 = smov [#allocation8]  }
0x2827   :  { %v3097_v60 = vadd.f32 1.0, %v4943_v15  ;;  %s3883_s26 = sshll.u32 %s5072_s8, 4  ;;  %s3884_s26 = int_to_ptr.vmem [resolvable:$true] %s3883_s26 }
0x2828   :  { %4944 = vrcp.f32 %v3073_v35  ;;  %s5034_s1 = scalar_lea.vmem %s3884_s26, 128  ;;  %p5039_p11 = scmp.lt.s32.totalorder %s3884_s26, %s3884_s26 }
0x2829   :  { %4946 = vrcp.f32 %v3097_v60  ;;  %p5035_p10 = scmp.ne.s32.totalorder %s3884_s26, %s5034_s1  ;;  %p5040_p12 = scmp.lt.s32.totalorder %s5034_s1, %s5034_s1 }
0x282b   :  { %p5041_p13 = por %p5040_p12, %p5039_p11 }
0x282d   :  { %p5042_p0 = pnand %p5041_p13, %p5035_p10 }
0x2832   :  { %v4945_v31 = vpop.eup %4944 }
0x2833   :  { %v4947_v32 = vpop.eup %4946  ;;  %v3077_v37 = vmul.f32 %v4945_v31, %v2954_v47  ;;  %v5959_v47 = vpack.c.bf16 %v3256_v63, %v3255_v36 }
0x2834   :  { %v3101_v52 = vmul.f32 %v4947_v32, %v2978_v12 }
0x2835   :  { %4580 = vmatpush3.bf16.msra.mxu1 %v5959_v47 }
0x2836   :  { %4581 = vmatprep.subr.bf16.mxu1 %v5070_v25 }
0x2839   :  { %4583 = vmatpush3.bf16.msra.mxu1 %v5970_v20 }
0x283a   :  { %4596 = vmatprep.subr.bf16.mxu1 %v5070_v25 }
0x2896   :  { %v3080_v29 = vpop.permute.xlu1 %3079 }
0x2897   :  { %v3082_v16 = vmul.f32 %v4945_v31, %v3080_v29  ;;  %v3104_v2 = vpop.permute.xlu0 %3103 }
0x2898   :  { %v3106_v10 = vmul.f32 %v4947_v32, %v3104_v2 }
0x2899   :  { %3084 = vrot.lane.b32.xlu1 %v3082_v16, %s5069_s11 }
0x289a   :  { %3108 = vrot.lane.b32.xlu0 %v3106_v10, %s5069_s11 }
0x290b   :  { %v3085_v41 = vpop.permute.xlu1 %3084 }
0x290c   :  { %v5923_v53 = vadd.f32 %v3085_v41, %v3077_v37  ;;  %v3109_v54 = vpop.permute.xlu0 %3108 }
0x290d   :  { %v5925_v48 = vadd.f32 %v3109_v54, %v3101_v52 }
0x290e   :  { %4948 = vtanh.f32 %v5923_v53 }
0x290f   :  { %4950 = vtanh.f32 %v5925_v48 }
0x2918   :  { %v4949_v28 = vpop.eup %4948 }
0x2919   :  { %v4951_v13 = vpop.eup %4950  ;;  %3090 = vrot.lane.b32.xlu1 %v4949_v28, %s5068_s3 }
0x291a   :  { %3114 = vrot.lane.b32.xlu0 %v4951_v13, %s5068_s3 }
0x298b   :  { %v3091_v49 = vpop.permute.xlu1 %3090 }
0x298c   :  { %v3093_v12 = vmul.f32 %v4945_v31, %v3091_v49  ;;  %v3115_v51 = vpop.permute.xlu0 %3114 }
0x298d   :  { %v3117_v14 = vmul.f32 %v4947_v32, %v3115_v51 }
0x298e   :  { %3119 = vrot.lane.b32.xlu1 %v3093_v12, %s5069_s11 }
0x298f   :  { %3123 = vrot.lane.b32.xlu0 %v3117_v14, %s5068_s3 }
0x2a00   :  { %v5977_v24 = vpop.permute.xlu1 %3119 }
0x2a01   :  { %v3124_v59 = vpop.permute.xlu0 %3123 }
0x2a02   :  { %v3126_v38 = vsel %vm343_vm2, %v5977_v24, %v3124_v59  ;;  %v3341_v55 = vsel %vm343_vm2, %v5793_v22, %v3124_v59  ;;  %v3493_v22 = vsel %vm343_vm2, %v5851_v30, %v5881_v27  ;;  %v3645_v30 = vsel %vm343_vm2, %v5907_v45, %v5824_v40 }
0x2a03   :  { %3953 = vmatmul.mubr.msk.f32.vlgmr.msra.gmra.mrb[28].mxu0 %vm206_vm3, %v3126_v38  ;;  %v3343_v57 = vrot.slane %v3341_v55, 2  ;;  %v3495_v1 = vrot.slane %v3493_v22, 2  ;;  %v3647_v27 = vrot.slane %v3645_v30, 2  ;;  %v2179_v40 = vadd.f32 %v5737_v19, %v5748_v61 }
0x2a04   :  { %4586 = vmatpush3.bf16.msra.mxu0 %v5937_v21  ;;  %4071 = vmatprep.mubr.msk.f32.mxu0 %vm5071_vm9, %v5067_v0  ;;  %v1610_v45 = vadd.f32 %v5719_v62, %v5752_v39 }
0x2a05   :  { %4587 = vmatprep.subr.bf16.mxu0 %v5070_v25 }
0x2a08   :  { %4589 = vmatpush3.bf16.msra.mxu0 %v5949_v34 }
0x2a09   :  { %4590 = vmatprep.subr.bf16.mxu0 %v5070_v25 }
0x2a0c   :  { %4592 = vmatpush3.bf16.msra.mxu0 %v5959_v47 }
0x2a0d   :  { %4593 = vmatprep.subr.bf16.mxu0 %v5070_v25 }
0x2a10   :  { %4595 = vmatpush3.bf16.msra.mxu0 %v5970_v20 }
0x2a11   :  { %4608 = vmatprep.subr.bf16.mxu0 %v5070_v25 }
0x2a13   :  { %4072 = vmatmul.mubr.msk.f32.vlgmr.msra.gmra.mrb[30].mxu0 %vm206_vm3, %v3343_v57 }
0x2a14   :  { %4610 = vmatpush3.bf16.msra.mxu0 %v5937_v21  ;;  %4109 = vmatprep.mubr.msk.f32.mxu0 %vm5071_vm9, %v5067_v0 }
0x2a15   :  { %4611 = vmatprep.subr.bf16.mxu0 %v5070_v25 }
0x2a18   :  { %4613 = vmatpush3.bf16.msra.mxu0 %v5949_v34 }
0x2a19   :  { %4614 = vmatprep.subr.bf16.mxu0 %v5070_v25 }
0x2a1c   :  { %4616 = vmatpush3.bf16.msra.mxu0 %v5959_v47 }
0x2a1d   :  { %4617 = vmatprep.subr.bf16.mxu0 %v5070_v25 }
0x2a20   :  { %4619 = vmatpush3.bf16.msra.mxu0 %v5970_v20 }
0x2a21   :  { %4632 = vmatprep.subr.bf16.mxu0 %v5070_v25 }
0x2a23   :  { %4110 = vmatmul.mubr.msk.f32.vlgmr.msra.gmra.mrb[32].mxu0 %vm206_vm3, %v3495_v1 }
0x2a24   :  { %4634 = vmatpush3.bf16.msra.mxu0 %v5937_v21  ;;  %4147 = vmatprep.mubr.msk.f32.mxu0 %vm5071_vm9, %v5067_v0 }
0x2a25   :  { %4635 = vmatprep.subr.bf16.mxu0 %v5070_v25 }
0x2a28   :  { %4637 = vmatpush3.bf16.msra.mxu0 %v5949_v34 }
0x2a29   :  { %4638 = vmatprep.subr.bf16.mxu0 %v5070_v25 }
0x2a2c   :  { %4640 = vmatpush3.bf16.msra.mxu0 %v5959_v47 }
0x2a2d   :  { %4641 = vmatprep.subr.bf16.mxu0 %v5070_v25 }
0x2a30   :  { %4643 = vmatpush3.bf16.msra.mxu0 %v5970_v20 }
0x2a31   :  { %4656 = vmatprep.subr.bf16.mxu0 %v5070_v25 }
0x2a33   :  { %4148 = vmatmul.mubr.msk.f32.vlgmr.msra.gmra.mrb[34].mxu0 %vm206_vm3, %v3647_v27 }
0x2a34   :  { %4658 = vmatpush3.bf16.msra.mxu0 %v5937_v21  ;;  %4185 = vmatprep.mubr.msk.f32.mxu0 %vm5071_vm9, %v5067_v0 }
0x2a35   :  { %4659 = vmatprep.subr.bf16.mxu0 %v5070_v25 }
0x2a38   :  { %4661 = vmatpush3.bf16.msra.mxu0 %v5949_v34 }
0x2a39   :  { %4662 = vmatprep.subr.bf16.mxu0 %v5070_v25 }
0x2a3c   :  { %4664 = vmatpush3.bf16.msra.mxu0 %v5959_v47 }
0x2a3d   :  { %4665 = vmatprep.subr.bf16.mxu0 %v5070_v25 }
0x2a40   :  { %4667 = vmatpush3.bf16.msra.mxu0 %v5970_v20 }
0x2ad6   :  { %v3196_v3 = vpop.f32.mrb[28].mxu0 }
0x2ad7   :  { %v3201_v5 = vadd.f32 %v3196_v3, %v2179_v40  ;;  %v3198_v11 = vpop.f32.mrb[29].mxu0 }
0x2ad8   :  { %v3202_v6 = vadd.f32 %v3198_v11, %v1610_v45 }
0x2ad9   :  { %4952 = vtanh.f32 %v3201_v5  ;;  %v3954_v32 = vmul.f32 -1.442695, %v3201_v5 }
0x2ada   :  { %4954 = vtanh.f32 %v3202_v6  ;;  %v3955_v16 = vmul.f32 -1.442695, %v3202_v6 }
0x2adb   :  { %4956 = vpow2.f32 %v3954_v32 }
0x2adc   :  { %4958 = vpow2.f32 %v3955_v16 }
0x2ae3   :  { %v4953_v8 = vpop.eup %4952 }
0x2ae4   :  { %v4955_v9 = vpop.eup %4954  ;;  %3212 = vrot.lane.b32.xlu0 %v4953_v8, %s5068_s3 }
0x2ae5   :  { %3236 = vrot.lane.b32.xlu1 %v4955_v9, %s5068_s3  ;;  %v4957_v2 = vpop.eup %4956 }
0x2ae6   :  { %v3412_v19 = vpop.f32.mrb[30].mxu0  ;;  %v4959_v10 = vpop.eup %4958  ;;  %v3206_v37 = vadd.f32 1.0, %v4957_v2 }
0x2ae7   :  { %v3413_v62 = vadd.f32 %v3412_v19, %v6040_v56  ;;  %v4073_v61 = vpop.f32.mrb[31].mxu0  ;;  %v3230_v41 = vadd.f32 1.0, %v4959_v10 }
0x2ae8   :  { %4960 = vrcp.f32 %v3206_v37 }
0x2ae9   :  { %3416 = vst.msk [vmem:[#allocation8 + $0x1] sm:$0x1] %vm3339_vm10, %v3413_v62  ;;  %4962 = vrcp.f32 %v3230_v41 }
0x2af2   :  { %v4961_v52 = vpop.eup %4960 }
0x2af3   :  { %v4963_v28 = vpop.eup %4962  ;;  %v3210_v23 = vmul.f32 %v4961_v52, %v5923_v53 }
0x2af4   :  { %v3234_v36 = vmul.f32 %v4963_v28, %v5925_v48 }
0x2af6   :  { %v3564_v39 = vpop.f32.mrb[32].mxu0 }
0x2af7   :  { %v3565_v15 = vadd.f32 %v3564_v39, %v6040_v56  ;;  %v4111_v35 = vpop.f32.mrb[33].mxu0 }
0x2af9   :  { %3568 = vst.msk [vmem:[#allocation8 + $0x3] sm:$0x1] %vm3339_vm10, %v3565_v15 }
0x2b06   :  { %v3716_v60 = vpop.f32.mrb[34].mxu0 }
0x2b07   :  { %v3717_v31 = vadd.f32 %v3716_v60, %v6040_v56  ;;  %v4149_v29 = vpop.f32.mrb[35].mxu0 }
0x2b09   :  { %3720 = vst.msk [vmem:[#allocation8 + $0x5] sm:$0x1] %vm3339_vm10, %v3717_v31 }
0x2b56   :  { %v3213_v54 = vpop.permute.xlu0 %3212 }
0x2b57   :  { %v3215_v13 = vmul.f32 %v4961_v52, %v3213_v54  ;;  %v3237_v43 = vpop.permute.xlu1 %3236 }
0x2b58   :  { %v3239_v7 = vmul.f32 %v4963_v28, %v3237_v43 }
0x2b59   :  { %3217 = vrot.lane.b32.xlu0 %v3215_v13, %s5069_s11 }
0x2b5a   :  { %3241 = vrot.lane.b32.xlu1 %v3239_v7, %s5069_s11 }
0x2bcb   :  { %v3218_v46 = vpop.permute.xlu0 %3217 }
0x2bcc   :  { %v3220_v63 = vadd.f32 %v3218_v46, %v3210_v23  ;;  %v3242_v49 = vpop.permute.xlu1 %3241 }
0x2bcd   :  { %v3244_v12 = vadd.f32 %v3242_v49, %v3234_v36 }
0x2bce   :  { %4964 = vtanh.f32 %v3220_v63 }
0x2bcf   :  { %4966 = vtanh.f32 %v3244_v12 }
0x2bd8   :  { %v4965_v51 = vpop.eup %4964 }
0x2bd9   :  { %v4967_v14 = vpop.eup %4966  ;;  %3223 = vrot.lane.b32.xlu0 %v4965_v51, %s5068_s3 }
0x2bda   :  { %3247 = vrot.lane.b32.xlu1 %v4967_v14, %s5068_s3 }
0x2c4b   :  { %v3224_v44 = vpop.permute.xlu0 %3223 }
0x2c4c   :  { %v3226_v50 = vmul.f32 %v4961_v52, %v3224_v44  ;;  %v3248_v59 = vpop.permute.xlu1 %3247 }
0x2c4d   :  { %v3250_v38 = vmul.f32 %v4963_v28, %v3248_v59 }
0x2c4e   :  { %3798 = vrot.lane.b32.xlu0 %v3226_v50, %s5069_s11 }
0x2c4f   :  { %3261 = vrot.lane.b32.xlu1 %v3250_v38, %s5068_s3 }
0x2cc0   :  { %v3799_v53 = vpop.permute.xlu0 %3798 }
0x2cc1   :  { %v3801_v48 = vsel %vm343_vm2, %v3799_v53, %v5766_v42  ;;  %v3262_v55 = vpop.permute.xlu1 %3261 }
0x2cc2   :  { %v3803_v57 = vrot.slane %v3801_v48, 2  ;;  %v3264_v22 = vsel %vm343_vm2, %v5764_v4, %v3262_v55  ;;  %v3417_v4 = vsel %vm343_vm2, %v5822_v17, %v5909_v26  ;;  %v3569_v17 = vsel %vm343_vm2, %v5879_v58, %v5853_v18 }
0x2cc3   :  { %v3266_v1 = vrot.slane %v3264_v22, 2  ;;  %v3419_v42 = vrot.slane %v3417_v4, 2  ;;  %v3571_v26 = vrot.slane %v3569_v17, 2  ;;  %v3721_v18 = vsel %vm343_vm2, %v5977_v24, %v5795_v33 }
0x2cc4   :  { %4186 = vmatmul.mubr.msk.f32.vlgmr.msra.gmra.mrb[36].mxu0 %vm206_vm3, %v3803_v57  ;;  %v3723_v58 = vrot.slane %v3721_v18, 2 }
0x2cc5   :  { %4053 = vmatmul.mubr.msk.f32.vlgmr.msra.gmra.mrb[24].mxu1 %vm206_vm3, %v3266_v1 }
0x2cc6   :  { %4598 = vmatpush3.bf16.msra.mxu1 %v5937_v21  ;;  %4090 = vmatprep.mubr.msk.f32.mxu1 %vm5071_vm9, %v5067_v0 }
0x2cc7   :  { %4599 = vmatprep.subr.bf16.mxu1 %v5070_v25 }
0x2cca   :  { %4601 = vmatpush3.bf16.msra.mxu1 %v5949_v34 }
0x2ccb   :  { %4602 = vmatprep.subr.bf16.mxu1 %v5070_v25 }
0x2cce   :  { %4604 = vmatpush3.bf16.msra.mxu1 %v5959_v47 }
0x2ccf   :  { %4605 = vmatprep.subr.bf16.mxu1 %v5070_v25 }
0x2cd2   :  { %4607 = vmatpush3.bf16.msra.mxu1 %v5970_v20 }
0x2cd3   :  { %4620 = vmatprep.subr.bf16.mxu1 %v5070_v25 }
0x2cd5   :  { %4091 = vmatmul.mubr.msk.f32.vlgmr.msra.gmra.mrb[26].mxu1 %vm206_vm3, %v3419_v42 }
0x2cd6   :  { %4622 = vmatpush3.bf16.msra.mxu1 %v5937_v21  ;;  %4128 = vmatprep.mubr.msk.f32.mxu1 %vm5071_vm9, %v5067_v0 }
0x2cd7   :  { %4623 = vmatprep.subr.bf16.mxu1 %v5070_v25 }
0x2cda   :  { %4625 = vmatpush3.bf16.msra.mxu1 %v5949_v34 }
0x2cdb   :  { %4626 = vmatprep.subr.bf16.mxu1 %v5070_v25 }
0x2cde   :  { %4628 = vmatpush3.bf16.msra.mxu1 %v5959_v47 }
0x2cdf   :  { %4629 = vmatprep.subr.bf16.mxu1 %v5070_v25 }
0x2ce2   :  { %4631 = vmatpush3.bf16.msra.mxu1 %v5970_v20 }
0x2ce3   :  { %4644 = vmatprep.subr.bf16.mxu1 %v5070_v25 }
0x2ce5   :  { %4129 = vmatmul.mubr.msk.f32.vlgmr.msra.gmra.mrb[28].mxu1 %vm206_vm3, %v3571_v26 }
0x2ce6   :  { %4646 = vmatpush3.bf16.msra.mxu1 %v5937_v21  ;;  %4166 = vmatprep.mubr.msk.f32.mxu1 %vm5071_vm9, %v5067_v0 }
0x2ce7   :  { %4647 = vmatprep.subr.bf16.mxu1 %v5070_v25 }
0x2cea   :  { %4649 = vmatpush3.bf16.msra.mxu1 %v5949_v34 }
0x2ceb   :  { %4650 = vmatprep.subr.bf16.mxu1 %v5070_v25 }
0x2cee   :  { %4652 = vmatpush3.bf16.msra.mxu1 %v5959_v47 }
0x2cef   :  { %4653 = vmatprep.subr.bf16.mxu1 %v5070_v25 }
0x2cf2   :  { %4655 = vmatpush3.bf16.msra.mxu1 %v5970_v20 }
0x2cf5   :  { %4167 = vmatmul.mubr.msk.f32.vlgmr.msra.gmra.mrb[30].mxu1 %vm206_vm3, %v3723_v58 }
0x2d97   :  { %v3872_v0 = vpop.f32.mrb[36].mxu0 }
0x2d98   :  { %v3873_v21 = vadd.f32 %v3872_v0, %v6040_v56  ;;  %v3335_v30 = vpop.f32.mrb[24].mxu1  ;;  %v4187_v34 = vpop.f32.mrb[37].mxu0 }
0x2d99   :  { %v3336_v27 = vadd.f32 %v3335_v30, %v6040_v56  ;;  %v4054_v40 = vpop.f32.mrb[25].mxu1 }
0x2d9a   :  { %3876 = vst.msk [vmem:[#allocation8 + $0x7] sm:$0x1] %vm3339_vm10, %v3873_v21 }
0x2d9b   :  { %3340 = vst.msk [vmem:[#allocation8] sm:$0x1] %vm3339_vm10, %v3336_v27 }
0x2da8   :  { %v3488_v25 = vpop.f32.mrb[26].mxu1 }
0x2da9   :  { %v3489_v33 = vadd.f32 %v3488_v25, %v6040_v56  ;;  %v4092_v47 = vpop.f32.mrb[27].mxu1 }
0x2dab   :  { %3492 = vst.msk [vmem:[#allocation8 + $0x2] sm:$0x1] %vm3339_vm10, %v3489_v33 }
0x2db8   :  { %v3640_v20 = vpop.f32.mrb[28].mxu1 }
0x2db9   :  { %v3641_v24 = vadd.f32 %v3640_v20, %v6040_v56  ;;  %v4130_v45 = vpop.f32.mrb[29].mxu1 }
0x2dbb   :  { %3644 = vst.msk [vmem:[#allocation8 + $0x4] sm:$0x1] %vm3339_vm10, %v3641_v24 }
0x2dc8   :  { %v3792_v3 = vpop.f32.mrb[30].mxu1 }
0x2dc9   :  { %v3793_v5 = vadd.f32 %v3792_v3, %v6040_v56  ;;  %v4168_v11 = vpop.f32.mrb[31].mxu1 }
0x2dcb   :  { %3796 = vst.msk [vmem:[#allocation8 + $0x6] sm:$0x1] %vm3339_vm10, %v3793_v5 }
0x2dcc   :  { %5045 = shalt.err (!%p5042_p0)
}
0x2dcd   :  { %s5046_s29 = scalar_lea.hbm %s6135_s9, 128 }
0x2dce   :  { %p5047_p1 = scmp.ne.s32.totalorder %s6135_s9, %s5046_s29  ;;  %p5050_p2 = scmp.lt.u32.totalorder %s5046_s29, %s6135_s9 }
0x2dd0   :  { %p5052_p3 = pnand %p5050_p2, %p5047_p1 }
0x2dd2   :  { %5055 = shalt.err (!%p5052_p3)
}
0x2dd3   :  { %3886 = dma.vmem_to_hbm [thread:$0]  %s3884_s26, 128, %s6135_s9, [#allocation4]  }
0x2dd4   :  { %5060 = dma.done.wait [#allocation4], 128  }
0x2dd5   :  { %5061 = vsyncadd [#allocation4], 4294967168 }
0x2dd6   :  { %3890 = vsyncpa [#allocation3], 1 }
0x2dd7   :  { %3891 = vsyncpa [#allocation6], 1 }
0x2dd8   :  { %3892 = vsyncpa [#allocation4], 1 }

</bundles_post_ra>
